<compile_context>
chip_gen: v6e
topology: v6e:2x2x1
jax: 0.10.0
libtpu: 0.0.40
codegen_flags: <defaults>
</compile_context>

<pallas_src>
import functools

import jax
import jax.numpy as jnp
import numpy as np
from jax import lax
from jax.experimental import pallas as pl
from jax.experimental.pallas import tpu as pltpu


# -----------------------------------------------------------------------------
# Fused Pallas kernel
# -----------------------------------------------------------------------------
def _siam_xcorr_fused_kernel(z_ref, x_ref,
                             wk_ref, bk_ref,
                             ws_ref, bs_ref,
                             w1_ref, b1_ref,
                             w2_ref, b2_ref,
                             o_ref, *,
                             k, Wz, Wx, Hzo, Wzo,
                             span_z, span_xp, span_pad, chunk):
    """Whole DepthwiseXCorr.forward for one batch element.

    Inputs are (C, H*W) row-flattened bf16 slabs.  A "span" slab of width
    (H_out-1)*W_in + W_out indexes output position (i, j) at column i*W_in + j;
    columns with j >= W_out (and the zero-padded tail) are junk that never
    feeds a valid result and is stripped in the wrapper.
    """
    f32, bf16 = jnp.float32, jnp.bfloat16

    def conv_bias_relu(flat_bf16, w_taps_ref, bias, w_in, span):
        # valid kxk conv as k*k shifted bf16 MXU matmuls (in-kernel im2col).
        # BN scale is pre-folded into the weights (wrapper); only bias + ReLU
        # epilogue here.
        # TODO(synk): when Cin < 128, fold the k*k taps into one matmul
        # (stack tap slabs along the contraction axis) to fill the MXU K dim.
        acc = None
        for t in range(k * k):
            u, v = divmod(t, k)
            s = u * w_in + v
            part = jnp.dot(w_taps_ref[t], flat_bf16[:, s:s + span],
                           preferred_element_type=f32)
            acc = part if acc is None else acc + part
        return jnp.maximum(acc + bias, 0.0)

    zf = conv_bias_relu(z_ref[0], wk_ref, bk_ref[...], Wz, span_z)    # (hidden, span_z)
    xf = conv_bias_relu(x_ref[0], ws_ref, bs_ref[...], Wx, span_xp)   # (hidden, span_xp)

    # Hoist all Hzo*Wzo per-tap zf columns (hidden, 1) out of the chunk loop.
    zcols = [zf[:, u * Wz + v: u * Wz + v + 1]
             for u in range(Hzo) for v in range(Wzo)]

    w1 = w1_ref[...]
    b1 = b1_ref[...]
    w2 = w2_ref[...]
    b2 = b2_ref[...]

    # Depthwise cross-correlation + 1x1 head, chunked along the lane (span)
    # dim: taps innermost so the (hidden, chunk) f32 accumulator stays resident
    # across all taps; windows are chunk-sized slices of xf (not full-slab
    # shifted copies); each chunk's store to HBM is lane-aligned / lane-dense.
    for c0 in range(0, span_pad, chunk):
        acc = None
        t = 0
        for u in range(Hzo):
            base = u * Wx + c0
            for v in range(Wzo):
                win = xf[:, base + v: base + v + chunk]   # (hidden, chunk) f32
                term = win * zcols[t]                     # f32 FMA (v5e-safe)
                acc = term if acc is None else acc + term
                t += 1
        # head: 1x1 conv -> (BN folded) bias -> ReLU -> 1x1 conv (+bias)
        h = jnp.dot(w1, acc.astype(bf16), preferred_element_type=f32)
        h = jnp.maximum(h + b1, 0.0)
        out = jnp.dot(w2, h.astype(bf16), preferred_element_type=f32) + b2
        o_ref[0, :, c0:c0 + chunk] = out.astype(o_ref.dtype)


# -----------------------------------------------------------------------------
# Wrapper (layout plumbing only; all compute is inside the single pallas_call)
# -----------------------------------------------------------------------------
def _fold_bn(gamma, beta, mean, var, eps=1e-5):
    scale = gamma / jnp.sqrt(var + eps)
    bias = beta - mean * scale
    return scale, bias


def depthwise_xcorr_forward(z_nchw, x_nchw, p, k=3):
    """Full DepthwiseXCorr.forward as ONE fused Pallas call. NCHW in / NCHW out."""
    B, Cin, Hz, Wz = z_nchw.shape
    _, _, Hx, Wx = x_nchw.shape
    hidden = p["w_k"].shape[0]
    Cout = p["w_h2"].shape[0]

    Hzo, Wzo = Hz - k + 1, Wz - k + 1          # template feature spatial
    Hxo, Wxo = Hx - k + 1, Wx - k + 1          # search feature spatial
    Ho, Wo = Hxo - Hzo + 1, Wxo - Wzo + 1      # x-corr / head output spatial

    # row-flattened span widths (valid extent of the (i*W_in + j) indexing)
    span_z = (Hzo - 1) * Wz + Wzo
    span_x = (Hxo - 1) * Wx + Wxo
    span_o = (Ho - 1) * Wx + Wo

    rup = lambda a, m: (a + m - 1) // m * m
    CHUNK = 128
    span_pad = rup(span_o, CHUNK)                       # lane-aligned output span
    max_shift_xc = (Hzo - 1) * Wx + (Wzo - 1)           # largest x-corr window shift
    span_xp = rup(max_shift_xc + span_pad, 128)         # xf span incl. junk tail
    max_shift_conv = (k - 1) * Wx + (k - 1)             # largest conv tap shift
    x_pad_w = rup(max(max_shift_conv + span_xp, Hx * Wx), 128)
    Cout_pad = rup(Cout, 8)

    # NCHW -> (B, C, H*W) bf16: channels on sublanes, spatial on lanes.  Pad x
    # lanes with zeros so junk-tail output columns read zeros instead of OOB.
    z_flat = z_nchw.reshape(B, Cin, Hz * Wz).astype(jnp.bfloat16)
    x_flat = jnp.pad(x_nchw.reshape(B, Cin, Hx * Wx),
                     ((0, 0), (0, 0), (0, x_pad_w - Hx * Wx))).astype(jnp.bfloat16)

    # Fold BatchNorm scale into the conv / head weights (wrapper-side, one-time)
    sk, bk = _fold_bn(*p["bn_k"])
    ss, bs = _fold_bn(*p["bn_s"])
    s1, b1 = _fold_bn(*p["bn_h"])
    col = lambda v: v.reshape(-1, 1).astype(jnp.float32)

    def taps_bf16(w, scale):   # (O,I,kh,kw) -> (k*k, O, I) bf16 with BN scale folded
        w = w * scale[:, None, None, None]
        return jnp.transpose(w, (2, 3, 0, 1)).reshape(k * k, hidden, Cin).astype(jnp.bfloat16)

    wk_taps = taps_bf16(p["w_k"], sk)
    ws_taps = taps_bf16(p["w_s"], ss)
    w1 = (p["w_h1"].reshape(hidden, hidden) * s1[:, None]).astype(jnp.bfloat16)
    w2 = jnp.pad(p["w_h2"].reshape(Cout, hidden),
                 ((0, Cout_pad - Cout), (0, 0))).astype(jnp.bfloat16)
    b2 = jnp.pad(p["b_h2"], (0, Cout_pad - Cout)).reshape(-1, 1).astype(jnp.float32)

    kern = functools.partial(
        _siam_xcorr_fused_kernel, k=k, Wz=Wz, Wx=Wx, Hzo=Hzo, Wzo=Wzo,
        span_z=span_z, span_xp=span_xp, span_pad=span_pad, chunk=CHUNK)

    out_span = pl.pallas_call(
        kern,
        out_shape=jax.ShapeDtypeStruct((B, Cout_pad, span_pad), x_nchw.dtype),
        grid=(B,),
        in_specs=[
            pl.BlockSpec((1, Cin, Hz * Wz), lambda b: (b, 0, 0)),     # z (bf16)
            pl.BlockSpec((1, Cin, x_pad_w), lambda b: (b, 0, 0)),     # x (bf16, padded)
            pl.BlockSpec((k * k, hidden, Cin), lambda b: (0, 0, 0)),  # wk taps (BN folded)
            pl.BlockSpec((hidden, 1), lambda b: (0, 0)),              # bk
            pl.BlockSpec((k * k, hidden, Cin), lambda b: (0, 0, 0)),  # ws taps (BN folded)
            pl.BlockSpec((hidden, 1), lambda b: (0, 0)),              # bs
            pl.BlockSpec((hidden, hidden), lambda b: (0, 0)),         # w1 (BN folded)
            pl.BlockSpec((hidden, 1), lambda b: (0, 0)),              # b1
            pl.BlockSpec((Cout_pad, hidden), lambda b: (0, 0)),       # w2 (padded)
            pl.BlockSpec((Cout_pad, 1), lambda b: (0, 0)),            # b2 (padded)
        ],
        out_specs=pl.BlockSpec((1, Cout_pad, span_pad), lambda b: (b, 0, 0)),
        compiler_params=pltpu.CompilerParams(
            dimension_semantics=("parallel",)),
    )(z_flat, x_flat,
      wk_taps, col(bk), ws_taps, col(bs),
      w1, col(b1), w2, b2)

    # strip channel / lane padding and the row-flattened junk columns
    out = out_span[:, :Cout, :]
    if span_pad < Ho * Wx:
        out = jnp.pad(out, ((0, 0), (0, 0), (0, Ho * Wx - span_pad)))
    out = out[:, :, :Ho * Wx].reshape(B, Cout, Ho, Wx)
    return out[:, :, :, :Wo]


# -----------------------------------------------------------------------------
# Pure-JAX reference (mirrors the PyTorch module exactly, NCHW, f32 HIGHEST)
# -----------------------------------------------------------------------------
def ref_forward(z, x, p):
    def conv(inp, w, groups=1):
        return lax.conv_general_dilated(
            inp, w, (1, 1), "VALID",
            dimension_numbers=("NCHW", "OIHW", "NCHW"),
            feature_group_count=groups, precision=lax.Precision.HIGHEST)

    def bn(y, params):
        gamma, beta, mean, var = params
        s = gamma / jnp.sqrt(var + 1e-5)
        return y * s[None, :, None, None] + (beta - mean * s)[None, :, None, None]

    zf = jax.nn.relu(bn(conv(z, p["w_k"]), p["bn_k"]))
    xf = jax.nn.relu(bn(conv(x, p["w_s"]), p["bn_s"]))
    B, C, Hs, Ws = xf.shape
    xv = xf.reshape(1, B * C, Hs, Ws)
    kv = zf.reshape(B * C, 1, zf.shape[2], zf.shape[3])
    feat = conv(xv, kv, groups=B * C)
    feat = feat.reshape(B, C, feat.shape[2], feat.shape[3])
    h = jax.nn.relu(bn(conv(feat, p["w_h1"]), p["bn_h"]))
    out = conv(h, p["w_h2"]) + p["b_h2"][None, :, None, None]
    return out


# -----------------------------------------------------------------------------
# Deterministic parameter construction
# -----------------------------------------------------------------------------
def init_params(key, in_channels, hidden, out_channels, k=3):
    ks = jax.random.split(key, 12)

    def bn_params(k0, k1, k2, k3, n):
        gamma = 1.0 + 0.1 * jax.random.normal(k0, (n,), jnp.float32)
        beta = 0.1 * jax.random.normal(k1, (n,), jnp.float32)
        mean = 0.1 * jax.random.normal(k2, (n,), jnp.float32)
        var = 1.0 + 0.1 * jnp.abs(jax.random.normal(k3, (n,), jnp.float32))
        return (gamma, beta, mean, var)

    return {
        "w_k": 0.1 * jax.random.normal(ks[0], (hidden, in_channels, k, k), jnp.float32),
        "bn_k": bn_params(ks[1], ks[2], ks[3], ks[4], hidden),
        "w_s": 0.1 * jax.random.normal(ks[5], (hidden, in_channels, k, k), jnp.float32),
        "bn_s": bn_params(ks[6], ks[7], ks[8], ks[4], hidden),
        "w_h1": 0.1 * jax.random.normal(ks[9], (hidden, hidden, 1, 1), jnp.float32),
        "bn_h": bn_params(ks[2], ks[6], ks[9], ks[1], hidden),
        "w_h2": 0.1 * jax.random.normal(ks[10], (out_channels, hidden, 1, 1), jnp.float32),
        "b_h2": 0.1 * jax.random.normal(ks[11], (out_channels,), jnp.float32),
    }
    # NOTE: hidden_kernel_size in the PyTorch __init__ is unused by forward().


# -----------------------------------------------------------------------------
# Main
# -----------------------------------------------------------------------------
if __name__ == "__main__":
    B, Cin, hidden, Cout = 2, 4, 16, 8
    Hz = Wz = 8      # template ("kernel") spatial
    Hx = Wx = 16     # search spatial

    root = jax.random.PRNGKey(0)
    kz, kx, kp = jax.random.split(root, 3)
    z = jax.random.normal(kz, (B, Cin, Hz, Wz), jnp.float32)   # "kernel" input
    x = jax.random.normal(kx, (B, Cin, Hx, Wx), jnp.float32)   # "search" input
    params = init_params(kp, Cin, hidden, Cout)

    fwd = jax.jit(depthwise_xcorr_forward)
    out = jax.block_until_ready(fwd(z, x, params))

    # Output spatial: (Hx-2) - (Hz-2) + 1 = 9
    assert out.shape == (B, Cout, 9, 9), out.shape

    ref = jax.block_until_ready(ref_forward(z, x, params))
    # Kernel uses single-pass bf16 MXU matmuls (f32 accumulation) and bf16
    # inputs/weights vs. the f32 HIGHEST reference -> bf16-level tolerance.
    np.testing.assert_allclose(np.asarray(out), np.asarray(ref), rtol=2e-2, atol=2e-2)

    print("KERNEL_OK")
</pallas_src>

<mosaic_0001>
module attributes {stable_mosaic.version = 11 : i64} {
  func.func @_siam_xcorr_fused_kernel(%arg0: i32, %arg1: memref<1x4x64xbf16, #tpu.memory_space<vmem>>, %arg2: memref<1x4x512xbf16, #tpu.memory_space<vmem>>, %arg3: memref<9x16x4xbf16, #tpu.memory_space<vmem>>, %arg4: memref<16x1xf32, #tpu.memory_space<vmem>>, %arg5: memref<9x16x4xbf16, #tpu.memory_space<vmem>>, %arg6: memref<16x1xf32, #tpu.memory_space<vmem>>, %arg7: memref<16x16xbf16, #tpu.memory_space<vmem>>, %arg8: memref<16x1xf32, #tpu.memory_space<vmem>>, %arg9: memref<8x16xbf16, #tpu.memory_space<vmem>>, %arg10: memref<8x1xf32, #tpu.memory_space<vmem>>, %arg11: memref<1x8x256xf32, #tpu.memory_space<vmem>>) attributes {dimension_semantics = [#tpu.dimension_semantics<parallel>], iteration_bounds = array<i64: 2>, scalar_prefetch = 0 : i64, scratch_operands = 0 : i64, tpu.core_type = #tpu.core_type<tc>, window_params = [{transform_indices = @transform_0, window_bounds = array<i64: 1, 4, 64>}, {transform_indices = @transform_1, window_bounds = array<i64: 1, 4, 512>}, {pipeline_mode = #tpu.pipeline_mode<synchronous>, transform_indices = @transform_2, window_bounds = array<i64: 9, 16, 4>}, {pipeline_mode = #tpu.pipeline_mode<synchronous>, transform_indices = @transform_3, window_bounds = array<i64: 16, 1>}, {pipeline_mode = #tpu.pipeline_mode<synchronous>, transform_indices = @transform_4, window_bounds = array<i64: 9, 16, 4>}, {pipeline_mode = #tpu.pipeline_mode<synchronous>, transform_indices = @transform_5, window_bounds = array<i64: 16, 1>}, {pipeline_mode = #tpu.pipeline_mode<synchronous>, transform_indices = @transform_6, window_bounds = array<i64: 16, 16>}, {pipeline_mode = #tpu.pipeline_mode<synchronous>, transform_indices = @transform_7, window_bounds = array<i64: 16, 1>}, {pipeline_mode = #tpu.pipeline_mode<synchronous>, transform_indices = @transform_8, window_bounds = array<i64: 8, 16>}, {pipeline_mode = #tpu.pipeline_mode<synchronous>, transform_indices = @transform_9, window_bounds = array<i64: 8, 1>}, {transform_indices = @transform_10, window_bounds = array<i64: 1, 8, 256>}]} {
    %c0 = arith.constant 0 : index
    %c0_0 = arith.constant 0 : index
    %c0_1 = arith.constant 0 : index
    %0 = vector.load %arg1[%c0, %c0_0, %c0_1] : memref<1x4x64xbf16, #tpu.memory_space<vmem>>, vector<1x4x64xbf16>
    %1 = vector.shape_cast %0 : vector<1x4x64xbf16> to vector<4x64xbf16>
    %c0_2 = arith.constant 0 : index
    %c0_3 = arith.constant 0 : index
    %2 = vector.load %arg4[%c0_2, %c0_3] : memref<16x1xf32, #tpu.memory_space<vmem>>, vector<16x1xf32>
    %c0_4 = arith.constant 0 : index
    %c0_5 = arith.constant 0 : index
    %c0_6 = arith.constant 0 : index
    %3 = vector.load %arg3[%c0_4, %c0_5, %c0_6] : memref<9x16x4xbf16, #tpu.memory_space<vmem>>, vector<1x16x4xbf16>
    %4 = vector.shape_cast %3 : vector<1x16x4xbf16> to vector<16x4xbf16>
    %5 = vector.extract_strided_slice %1 {offsets = [0, 0], sizes = [4, 46], strides = [1, 1]} : vector<4x64xbf16> to vector<4x46xbf16>
    %cst = arith.constant dense<0.000000e+00> : vector<16x46xf32>
    %6 = tpu.matmul %4, %5, %cst {dimension_numbers = #tpu.dot_dimension_numbers<[1], [0], [0], [1], [0, 0, 1, 1], [], []>} : vector<16x4xbf16>, vector<4x46xbf16>, vector<16x46xf32> -> vector<16x46xf32>
    %c1 = arith.constant 1 : index
    %c0_7 = arith.constant 0 : index
    %c0_8 = arith.constant 0 : index
    %7 = vector.load %arg3[%c1, %c0_7, %c0_8] : memref<9x16x4xbf16, #tpu.memory_space<vmem>>, vector<1x16x4xbf16>
    %8 = vector.shape_cast %7 : vector<1x16x4xbf16> to vector<16x4xbf16>
    %9 = vector.extract_strided_slice %1 {offsets = [0, 1], sizes = [4, 46], strides = [1, 1]} : vector<4x64xbf16> to vector<4x46xbf16>
    %cst_9 = arith.constant dense<0.000000e+00> : vector<16x46xf32>
    %10 = tpu.matmul %8, %9, %cst_9 {dimension_numbers = #tpu.dot_dimension_numbers<[1], [0], [0], [1], [0, 0, 1, 1], [], []>} : vector<16x4xbf16>, vector<4x46xbf16>, vector<16x46xf32> -> vector<16x46xf32>
    %11 = arith.addf %6, %10 : vector<16x46xf32>
    %c2 = arith.constant 2 : index
    %c0_10 = arith.constant 0 : index
    %c0_11 = arith.constant 0 : index
    %12 = vector.load %arg3[%c2, %c0_10, %c0_11] : memref<9x16x4xbf16, #tpu.memory_space<vmem>>, vector<1x16x4xbf16>
    %13 = vector.shape_cast %12 : vector<1x16x4xbf16> to vector<16x4xbf16>
    %14 = vector.extract_strided_slice %1 {offsets = [0, 2], sizes = [4, 46], strides = [1, 1]} : vector<4x64xbf16> to vector<4x46xbf16>
    %cst_12 = arith.constant dense<0.000000e+00> : vector<16x46xf32>
    %15 = tpu.matmul %13, %14, %cst_12 {dimension_numbers = #tpu.dot_dimension_numbers<[1], [0], [0], [1], [0, 0, 1, 1], [], []>} : vector<16x4xbf16>, vector<4x46xbf16>, vector<16x46xf32> -> vector<16x46xf32>
    %16 = arith.addf %11, %15 : vector<16x46xf32>
    %c3 = arith.constant 3 : index
    %c0_13 = arith.constant 0 : index
    %c0_14 = arith.constant 0 : index
    %17 = vector.load %arg3[%c3, %c0_13, %c0_14] : memref<9x16x4xbf16, #tpu.memory_space<vmem>>, vector<1x16x4xbf16>
    %18 = vector.shape_cast %17 : vector<1x16x4xbf16> to vector<16x4xbf16>
    %19 = vector.extract_strided_slice %1 {offsets = [0, 8], sizes = [4, 46], strides = [1, 1]} : vector<4x64xbf16> to vector<4x46xbf16>
    %cst_15 = arith.constant dense<0.000000e+00> : vector<16x46xf32>
    %20 = tpu.matmul %18, %19, %cst_15 {dimension_numbers = #tpu.dot_dimension_numbers<[1], [0], [0], [1], [0, 0, 1, 1], [], []>} : vector<16x4xbf16>, vector<4x46xbf16>, vector<16x46xf32> -> vector<16x46xf32>
    %21 = arith.addf %16, %20 : vector<16x46xf32>
    %c4 = arith.constant 4 : index
    %c0_16 = arith.constant 0 : index
    %c0_17 = arith.constant 0 : index
    %22 = vector.load %arg3[%c4, %c0_16, %c0_17] : memref<9x16x4xbf16, #tpu.memory_space<vmem>>, vector<1x16x4xbf16>
    %23 = vector.shape_cast %22 : vector<1x16x4xbf16> to vector<16x4xbf16>
    %24 = vector.extract_strided_slice %1 {offsets = [0, 9], sizes = [4, 46], strides = [1, 1]} : vector<4x64xbf16> to vector<4x46xbf16>
    %cst_18 = arith.constant dense<0.000000e+00> : vector<16x46xf32>
    %25 = tpu.matmul %23, %24, %cst_18 {dimension_numbers = #tpu.dot_dimension_numbers<[1], [0], [0], [1], [0, 0, 1, 1], [], []>} : vector<16x4xbf16>, vector<4x46xbf16>, vector<16x46xf32> -> vector<16x46xf32>
    %26 = arith.addf %21, %25 : vector<16x46xf32>
    %c5 = arith.constant 5 : index
    %c0_19 = arith.constant 0 : index
    %c0_20 = arith.constant 0 : index
    %27 = vector.load %arg3[%c5, %c0_19, %c0_20] : memref<9x16x4xbf16, #tpu.memory_space<vmem>>, vector<1x16x4xbf16>
    %28 = vector.shape_cast %27 : vector<1x16x4xbf16> to vector<16x4xbf16>
    %29 = vector.extract_strided_slice %1 {offsets = [0, 10], sizes = [4, 46], strides = [1, 1]} : vector<4x64xbf16> to vector<4x46xbf16>
    %cst_21 = arith.constant dense<0.000000e+00> : vector<16x46xf32>
    %30 = tpu.matmul %28, %29, %cst_21 {dimension_numbers = #tpu.dot_dimension_numbers<[1], [0], [0], [1], [0, 0, 1, 1], [], []>} : vector<16x4xbf16>, vector<4x46xbf16>, vector<16x46xf32> -> vector<16x46xf32>
    %31 = arith.addf %26, %30 : vector<16x46xf32>
    %c6 = arith.constant 6 : index
    %c0_22 = arith.constant 0 : index
    %c0_23 = arith.constant 0 : index
    %32 = vector.load %arg3[%c6, %c0_22, %c0_23] : memref<9x16x4xbf16, #tpu.memory_space<vmem>>, vector<1x16x4xbf16>
    %33 = vector.shape_cast %32 : vector<1x16x4xbf16> to vector<16x4xbf16>
    %34 = vector.extract_strided_slice %1 {offsets = [0, 16], sizes = [4, 46], strides = [1, 1]} : vector<4x64xbf16> to vector<4x46xbf16>
    %cst_24 = arith.constant dense<0.000000e+00> : vector<16x46xf32>
    %35 = tpu.matmul %33, %34, %cst_24 {dimension_numbers = #tpu.dot_dimension_numbers<[1], [0], [0], [1], [0, 0, 1, 1], [], []>} : vector<16x4xbf16>, vector<4x46xbf16>, vector<16x46xf32> -> vector<16x46xf32>
    %36 = arith.addf %31, %35 : vector<16x46xf32>
    %c7 = arith.constant 7 : index
    %c0_25 = arith.constant 0 : index
    %c0_26 = arith.constant 0 : index
    %37 = vector.load %arg3[%c7, %c0_25, %c0_26] : memref<9x16x4xbf16, #tpu.memory_space<vmem>>, vector<1x16x4xbf16>
    %38 = vector.shape_cast %37 : vector<1x16x4xbf16> to vector<16x4xbf16>
    %39 = vector.extract_strided_slice %1 {offsets = [0, 17], sizes = [4, 46], strides = [1, 1]} : vector<4x64xbf16> to vector<4x46xbf16>
    %cst_27 = arith.constant dense<0.000000e+00> : vector<16x46xf32>
    %40 = tpu.matmul %38, %39, %cst_27 {dimension_numbers = #tpu.dot_dimension_numbers<[1], [0], [0], [1], [0, 0, 1, 1], [], []>} : vector<16x4xbf16>, vector<4x46xbf16>, vector<16x46xf32> -> vector<16x46xf32>
    %41 = arith.addf %36, %40 : vector<16x46xf32>
    %c8 = arith.constant 8 : index
    %c0_28 = arith.constant 0 : index
    %c0_29 = arith.constant 0 : index
    %42 = vector.load %arg3[%c8, %c0_28, %c0_29] : memref<9x16x4xbf16, #tpu.memory_space<vmem>>, vector<1x16x4xbf16>
    %43 = vector.shape_cast %42 : vector<1x16x4xbf16> to vector<16x4xbf16>
    %44 = vector.extract_strided_slice %1 {offsets = [0, 18], sizes = [4, 46], strides = [1, 1]} : vector<4x64xbf16> to vector<4x46xbf16>
    %cst_30 = arith.constant dense<0.000000e+00> : vector<16x46xf32>
    %45 = tpu.matmul %43, %44, %cst_30 {dimension_numbers = #tpu.dot_dimension_numbers<[1], [0], [0], [1], [0, 0, 1, 1], [], []>} : vector<16x4xbf16>, vector<4x46xbf16>, vector<16x46xf32> -> vector<16x46xf32>
    %46 = arith.addf %41, %45 : vector<16x46xf32>
    %47 = vector.broadcast %2 : vector<16x1xf32> to vector<16x46xf32>
    %48 = arith.addf %46, %47 : vector<16x46xf32>
    %cst_31 = arith.constant 0.000000e+00 : f32
    %49 = vector.broadcast %cst_31 : f32 to vector<16x46xf32>
    %50 = arith.maximumf %48, %49 : vector<16x46xf32>
    %c0_32 = arith.constant 0 : index
    %c0_33 = arith.constant 0 : index
    %c0_34 = arith.constant 0 : index
    %51 = vector.load %arg2[%c0_32, %c0_33, %c0_34] : memref<1x4x512xbf16, #tpu.memory_space<vmem>>, vector<1x4x512xbf16>
    %52 = vector.shape_cast %51 : vector<1x4x512xbf16> to vector<4x512xbf16>
    %c0_35 = arith.constant 0 : index
    %c0_36 = arith.constant 0 : index
    %53 = vector.load %arg6[%c0_35, %c0_36] : memref<16x1xf32, #tpu.memory_space<vmem>>, vector<16x1xf32>
    %c0_37 = arith.constant 0 : index
    %c0_38 = arith.constant 0 : index
    %c0_39 = arith.constant 0 : index
    %54 = vector.load %arg5[%c0_37, %c0_38, %c0_39] : memref<9x16x4xbf16, #tpu.memory_space<vmem>>, vector<1x16x4xbf16>
    %55 = vector.shape_cast %54 : vector<1x16x4xbf16> to vector<16x4xbf16>
    %56 = vector.extract_strided_slice %52 {offsets = [0, 0], sizes = [4, 384], strides = [1, 1]} : vector<4x512xbf16> to vector<4x384xbf16>
    %cst_40 = arith.constant dense<0.000000e+00> : vector<16x384xf32>
    %57 = tpu.matmul %55, %56, %cst_40 {dimension_numbers = #tpu.dot_dimension_numbers<[1], [0], [0], [1], [0, 0, 1, 1], [], []>} : vector<16x4xbf16>, vector<4x384xbf16>, vector<16x384xf32> -> vector<16x384xf32>
    %c1_41 = arith.constant 1 : index
    %c0_42 = arith.constant 0 : index
    %c0_43 = arith.constant 0 : index
    %58 = vector.load %arg5[%c1_41, %c0_42, %c0_43] : memref<9x16x4xbf16, #tpu.memory_space<vmem>>, vector<1x16x4xbf16>
    %59 = vector.shape_cast %58 : vector<1x16x4xbf16> to vector<16x4xbf16>
    %60 = vector.extract_strided_slice %52 {offsets = [0, 1], sizes = [4, 384], strides = [1, 1]} : vector<4x512xbf16> to vector<4x384xbf16>
    %cst_44 = arith.constant dense<0.000000e+00> : vector<16x384xf32>
    %61 = tpu.matmul %59, %60, %cst_44 {dimension_numbers = #tpu.dot_dimension_numbers<[1], [0], [0], [1], [0, 0, 1, 1], [], []>} : vector<16x4xbf16>, vector<4x384xbf16>, vector<16x384xf32> -> vector<16x384xf32>
    %62 = arith.addf %57, %61 : vector<16x384xf32>
    %c2_45 = arith.constant 2 : index
    %c0_46 = arith.constant 0 : index
    %c0_47 = arith.constant 0 : index
    %63 = vector.load %arg5[%c2_45, %c0_46, %c0_47] : memref<9x16x4xbf16, #tpu.memory_space<vmem>>, vector<1x16x4xbf16>
    %64 = vector.shape_cast %63 : vector<1x16x4xbf16> to vector<16x4xbf16>
    %65 = vector.extract_strided_slice %52 {offsets = [0, 2], sizes = [4, 384], strides = [1, 1]} : vector<4x512xbf16> to vector<4x384xbf16>
    %cst_48 = arith.constant dense<0.000000e+00> : vector<16x384xf32>
    %66 = tpu.matmul %64, %65, %cst_48 {dimension_numbers = #tpu.dot_dimension_numbers<[1], [0], [0], [1], [0, 0, 1, 1], [], []>} : vector<16x4xbf16>, vector<4x384xbf16>, vector<16x384xf32> -> vector<16x384xf32>
    %67 = arith.addf %62, %66 : vector<16x384xf32>
    %c3_49 = arith.constant 3 : index
    %c0_50 = arith.constant 0 : index
    %c0_51 = arith.constant 0 : index
    %68 = vector.load %arg5[%c3_49, %c0_50, %c0_51] : memref<9x16x4xbf16, #tpu.memory_space<vmem>>, vector<1x16x4xbf16>
    %69 = vector.shape_cast %68 : vector<1x16x4xbf16> to vector<16x4xbf16>
    %70 = vector.extract_strided_slice %52 {offsets = [0, 16], sizes = [4, 384], strides = [1, 1]} : vector<4x512xbf16> to vector<4x384xbf16>
    %cst_52 = arith.constant dense<0.000000e+00> : vector<16x384xf32>
    %71 = tpu.matmul %69, %70, %cst_52 {dimension_numbers = #tpu.dot_dimension_numbers<[1], [0], [0], [1], [0, 0, 1, 1], [], []>} : vector<16x4xbf16>, vector<4x384xbf16>, vector<16x384xf32> -> vector<16x384xf32>
    %72 = arith.addf %67, %71 : vector<16x384xf32>
    %c4_53 = arith.constant 4 : index
    %c0_54 = arith.constant 0 : index
    %c0_55 = arith.constant 0 : index
    %73 = vector.load %arg5[%c4_53, %c0_54, %c0_55] : memref<9x16x4xbf16, #tpu.memory_space<vmem>>, vector<1x16x4xbf16>
    %74 = vector.shape_cast %73 : vector<1x16x4xbf16> to vector<16x4xbf16>
    %75 = vector.extract_strided_slice %52 {offsets = [0, 17], sizes = [4, 384], strides = [1, 1]} : vector<4x512xbf16> to vector<4x384xbf16>
    %cst_56 = arith.constant dense<0.000000e+00> : vector<16x384xf32>
    %76 = tpu.matmul %74, %75, %cst_56 {dimension_numbers = #tpu.dot_dimension_numbers<[1], [0], [0], [1], [0, 0, 1, 1], [], []>} : vector<16x4xbf16>, vector<4x384xbf16>, vector<16x384xf32> -> vector<16x384xf32>
    %77 = arith.addf %72, %76 : vector<16x384xf32>
    %c5_57 = arith.constant 5 : index
    %c0_58 = arith.constant 0 : index
    %c0_59 = arith.constant 0 : index
    %78 = vector.load %arg5[%c5_57, %c0_58, %c0_59] : memref<9x16x4xbf16, #tpu.memory_space<vmem>>, vector<1x16x4xbf16>
    %79 = vector.shape_cast %78 : vector<1x16x4xbf16> to vector<16x4xbf16>
    %80 = vector.extract_strided_slice %52 {offsets = [0, 18], sizes = [4, 384], strides = [1, 1]} : vector<4x512xbf16> to vector<4x384xbf16>
    %cst_60 = arith.constant dense<0.000000e+00> : vector<16x384xf32>
    %81 = tpu.matmul %79, %80, %cst_60 {dimension_numbers = #tpu.dot_dimension_numbers<[1], [0], [0], [1], [0, 0, 1, 1], [], []>} : vector<16x4xbf16>, vector<4x384xbf16>, vector<16x384xf32> -> vector<16x384xf32>
    %82 = arith.addf %77, %81 : vector<16x384xf32>
    %c6_61 = arith.constant 6 : index
    %c0_62 = arith.constant 0 : index
    %c0_63 = arith.constant 0 : index
    %83 = vector.load %arg5[%c6_61, %c0_62, %c0_63] : memref<9x16x4xbf16, #tpu.memory_space<vmem>>, vector<1x16x4xbf16>
    %84 = vector.shape_cast %83 : vector<1x16x4xbf16> to vector<16x4xbf16>
    %85 = vector.extract_strided_slice %52 {offsets = [0, 32], sizes = [4, 384], strides = [1, 1]} : vector<4x512xbf16> to vector<4x384xbf16>
    %cst_64 = arith.constant dense<0.000000e+00> : vector<16x384xf32>
    %86 = tpu.matmul %84, %85, %cst_64 {dimension_numbers = #tpu.dot_dimension_numbers<[1], [0], [0], [1], [0, 0, 1, 1], [], []>} : vector<16x4xbf16>, vector<4x384xbf16>, vector<16x384xf32> -> vector<16x384xf32>
    %87 = arith.addf %82, %86 : vector<16x384xf32>
    %c7_65 = arith.constant 7 : index
    %c0_66 = arith.constant 0 : index
    %c0_67 = arith.constant 0 : index
    %88 = vector.load %arg5[%c7_65, %c0_66, %c0_67] : memref<9x16x4xbf16, #tpu.memory_space<vmem>>, vector<1x16x4xbf16>
    %89 = vector.shape_cast %88 : vector<1x16x4xbf16> to vector<16x4xbf16>
    %90 = vector.extract_strided_slice %52 {offsets = [0, 33], sizes = [4, 384], strides = [1, 1]} : vector<4x512xbf16> to vector<4x384xbf16>
    %cst_68 = arith.constant dense<0.000000e+00> : vector<16x384xf32>
    %91 = tpu.matmul %89, %90, %cst_68 {dimension_numbers = #tpu.dot_dimension_numbers<[1], [0], [0], [1], [0, 0, 1, 1], [], []>} : vector<16x4xbf16>, vector<4x384xbf16>, vector<16x384xf32> -> vector<16x384xf32>
    %92 = arith.addf %87, %91 : vector<16x384xf32>
    %c8_69 = arith.constant 8 : index
    %c0_70 = arith.constant 0 : index
    %c0_71 = arith.constant 0 : index
    %93 = vector.load %arg5[%c8_69, %c0_70, %c0_71] : memref<9x16x4xbf16, #tpu.memory_space<vmem>>, vector<1x16x4xbf16>
    %94 = vector.shape_cast %93 : vector<1x16x4xbf16> to vector<16x4xbf16>
    %95 = vector.extract_strided_slice %52 {offsets = [0, 34], sizes = [4, 384], strides = [1, 1]} : vector<4x512xbf16> to vector<4x384xbf16>
    %cst_72 = arith.constant dense<0.000000e+00> : vector<16x384xf32>
    %96 = tpu.matmul %94, %95, %cst_72 {dimension_numbers = #tpu.dot_dimension_numbers<[1], [0], [0], [1], [0, 0, 1, 1], [], []>} : vector<16x4xbf16>, vector<4x384xbf16>, vector<16x384xf32> -> vector<16x384xf32>
    %97 = arith.addf %92, %96 : vector<16x384xf32>
    %98 = vector.broadcast %53 : vector<16x1xf32> to vector<16x384xf32>
    %99 = arith.addf %97, %98 : vector<16x384xf32>
    %cst_73 = arith.constant 0.000000e+00 : f32
    %100 = vector.broadcast %cst_73 : f32 to vector<16x384xf32>
    %101 = arith.maximumf %99, %100 : vector<16x384xf32>
    %102 = vector.extract_strided_slice %50 {offsets = [0, 0], sizes = [16, 1], strides = [1, 1]} : vector<16x46xf32> to vector<16x1xf32>
    %103 = vector.extract_strided_slice %50 {offsets = [0, 1], sizes = [16, 1], strides = [1, 1]} : vector<16x46xf32> to vector<16x1xf32>
    %104 = vector.extract_strided_slice %50 {offsets = [0, 2], sizes = [16, 1], strides = [1, 1]} : vector<16x46xf32> to vector<16x1xf32>
    %105 = vector.extract_strided_slice %50 {offsets = [0, 3], sizes = [16, 1], strides = [1, 1]} : vector<16x46xf32> to vector<16x1xf32>
    %106 = vector.extract_strided_slice %50 {offsets = [0, 4], sizes = [16, 1], strides = [1, 1]} : vector<16x46xf32> to vector<16x1xf32>
    %107 = vector.extract_strided_slice %50 {offsets = [0, 5], sizes = [16, 1], strides = [1, 1]} : vector<16x46xf32> to vector<16x1xf32>
    %108 = vector.extract_strided_slice %50 {offsets = [0, 8], sizes = [16, 1], strides = [1, 1]} : vector<16x46xf32> to vector<16x1xf32>
    %109 = vector.extract_strided_slice %50 {offsets = [0, 9], sizes = [16, 1], strides = [1, 1]} : vector<16x46xf32> to vector<16x1xf32>
    %110 = vector.extract_strided_slice %50 {offsets = [0, 10], sizes = [16, 1], strides = [1, 1]} : vector<16x46xf32> to vector<16x1xf32>
    %111 = vector.extract_strided_slice %50 {offsets = [0, 11], sizes = [16, 1], strides = [1, 1]} : vector<16x46xf32> to vector<16x1xf32>
    %112 = vector.extract_strided_slice %50 {offsets = [0, 12], sizes = [16, 1], strides = [1, 1]} : vector<16x46xf32> to vector<16x1xf32>
    %113 = vector.extract_strided_slice %50 {offsets = [0, 13], sizes = [16, 1], strides = [1, 1]} : vector<16x46xf32> to vector<16x1xf32>
    %114 = vector.extract_strided_slice %50 {offsets = [0, 16], sizes = [16, 1], strides = [1, 1]} : vector<16x46xf32> to vector<16x1xf32>
    %115 = vector.extract_strided_slice %50 {offsets = [0, 17], sizes = [16, 1], strides = [1, 1]} : vector<16x46xf32> to vector<16x1xf32>
    %116 = vector.extract_strided_slice %50 {offsets = [0, 18], sizes = [16, 1], strides = [1, 1]} : vector<16x46xf32> to vector<16x1xf32>
    %117 = vector.extract_strided_slice %50 {offsets = [0, 19], sizes = [16, 1], strides = [1, 1]} : vector<16x46xf32> to vector<16x1xf32>
    %118 = vector.extract_strided_slice %50 {offsets = [0, 20], sizes = [16, 1], strides = [1, 1]} : vector<16x46xf32> to vector<16x1xf32>
    %119 = vector.extract_strided_slice %50 {offsets = [0, 21], sizes = [16, 1], strides = [1, 1]} : vector<16x46xf32> to vector<16x1xf32>
    %120 = vector.extract_strided_slice %50 {offsets = [0, 24], sizes = [16, 1], strides = [1, 1]} : vector<16x46xf32> to vector<16x1xf32>
    %121 = vector.extract_strided_slice %50 {offsets = [0, 25], sizes = [16, 1], strides = [1, 1]} : vector<16x46xf32> to vector<16x1xf32>
    %122 = vector.extract_strided_slice %50 {offsets = [0, 26], sizes = [16, 1], strides = [1, 1]} : vector<16x46xf32> to vector<16x1xf32>
    %123 = vector.extract_strided_slice %50 {offsets = [0, 27], sizes = [16, 1], strides = [1, 1]} : vector<16x46xf32> to vector<16x1xf32>
    %124 = vector.extract_strided_slice %50 {offsets = [0, 28], sizes = [16, 1], strides = [1, 1]} : vector<16x46xf32> to vector<16x1xf32>
    %125 = vector.extract_strided_slice %50 {offsets = [0, 29], sizes = [16, 1], strides = [1, 1]} : vector<16x46xf32> to vector<16x1xf32>
    %126 = vector.extract_strided_slice %50 {offsets = [0, 32], sizes = [16, 1], strides = [1, 1]} : vector<16x46xf32> to vector<16x1xf32>
    %127 = vector.extract_strided_slice %50 {offsets = [0, 33], sizes = [16, 1], strides = [1, 1]} : vector<16x46xf32> to vector<16x1xf32>
    %128 = vector.extract_strided_slice %50 {offsets = [0, 34], sizes = [16, 1], strides = [1, 1]} : vector<16x46xf32> to vector<16x1xf32>
    %129 = vector.extract_strided_slice %50 {offsets = [0, 35], sizes = [16, 1], strides = [1, 1]} : vector<16x46xf32> to vector<16x1xf32>
    %130 = vector.extract_strided_slice %50 {offsets = [0, 36], sizes = [16, 1], strides = [1, 1]} : vector<16x46xf32> to vector<16x1xf32>
    %131 = vector.extract_strided_slice %50 {offsets = [0, 37], sizes = [16, 1], strides = [1, 1]} : vector<16x46xf32> to vector<16x1xf32>
    %132 = vector.extract_strided_slice %50 {offsets = [0, 40], sizes = [16, 1], strides = [1, 1]} : vector<16x46xf32> to vector<16x1xf32>
    %133 = vector.extract_strided_slice %50 {offsets = [0, 41], sizes = [16, 1], strides = [1, 1]} : vector<16x46xf32> to vector<16x1xf32>
    %134 = vector.extract_strided_slice %50 {offsets = [0, 42], sizes = [16, 1], strides = [1, 1]} : vector<16x46xf32> to vector<16x1xf32>
    %135 = vector.extract_strided_slice %50 {offsets = [0, 43], sizes = [16, 1], strides = [1, 1]} : vector<16x46xf32> to vector<16x1xf32>
    %136 = vector.extract_strided_slice %50 {offsets = [0, 44], sizes = [16, 1], strides = [1, 1]} : vector<16x46xf32> to vector<16x1xf32>
    %137 = vector.extract_strided_slice %50 {offsets = [0, 45], sizes = [16, 1], strides = [1, 1]} : vector<16x46xf32> to vector<16x1xf32>
    %c0_74 = arith.constant 0 : index
    %c0_75 = arith.constant 0 : index
    %138 = vector.load %arg7[%c0_74, %c0_75] : memref<16x16xbf16, #tpu.memory_space<vmem>>, vector<16x16xbf16>
    %c0_76 = arith.constant 0 : index
    %c0_77 = arith.constant 0 : index
    %139 = vector.load %arg8[%c0_76, %c0_77] : memref<16x1xf32, #tpu.memory_space<vmem>>, vector<16x1xf32>
    %c0_78 = arith.constant 0 : index
    %c0_79 = arith.constant 0 : index
    %140 = vector.load %arg9[%c0_78, %c0_79] : memref<8x16xbf16, #tpu.memory_space<vmem>>, vector<8x16xbf16>
    %c0_80 = arith.constant 0 : index
    %c0_81 = arith.constant 0 : index
    %141 = vector.load %arg10[%c0_80, %c0_81] : memref<8x1xf32, #tpu.memory_space<vmem>>, vector<8x1xf32>
    %142 = vector.extract_strided_slice %101 {offsets = [0, 0], sizes = [16, 128], strides = [1, 1]} : vector<16x384xf32> to vector<16x128xf32>
    %143 = vector.broadcast %102 : vector<16x1xf32> to vector<16x128xf32>
    %144 = arith.mulf %142, %143 : vector<16x128xf32>
    %145 = vector.extract_strided_slice %101 {offsets = [0, 1], sizes = [16, 128], strides = [1, 1]} : vector<16x384xf32> to vector<16x128xf32>
    %146 = vector.broadcast %103 : vector<16x1xf32> to vector<16x128xf32>
    %147 = arith.mulf %145, %146 : vector<16x128xf32>
    %148 = arith.addf %144, %147 : vector<16x128xf32>
    %149 = vector.extract_strided_slice %101 {offsets = [0, 2], sizes = [16, 128], strides = [1, 1]} : vector<16x384xf32> to vector<16x128xf32>
    %150 = vector.broadcast %104 : vector<16x1xf32> to vector<16x128xf32>
    %151 = arith.mulf %149, %150 : vector<16x128xf32>
    %152 = arith.addf %148, %151 : vector<16x128xf32>
    %153 = vector.extract_strided_slice %101 {offsets = [0, 3], sizes = [16, 128], strides = [1, 1]} : vector<16x384xf32> to vector<16x128xf32>
    %154 = vector.broadcast %105 : vector<16x1xf32> to vector<16x128xf32>
    %155 = arith.mulf %153, %154 : vector<16x128xf32>
    %156 = arith.addf %152, %155 : vector<16x128xf32>
    %157 = vector.extract_strided_slice %101 {offsets = [0, 4], sizes = [16, 128], strides = [1, 1]} : vector<16x384xf32> to vector<16x128xf32>
    %158 = vector.broadcast %106 : vector<16x1xf32> to vector<16x128xf32>
    %159 = arith.mulf %157, %158 : vector<16x128xf32>
    %160 = arith.addf %156, %159 : vector<16x128xf32>
    %161 = vector.extract_strided_slice %101 {offsets = [0, 5], sizes = [16, 128], strides = [1, 1]} : vector<16x384xf32> to vector<16x128xf32>
    %162 = vector.broadcast %107 : vector<16x1xf32> to vector<16x128xf32>
    %163 = arith.mulf %161, %162 : vector<16x128xf32>
    %164 = arith.addf %160, %163 : vector<16x128xf32>
    %165 = vector.extract_strided_slice %101 {offsets = [0, 16], sizes = [16, 128], strides = [1, 1]} : vector<16x384xf32> to vector<16x128xf32>
    %166 = vector.broadcast %108 : vector<16x1xf32> to vector<16x128xf32>
    %167 = arith.mulf %165, %166 : vector<16x128xf32>
    %168 = arith.addf %164, %167 : vector<16x128xf32>
    %169 = vector.extract_strided_slice %101 {offsets = [0, 17], sizes = [16, 128], strides = [1, 1]} : vector<16x384xf32> to vector<16x128xf32>
    %170 = vector.broadcast %109 : vector<16x1xf32> to vector<16x128xf32>
    %171 = arith.mulf %169, %170 : vector<16x128xf32>
    %172 = arith.addf %168, %171 : vector<16x128xf32>
    %173 = vector.extract_strided_slice %101 {offsets = [0, 18], sizes = [16, 128], strides = [1, 1]} : vector<16x384xf32> to vector<16x128xf32>
    %174 = vector.broadcast %110 : vector<16x1xf32> to vector<16x128xf32>
    %175 = arith.mulf %173, %174 : vector<16x128xf32>
    %176 = arith.addf %172, %175 : vector<16x128xf32>
    %177 = vector.extract_strided_slice %101 {offsets = [0, 19], sizes = [16, 128], strides = [1, 1]} : vector<16x384xf32> to vector<16x128xf32>
    %178 = vector.broadcast %111 : vector<16x1xf32> to vector<16x128xf32>
    %179 = arith.mulf %177, %178 : vector<16x128xf32>
    %180 = arith.addf %176, %179 : vector<16x128xf32>
    %181 = vector.extract_strided_slice %101 {offsets = [0, 20], sizes = [16, 128], strides = [1, 1]} : vector<16x384xf32> to vector<16x128xf32>
    %182 = vector.broadcast %112 : vector<16x1xf32> to vector<16x128xf32>
    %183 = arith.mulf %181, %182 : vector<16x128xf32>
    %184 = arith.addf %180, %183 : vector<16x128xf32>
    %185 = vector.extract_strided_slice %101 {offsets = [0, 21], sizes = [16, 128], strides = [1, 1]} : vector<16x384xf32> to vector<16x128xf32>
    %186 = vector.broadcast %113 : vector<16x1xf32> to vector<16x128xf32>
    %187 = arith.mulf %185, %186 : vector<16x128xf32>
    %188 = arith.addf %184, %187 : vector<16x128xf32>
    %189 = vector.extract_strided_slice %101 {offsets = [0, 32], sizes = [16, 128], strides = [1, 1]} : vector<16x384xf32> to vector<16x128xf32>
    %190 = vector.broadcast %114 : vector<16x1xf32> to vector<16x128xf32>
    %191 = arith.mulf %189, %190 : vector<16x128xf32>
    %192 = arith.addf %188, %191 : vector<16x128xf32>
    %193 = vector.extract_strided_slice %101 {offsets = [0, 33], sizes = [16, 128], strides = [1, 1]} : vector<16x384xf32> to vector<16x128xf32>
    %194 = vector.broadcast %115 : vector<16x1xf32> to vector<16x128xf32>
    %195 = arith.mulf %193, %194 : vector<16x128xf32>
    %196 = arith.addf %192, %195 : vector<16x128xf32>
    %197 = vector.extract_strided_slice %101 {offsets = [0, 34], sizes = [16, 128], strides = [1, 1]} : vector<16x384xf32> to vector<16x128xf32>
    %198 = vector.broadcast %116 : vector<16x1xf32> to vector<16x128xf32>
    %199 = arith.mulf %197, %198 : vector<16x128xf32>
    %200 = arith.addf %196, %199 : vector<16x128xf32>
    %201 = vector.extract_strided_slice %101 {offsets = [0, 35], sizes = [16, 128], strides = [1, 1]} : vector<16x384xf32> to vector<16x128xf32>
    %202 = vector.broadcast %117 : vector<16x1xf32> to vector<16x128xf32>
    %203 = arith.mulf %201, %202 : vector<16x128xf32>
    %204 = arith.addf %200, %203 : vector<16x128xf32>
    %205 = vector.extract_strided_slice %101 {offsets = [0, 36], sizes = [16, 128], strides = [1, 1]} : vector<16x384xf32> to vector<16x128xf32>
    %206 = vector.broadcast %118 : vector<16x1xf32> to vector<16x128xf32>
    %207 = arith.mulf %205, %206 : vector<16x128xf32>
    %208 = arith.addf %204, %207 : vector<16x128xf32>
    %209 = vector.extract_strided_slice %101 {offsets = [0, 37], sizes = [16, 128], strides = [1, 1]} : vector<16x384xf32> to vector<16x128xf32>
    %210 = vector.broadcast %119 : vector<16x1xf32> to vector<16x128xf32>
    %211 = arith.mulf %209, %210 : vector<16x128xf32>
    %212 = arith.addf %208, %211 : vector<16x128xf32>
    %213 = vector.extract_strided_slice %101 {offsets = [0, 48], sizes = [16, 128], strides = [1, 1]} : vector<16x384xf32> to vector<16x128xf32>
    %214 = vector.broadcast %120 : vector<16x1xf32> to vector<16x128xf32>
    %215 = arith.mulf %213, %214 : vector<16x128xf32>
    %216 = arith.addf %212, %215 : vector<16x128xf32>
    %217 = vector.extract_strided_slice %101 {offsets = [0, 49], sizes = [16, 128], strides = [1, 1]} : vector<16x384xf32> to vector<16x128xf32>
    %218 = vector.broadcast %121 : vector<16x1xf32> to vector<16x128xf32>
    %219 = arith.mulf %217, %218 : vector<16x128xf32>
    %220 = arith.addf %216, %219 : vector<16x128xf32>
    %221 = vector.extract_strided_slice %101 {offsets = [0, 50], sizes = [16, 128], strides = [1, 1]} : vector<16x384xf32> to vector<16x128xf32>
    %222 = vector.broadcast %122 : vector<16x1xf32> to vector<16x128xf32>
    %223 = arith.mulf %221, %222 : vector<16x128xf32>
    %224 = arith.addf %220, %223 : vector<16x128xf32>
    %225 = vector.extract_strided_slice %101 {offsets = [0, 51], sizes = [16, 128], strides = [1, 1]} : vector<16x384xf32> to vector<16x128xf32>
    %226 = vector.broadcast %123 : vector<16x1xf32> to vector<16x128xf32>
    %227 = arith.mulf %225, %226 : vector<16x128xf32>
    %228 = arith.addf %224, %227 : vector<16x128xf32>
    %229 = vector.extract_strided_slice %101 {offsets = [0, 52], sizes = [16, 128], strides = [1, 1]} : vector<16x384xf32> to vector<16x128xf32>
    %230 = vector.broadcast %124 : vector<16x1xf32> to vector<16x128xf32>
    %231 = arith.mulf %229, %230 : vector<16x128xf32>
    %232 = arith.addf %228, %231 : vector<16x128xf32>
    %233 = vector.extract_strided_slice %101 {offsets = [0, 53], sizes = [16, 128], strides = [1, 1]} : vector<16x384xf32> to vector<16x128xf32>
    %234 = vector.broadcast %125 : vector<16x1xf32> to vector<16x128xf32>
    %235 = arith.mulf %233, %234 : vector<16x128xf32>
    %236 = arith.addf %232, %235 : vector<16x128xf32>
    %237 = vector.extract_strided_slice %101 {offsets = [0, 64], sizes = [16, 128], strides = [1, 1]} : vector<16x384xf32> to vector<16x128xf32>
    %238 = vector.broadcast %126 : vector<16x1xf32> to vector<16x128xf32>
    %239 = arith.mulf %237, %238 : vector<16x128xf32>
    %240 = arith.addf %236, %239 : vector<16x128xf32>
    %241 = vector.extract_strided_slice %101 {offsets = [0, 65], sizes = [16, 128], strides = [1, 1]} : vector<16x384xf32> to vector<16x128xf32>
    %242 = vector.broadcast %127 : vector<16x1xf32> to vector<16x128xf32>
    %243 = arith.mulf %241, %242 : vector<16x128xf32>
    %244 = arith.addf %240, %243 : vector<16x128xf32>
    %245 = vector.extract_strided_slice %101 {offsets = [0, 66], sizes = [16, 128], strides = [1, 1]} : vector<16x384xf32> to vector<16x128xf32>
    %246 = vector.broadcast %128 : vector<16x1xf32> to vector<16x128xf32>
    %247 = arith.mulf %245, %246 : vector<16x128xf32>
    %248 = arith.addf %244, %247 : vector<16x128xf32>
    %249 = vector.extract_strided_slice %101 {offsets = [0, 67], sizes = [16, 128], strides = [1, 1]} : vector<16x384xf32> to vector<16x128xf32>
    %250 = vector.broadcast %129 : vector<16x1xf32> to vector<16x128xf32>
    %251 = arith.mulf %249, %250 : vector<16x128xf32>
    %252 = arith.addf %248, %251 : vector<16x128xf32>
    %253 = vector.extract_strided_slice %101 {offsets = [0, 68], sizes = [16, 128], strides = [1, 1]} : vector<16x384xf32> to vector<16x128xf32>
    %254 = vector.broadcast %130 : vector<16x1xf32> to vector<16x128xf32>
    %255 = arith.mulf %253, %254 : vector<16x128xf32>
    %256 = arith.addf %252, %255 : vector<16x128xf32>
    %257 = vector.extract_strided_slice %101 {offsets = [0, 69], sizes = [16, 128], strides = [1, 1]} : vector<16x384xf32> to vector<16x128xf32>
    %258 = vector.broadcast %131 : vector<16x1xf32> to vector<16x128xf32>
    %259 = arith.mulf %257, %258 : vector<16x128xf32>
    %260 = arith.addf %256, %259 : vector<16x128xf32>
    %261 = vector.extract_strided_slice %101 {offsets = [0, 80], sizes = [16, 128], strides = [1, 1]} : vector<16x384xf32> to vector<16x128xf32>
    %262 = vector.broadcast %132 : vector<16x1xf32> to vector<16x128xf32>
    %263 = arith.mulf %261, %262 : vector<16x128xf32>
    %264 = arith.addf %260, %263 : vector<16x128xf32>
    %265 = vector.extract_strided_slice %101 {offsets = [0, 81], sizes = [16, 128], strides = [1, 1]} : vector<16x384xf32> to vector<16x128xf32>
    %266 = vector.broadcast %133 : vector<16x1xf32> to vector<16x128xf32>
    %267 = arith.mulf %265, %266 : vector<16x128xf32>
    %268 = arith.addf %264, %267 : vector<16x128xf32>
    %269 = vector.extract_strided_slice %101 {offsets = [0, 82], sizes = [16, 128], strides = [1, 1]} : vector<16x384xf32> to vector<16x128xf32>
    %270 = vector.broadcast %134 : vector<16x1xf32> to vector<16x128xf32>
    %271 = arith.mulf %269, %270 : vector<16x128xf32>
    %272 = arith.addf %268, %271 : vector<16x128xf32>
    %273 = vector.extract_strided_slice %101 {offsets = [0, 83], sizes = [16, 128], strides = [1, 1]} : vector<16x384xf32> to vector<16x128xf32>
    %274 = vector.broadcast %135 : vector<16x1xf32> to vector<16x128xf32>
    %275 = arith.mulf %273, %274 : vector<16x128xf32>
    %276 = arith.addf %272, %275 : vector<16x128xf32>
    %277 = vector.extract_strided_slice %101 {offsets = [0, 84], sizes = [16, 128], strides = [1, 1]} : vector<16x384xf32> to vector<16x128xf32>
    %278 = vector.broadcast %136 : vector<16x1xf32> to vector<16x128xf32>
    %279 = arith.mulf %277, %278 : vector<16x128xf32>
    %280 = arith.addf %276, %279 : vector<16x128xf32>
    %281 = vector.extract_strided_slice %101 {offsets = [0, 85], sizes = [16, 128], strides = [1, 1]} : vector<16x384xf32> to vector<16x128xf32>
    %282 = vector.broadcast %137 : vector<16x1xf32> to vector<16x128xf32>
    %283 = arith.mulf %281, %282 : vector<16x128xf32>
    %284 = arith.addf %280, %283 : vector<16x128xf32>
    %285 = arith.truncf %284 : vector<16x128xf32> to vector<16x128xbf16>
    %cst_82 = arith.constant dense<0.000000e+00> : vector<16x128xf32>
    %286 = tpu.matmul %138, %285, %cst_82 {dimension_numbers = #tpu.dot_dimension_numbers<[1], [0], [0], [1], [0, 0, 1, 1], [], []>} : vector<16x16xbf16>, vector<16x128xbf16>, vector<16x128xf32> -> vector<16x128xf32>
    %287 = vector.broadcast %139 : vector<16x1xf32> to vector<16x128xf32>
    %288 = arith.addf %286, %287 : vector<16x128xf32>
    %cst_83 = arith.constant 0.000000e+00 : f32
    %289 = vector.broadcast %cst_83 : f32 to vector<16x128xf32>
    %290 = arith.maximumf %288, %289 : vector<16x128xf32>
    %291 = arith.truncf %290 : vector<16x128xf32> to vector<16x128xbf16>
    %cst_84 = arith.constant dense<0.000000e+00> : vector<8x128xf32>
    %292 = tpu.matmul %140, %291, %cst_84 {dimension_numbers = #tpu.dot_dimension_numbers<[1], [0], [0], [1], [0, 0, 1, 1], [], []>} : vector<8x16xbf16>, vector<16x128xbf16>, vector<8x128xf32> -> vector<8x128xf32>
    %293 = vector.broadcast %141 : vector<8x1xf32> to vector<8x128xf32>
    %294 = arith.addf %292, %293 : vector<8x128xf32>
    %c0_85 = arith.constant 0 : index
    %c0_86 = arith.constant 0 : index
    %c0_87 = arith.constant 0 : index
    %295 = vector.load %arg11[%c0_85, %c0_86, %c0_87] : memref<1x8x256xf32, #tpu.memory_space<vmem>>, vector<1x8x128xf32>
    %296 = vector.shape_cast %295 : vector<1x8x128xf32> to vector<8x128xf32>
    %297 = vector.shape_cast %294 : vector<8x128xf32> to vector<1x8x128xf32>
    tpu.vector_store %arg11[%c0_85, %c0_86, %c0_87], %297 {strides = array<i32>} : memref<1x8x256xf32, #tpu.memory_space<vmem>>, vector<1x8x128xf32>,
    %298 = vector.extract_strided_slice %101 {offsets = [0, 128], sizes = [16, 128], strides = [1, 1]} : vector<16x384xf32> to vector<16x128xf32>
    %299 = vector.broadcast %102 : vector<16x1xf32> to vector<16x128xf32>
    %300 = arith.mulf %298, %299 : vector<16x128xf32>
    %301 = vector.extract_strided_slice %101 {offsets = [0, 129], sizes = [16, 128], strides = [1, 1]} : vector<16x384xf32> to vector<16x128xf32>
    %302 = vector.broadcast %103 : vector<16x1xf32> to vector<16x128xf32>
    %303 = arith.mulf %301, %302 : vector<16x128xf32>
    %304 = arith.addf %300, %303 : vector<16x128xf32>
    %305 = vector.extract_strided_slice %101 {offsets = [0, 130], sizes = [16, 128], strides = [1, 1]} : vector<16x384xf32> to vector<16x128xf32>
    %306 = vector.broadcast %104 : vector<16x1xf32> to vector<16x128xf32>
    %307 = arith.mulf %305, %306 : vector<16x128xf32>
    %308 = arith.addf %304, %307 : vector<16x128xf32>
    %309 = vector.extract_strided_slice %101 {offsets = [0, 131], sizes = [16, 128], strides = [1, 1]} : vector<16x384xf32> to vector<16x128xf32>
    %310 = vector.broadcast %105 : vector<16x1xf32> to vector<16x128xf32>
    %311 = arith.mulf %309, %310 : vector<16x128xf32>
    %312 = arith.addf %308, %311 : vector<16x128xf32>
    %313 = vector.extract_strided_slice %101 {offsets = [0, 132], sizes = [16, 128], strides = [1, 1]} : vector<16x384xf32> to vector<16x128xf32>
    %314 = vector.broadcast %106 : vector<16x1xf32> to vector<16x128xf32>
    %315 = arith.mulf %313, %314 : vector<16x128xf32>
    %316 = arith.addf %312, %315 : vector<16x128xf32>
    %317 = vector.extract_strided_slice %101 {offsets = [0, 133], sizes = [16, 128], strides = [1, 1]} : vector<16x384xf32> to vector<16x128xf32>
    %318 = vector.broadcast %107 : vector<16x1xf32> to vector<16x128xf32>
    %319 = arith.mulf %317, %318 : vector<16x128xf32>
    %320 = arith.addf %316, %319 : vector<16x128xf32>
    %321 = vector.extract_strided_slice %101 {offsets = [0, 144], sizes = [16, 128], strides = [1, 1]} : vector<16x384xf32> to vector<16x128xf32>
    %322 = vector.broadcast %108 : vector<16x1xf32> to vector<16x128xf32>
    %323 = arith.mulf %321, %322 : vector<16x128xf32>
    %324 = arith.addf %320, %323 : vector<16x128xf32>
    %325 = vector.extract_strided_slice %101 {offsets = [0, 145], sizes = [16, 128], strides = [1, 1]} : vector<16x384xf32> to vector<16x128xf32>
    %326 = vector.broadcast %109 : vector<16x1xf32> to vector<16x128xf32>
    %327 = arith.mulf %325, %326 : vector<16x128xf32>
    %328 = arith.addf %324, %327 : vector<16x128xf32>
    %329 = vector.extract_strided_slice %101 {offsets = [0, 146], sizes = [16, 128], strides = [1, 1]} : vector<16x384xf32> to vector<16x128xf32>
    %330 = vector.broadcast %110 : vector<16x1xf32> to vector<16x128xf32>
    %331 = arith.mulf %329, %330 : vector<16x128xf32>
    %332 = arith.addf %328, %331 : vector<16x128xf32>
    %333 = vector.extract_strided_slice %101 {offsets = [0, 147], sizes = [16, 128], strides = [1, 1]} : vector<16x384xf32> to vector<16x128xf32>
    %334 = vector.broadcast %111 : vector<16x1xf32> to vector<16x128xf32>
    %335 = arith.mulf %333, %334 : vector<16x128xf32>
    %336 = arith.addf %332, %335 : vector<16x128xf32>
    %337 = vector.extract_strided_slice %101 {offsets = [0, 148], sizes = [16, 128], strides = [1, 1]} : vector<16x384xf32> to vector<16x128xf32>
    %338 = vector.broadcast %112 : vector<16x1xf32> to vector<16x128xf32>
    %339 = arith.mulf %337, %338 : vector<16x128xf32>
    %340 = arith.addf %336, %339 : vector<16x128xf32>
    %341 = vector.extract_strided_slice %101 {offsets = [0, 149], sizes = [16, 128], strides = [1, 1]} : vector<16x384xf32> to vector<16x128xf32>
    %342 = vector.broadcast %113 : vector<16x1xf32> to vector<16x128xf32>
    %343 = arith.mulf %341, %342 : vector<16x128xf32>
    %344 = arith.addf %340, %343 : vector<16x128xf32>
    %345 = vector.extract_strided_slice %101 {offsets = [0, 160], sizes = [16, 128], strides = [1, 1]} : vector<16x384xf32> to vector<16x128xf32>
    %346 = vector.broadcast %114 : vector<16x1xf32> to vector<16x128xf32>
    %347 = arith.mulf %345, %346 : vector<16x128xf32>
    %348 = arith.addf %344, %347 : vector<16x128xf32>
    %349 = vector.extract_strided_slice %101 {offsets = [0, 161], sizes = [16, 128], strides = [1, 1]} : vector<16x384xf32> to vector<16x128xf32>
    %350 = vector.broadcast %115 : vector<16x1xf32> to vector<16x128xf32>
    %351 = arith.mulf %349, %350 : vector<16x128xf32>
    %352 = arith.addf %348, %351 : vector<16x128xf32>
    %353 = vector.extract_strided_slice %101 {offsets = [0, 162], sizes = [16, 128], strides = [1, 1]} : vector<16x384xf32> to vector<16x128xf32>
    %354 = vector.broadcast %116 : vector<16x1xf32> to vector<16x128xf32>
    %355 = arith.mulf %353, %354 : vector<16x128xf32>
    %356 = arith.addf %352, %355 : vector<16x128xf32>
    %357 = vector.extract_strided_slice %101 {offsets = [0, 163], sizes = [16, 128], strides = [1, 1]} : vector<16x384xf32> to vector<16x128xf32>
    %358 = vector.broadcast %117 : vector<16x1xf32> to vector<16x128xf32>
    %359 = arith.mulf %357, %358 : vector<16x128xf32>
    %360 = arith.addf %356, %359 : vector<16x128xf32>
    %361 = vector.extract_strided_slice %101 {offsets = [0, 164], sizes = [16, 128], strides = [1, 1]} : vector<16x384xf32> to vector<16x128xf32>
    %362 = vector.broadcast %118 : vector<16x1xf32> to vector<16x128xf32>
    %363 = arith.mulf %361, %362 : vector<16x128xf32>
    %364 = arith.addf %360, %363 : vector<16x128xf32>
    %365 = vector.extract_strided_slice %101 {offsets = [0, 165], sizes = [16, 128], strides = [1, 1]} : vector<16x384xf32> to vector<16x128xf32>
    %366 = vector.broadcast %119 : vector<16x1xf32> to vector<16x128xf32>
    %367 = arith.mulf %365, %366 : vector<16x128xf32>
    %368 = arith.addf %364, %367 : vector<16x128xf32>
    %369 = vector.extract_strided_slice %101 {offsets = [0, 176], sizes = [16, 128], strides = [1, 1]} : vector<16x384xf32> to vector<16x128xf32>
    %370 = vector.broadcast %120 : vector<16x1xf32> to vector<16x128xf32>
    %371 = arith.mulf %369, %370 : vector<16x128xf32>
    %372 = arith.addf %368, %371 : vector<16x128xf32>
    %373 = vector.extract_strided_slice %101 {offsets = [0, 177], sizes = [16, 128], strides = [1, 1]} : vector<16x384xf32> to vector<16x128xf32>
    %374 = vector.broadcast %121 : vector<16x1xf32> to vector<16x128xf32>
    %375 = arith.mulf %373, %374 : vector<16x128xf32>
    %376 = arith.addf %372, %375 : vector<16x128xf32>
    %377 = vector.extract_strided_slice %101 {offsets = [0, 178], sizes = [16, 128], strides = [1, 1]} : vector<16x384xf32> to vector<16x128xf32>
    %378 = vector.broadcast %122 : vector<16x1xf32> to vector<16x128xf32>
    %379 = arith.mulf %377, %378 : vector<16x128xf32>
    %380 = arith.addf %376, %379 : vector<16x128xf32>
    %381 = vector.extract_strided_slice %101 {offsets = [0, 179], sizes = [16, 128], strides = [1, 1]} : vector<16x384xf32> to vector<16x128xf32>
    %382 = vector.broadcast %123 : vector<16x1xf32> to vector<16x128xf32>
    %383 = arith.mulf %381, %382 : vector<16x128xf32>
    %384 = arith.addf %380, %383 : vector<16x128xf32>
    %385 = vector.extract_strided_slice %101 {offsets = [0, 180], sizes = [16, 128], strides = [1, 1]} : vector<16x384xf32> to vector<16x128xf32>
    %386 = vector.broadcast %124 : vector<16x1xf32> to vector<16x128xf32>
    %387 = arith.mulf %385, %386 : vector<16x128xf32>
    %388 = arith.addf %384, %387 : vector<16x128xf32>
    %389 = vector.extract_strided_slice %101 {offsets = [0, 181], sizes = [16, 128], strides = [1, 1]} : vector<16x384xf32> to vector<16x128xf32>
    %390 = vector.broadcast %125 : vector<16x1xf32> to vector<16x128xf32>
    %391 = arith.mulf %389, %390 : vector<16x128xf32>
    %392 = arith.addf %388, %391 : vector<16x128xf32>
    %393 = vector.extract_strided_slice %101 {offsets = [0, 192], sizes = [16, 128], strides = [1, 1]} : vector<16x384xf32> to vector<16x128xf32>
    %394 = vector.broadcast %126 : vector<16x1xf32> to vector<16x128xf32>
    %395 = arith.mulf %393, %394 : vector<16x128xf32>
    %396 = arith.addf %392, %395 : vector<16x128xf32>
    %397 = vector.extract_strided_slice %101 {offsets = [0, 193], sizes = [16, 128], strides = [1, 1]} : vector<16x384xf32> to vector<16x128xf32>
    %398 = vector.broadcast %127 : vector<16x1xf32> to vector<16x128xf32>
    %399 = arith.mulf %397, %398 : vector<16x128xf32>
    %400 = arith.addf %396, %399 : vector<16x128xf32>
    %401 = vector.extract_strided_slice %101 {offsets = [0, 194], sizes = [16, 128], strides = [1, 1]} : vector<16x384xf32> to vector<16x128xf32>
    %402 = vector.broadcast %128 : vector<16x1xf32> to vector<16x128xf32>
    %403 = arith.mulf %401, %402 : vector<16x128xf32>
    %404 = arith.addf %400, %403 : vector<16x128xf32>
    %405 = vector.extract_strided_slice %101 {offsets = [0, 195], sizes = [16, 128], strides = [1, 1]} : vector<16x384xf32> to vector<16x128xf32>
    %406 = vector.broadcast %129 : vector<16x1xf32> to vector<16x128xf32>
    %407 = arith.mulf %405, %406 : vector<16x128xf32>
    %408 = arith.addf %404, %407 : vector<16x128xf32>
    %409 = vector.extract_strided_slice %101 {offsets = [0, 196], sizes = [16, 128], strides = [1, 1]} : vector<16x384xf32> to vector<16x128xf32>
    %410 = vector.broadcast %130 : vector<16x1xf32> to vector<16x128xf32>
    %411 = arith.mulf %409, %410 : vector<16x128xf32>
    %412 = arith.addf %408, %411 : vector<16x128xf32>
    %413 = vector.extract_strided_slice %101 {offsets = [0, 197], sizes = [16, 128], strides = [1, 1]} : vector<16x384xf32> to vector<16x128xf32>
    %414 = vector.broadcast %131 : vector<16x1xf32> to vector<16x128xf32>
    %415 = arith.mulf %413, %414 : vector<16x128xf32>
    %416 = arith.addf %412, %415 : vector<16x128xf32>
    %417 = vector.extract_strided_slice %101 {offsets = [0, 208], sizes = [16, 128], strides = [1, 1]} : vector<16x384xf32> to vector<16x128xf32>
    %418 = vector.broadcast %132 : vector<16x1xf32> to vector<16x128xf32>
    %419 = arith.mulf %417, %418 : vector<16x128xf32>
    %420 = arith.addf %416, %419 : vector<16x128xf32>
    %421 = vector.extract_strided_slice %101 {offsets = [0, 209], sizes = [16, 128], strides = [1, 1]} : vector<16x384xf32> to vector<16x128xf32>
    %422 = vector.broadcast %133 : vector<16x1xf32> to vector<16x128xf32>
    %423 = arith.mulf %421, %422 : vector<16x128xf32>
    %424 = arith.addf %420, %423 : vector<16x128xf32>
    %425 = vector.extract_strided_slice %101 {offsets = [0, 210], sizes = [16, 128], strides = [1, 1]} : vector<16x384xf32> to vector<16x128xf32>
    %426 = vector.broadcast %134 : vector<16x1xf32> to vector<16x128xf32>
    %427 = arith.mulf %425, %426 : vector<16x128xf32>
    %428 = arith.addf %424, %427 : vector<16x128xf32>
    %429 = vector.extract_strided_slice %101 {offsets = [0, 211], sizes = [16, 128], strides = [1, 1]} : vector<16x384xf32> to vector<16x128xf32>
    %430 = vector.broadcast %135 : vector<16x1xf32> to vector<16x128xf32>
    %431 = arith.mulf %429, %430 : vector<16x128xf32>
    %432 = arith.addf %428, %431 : vector<16x128xf32>
    %433 = vector.extract_strided_slice %101 {offsets = [0, 212], sizes = [16, 128], strides = [1, 1]} : vector<16x384xf32> to vector<16x128xf32>
    %434 = vector.broadcast %136 : vector<16x1xf32> to vector<16x128xf32>
    %435 = arith.mulf %433, %434 : vector<16x128xf32>
    %436 = arith.addf %432, %435 : vector<16x128xf32>
    %437 = vector.extract_strided_slice %101 {offsets = [0, 213], sizes = [16, 128], strides = [1, 1]} : vector<16x384xf32> to vector<16x128xf32>
    %438 = vector.broadcast %137 : vector<16x1xf32> to vector<16x128xf32>
    %439 = arith.mulf %437, %438 : vector<16x128xf32>
    %440 = arith.addf %436, %439 : vector<16x128xf32>
    %441 = arith.truncf %440 : vector<16x128xf32> to vector<16x128xbf16>
    %cst_88 = arith.constant dense<0.000000e+00> : vector<16x128xf32>
    %442 = tpu.matmul %138, %441, %cst_88 {dimension_numbers = #tpu.dot_dimension_numbers<[1], [0], [0], [1], [0, 0, 1, 1], [], []>} : vector<16x16xbf16>, vector<16x128xbf16>, vector<16x128xf32> -> vector<16x128xf32>
    %443 = vector.broadcast %139 : vector<16x1xf32> to vector<16x128xf32>
    %444 = arith.addf %442, %443 : vector<16x128xf32>
    %cst_89 = arith.constant 0.000000e+00 : f32
    %445 = vector.broadcast %cst_89 : f32 to vector<16x128xf32>
    %446 = arith.maximumf %444, %445 : vector<16x128xf32>
    %447 = arith.truncf %446 : vector<16x128xf32> to vector<16x128xbf16>
    %cst_90 = arith.constant dense<0.000000e+00> : vector<8x128xf32>
    %448 = tpu.matmul %140, %447, %cst_90 {dimension_numbers = #tpu.dot_dimension_numbers<[1], [0], [0], [1], [0, 0, 1, 1], [], []>} : vector<8x16xbf16>, vector<16x128xbf16>, vector<8x128xf32> -> vector<8x128xf32>
    %449 = vector.broadcast %141 : vector<8x1xf32> to vector<8x128xf32>
    %450 = arith.addf %448, %449 : vector<8x128xf32>
    %c0_91 = arith.constant 0 : index
    %c0_92 = arith.constant 0 : index
    %c128 = arith.constant 128 : index
    %451 = vector.load %arg11[%c0_91, %c0_92, %c128] : memref<1x8x256xf32, #tpu.memory_space<vmem>>, vector<1x8x128xf32>
    %452 = vector.shape_cast %451 : vector<1x8x128xf32> to vector<8x128xf32>
    %453 = vector.shape_cast %450 : vector<8x128xf32> to vector<1x8x128xf32>
    tpu.vector_store %arg11[%c0_91, %c0_92, %c128], %453 {strides = array<i32>} : memref<1x8x256xf32, #tpu.memory_space<vmem>>, vector<1x8x128xf32>,
    return
  }
  func.func @transform_0(%arg0: i32) -> (i32, i32, i32) {
    %c0_i32 = arith.constant 0 : i32
    %c0_i32_0 = arith.constant 0 : i32
    %c0_i32_1 = arith.constant 0 : i32
    return %arg0, %c0_i32, %c0_i32_0 : i32, i32, i32
  }
  func.func @transform_1(%arg0: i32) -> (i32, i32, i32) {
    %c0_i32 = arith.constant 0 : i32
    %c0_i32_0 = arith.constant 0 : i32
    %c0_i32_1 = arith.constant 0 : i32
    return %arg0, %c0_i32, %c0_i32_0 : i32, i32, i32
  }
  func.func @transform_2(%arg0: i32) -> (i32, i32, i32) {
    %c0_i32 = arith.constant 0 : i32
    %c0_i32_0 = arith.constant 0 : i32
    %c0_i32_1 = arith.constant 0 : i32
    %c0_i32_2 = arith.constant 0 : i32
    return %c0_i32, %c0_i32_0, %c0_i32_1 : i32, i32, i32
  }
  func.func @transform_3(%arg0: i32) -> (i32, i32) {
    %c0_i32 = arith.constant 0 : i32
    %c0_i32_0 = arith.constant 0 : i32
    %c0_i32_1 = arith.constant 0 : i32
    return %c0_i32, %c0_i32_0 : i32, i32
  }
  func.func @transform_4(%arg0: i32) -> (i32, i32, i32) {
    %c0_i32 = arith.constant 0 : i32
    %c0_i32_0 = arith.constant 0 : i32
    %c0_i32_1 = arith.constant 0 : i32
    %c0_i32_2 = arith.constant 0 : i32
    return %c0_i32, %c0_i32_0, %c0_i32_1 : i32, i32, i32
  }
  func.func @transform_5(%arg0: i32) -> (i32, i32) {
    %c0_i32 = arith.constant 0 : i32
    %c0_i32_0 = arith.constant 0 : i32
    %c0_i32_1 = arith.constant 0 : i32
    return %c0_i32, %c0_i32_0 : i32, i32
  }
  func.func @transform_6(%arg0: i32) -> (i32, i32) {
    %c0_i32 = arith.constant 0 : i32
    %c0_i32_0 = arith.constant 0 : i32
    %c0_i32_1 = arith.constant 0 : i32
    return %c0_i32, %c0_i32_0 : i32, i32
  }
  func.func @transform_7(%arg0: i32) -> (i32, i32) {
    %c0_i32 = arith.constant 0 : i32
    %c0_i32_0 = arith.constant 0 : i32
    %c0_i32_1 = arith.constant 0 : i32
    return %c0_i32, %c0_i32_0 : i32, i32
  }
  func.func @transform_8(%arg0: i32) -> (i32, i32) {
    %c0_i32 = arith.constant 0 : i32
    %c0_i32_0 = arith.constant 0 : i32
    %c0_i32_1 = arith.constant 0 : i32
    return %c0_i32, %c0_i32_0 : i32, i32
  }
  func.func @transform_9(%arg0: i32) -> (i32, i32) {
    %c0_i32 = arith.constant 0 : i32
    %c0_i32_0 = arith.constant 0 : i32
    %c0_i32_1 = arith.constant 0 : i32
    return %c0_i32, %c0_i32_0 : i32, i32
  }
  func.func @transform_10(%arg0: i32) -> (i32, i32, i32) {
    %c0_i32 = arith.constant 0 : i32
    %c0_i32_0 = arith.constant 0 : i32
    %c0_i32_1 = arith.constant 0 : i32
    return %arg0, %c0_i32, %c0_i32_0 : i32, i32, i32
  }
}

</mosaic_0001>

<bundles_post_ra>
// kernel: depthwise_xcorr_forward.1
= control target key start
LH: loop header
LB: loop body
LE: loop exit
PB: predicated region body
PF: predicated region fallthrough
CT: control target
= control target key end

     0   :  { %s4507_s13 = smov 0   ;;  %s6509_s0 = inlined_call_operand.vmem [shape: bf16[2,4,64], index: 0, kind: input, shape index: {}]   ;;  %s6510_s1 = inlined_call_operand.vmem [shape: bf16[2,4,512], index: 1, kind: input, shape index: {}]   ;;  %s6511_s2 = inlined_call_operand.vmem [shape: bf16[9,16,4], index: 2, kind: input, shape index: {}]   ;;  %s6512_s3 = inlined_call_operand.vmem [shape: f32[16,1], index: 3, kind: input, shape index: {}]   ;;  %s6513_s4 = inlined_call_operand.vmem [shape: bf16[9,16,4], index: 4, kind: input, shape index: {}]   ;;  %s6514_s5 = inlined_call_operand.vmem [shape: f32[16,1], index: 5, kind: input, shape index: {}]   ;;  %s6515_s6 = inlined_call_operand.vmem [shape: bf16[16,16], index: 6, kind: input, shape index: {}]   ;;  %s6516_s7 = inlined_call_operand.vmem [shape: f32[16,1], index: 7, kind: input, shape index: {}]   ;;  %s6517_s8 = inlined_call_operand.vmem [shape: bf16[8,16], index: 8, kind: input, shape index: {}]   ;;  %s6518_s9 = inlined_call_operand.vmem [shape: f32[8,1], index: 9, kind: input, shape index: {}]   ;;  %s6519_s10 = inlined_call_operand.vmem [shape: f32[2,8,256], index: 10, kind: output, shape index: {}]  }
   0x1 LB: > { %s3906_s14 = sadd.s32 4294967295, %s4373_s13   ;;  %p3910_p0 = scmp.ge.s32.totalorder %s4373_s13, 1  ;;  %s4373_s13 = sphi %s4507_s13, %s20_s13  }
   0x2   : > { %p321_p1 = scmp.lt.s32.totalorder %s4373_s13, 3 }
   0x4   : > { %p322_p2 = pnand %p3910_p0, %p321_p1 }
   0x6   : > { %325 = sbr.rel (%p322_p2) target bundleno = 1563 (0x61b), region = 60 }
   0xb   : > { %p363_p3 = scmp.lt.s32.totalorder %s3906_s14, 1  ;;  %v395_v0 = vlaneseq  ;;  %v4375_v1 = vmov 1983009808   ;;  %v6522_v3 = vmov 0.0   ;;  %vm6568_vm0 = vmmov 0   ;;  %v4348_v10 = vld [vmem:[%s6511_s2] sm:$0xff]  }
   0xc   : > { %v393_v2 = vunpack.c.l.s4 %v4375_v1  ;;  %4061 = vmatprep.subr.bf16.mxu1 %v6522_v3  ;;  %4055 = vmatprep.subr.bf16.mxu0 %v6522_v3  ;;  %vm405_vm1 = vcmask 1041408   ;;  %vm401_vm2 = vcmask 31744   ;;  %s4378_s25 = smov 127   ;;  %s4379_s26 = smov 126   ;;  %v4385_v17 = vmov 0   ;;  %v379_v18 = vld [vmem:[%s6512_s3] sm:$0xff] }
   0xd   : > { %s6811_s14 = smov (!%p363_p3, %s3906_s14), 1  ;;  %v396_v4 = vshrl.u32 %v395_v0, 7  ;;  %4063 = vmatprep.mubr.msk.bf16.mxu1 %vm6568_vm0, %v6522_v3  ;;  %4057 = vmatprep.mubr.msk.bf16.mxu0 %vm6568_vm0, %v6522_v3  ;;  %s4380_s27 = smov 120   ;;  %v931_v19 = vld [vmem:[%s6514_s5 + $0x8] sm:$0xff]  ;;  %v4350_v29 = vld [vmem:[%s6511_s2 + $0x18] sm:$0xff]   ;;  %v4351_v33 = vld [vmem:[%s6511_s2 + $0x10] sm:$0xff]  }
   0xe   : > { %v394_v5 = vunpack.c.0.s8 %v393_v2  ;;  %s3911_s15 = sshll.u32 %s6811_s14, 1  ;;  %s4009_s19 = sshll.u32 %s6811_s14, 3  ;;  %4272 = vset.pattern.permute.xlu0 %v4385_v17  ;;  %4273 = vset.pattern.permute.xlu1 %v4385_v17  ;;  %v380_v20 = vld [vmem:[%s6512_s3 + $0x8] sm:$0xff]  ;;  %vm968_vm3 = vcmask 1039360   ;;  %v4353_v41 = vld [vmem:[%s6511_s2 + $0x20] sm:$0xff]   ;;  %v4354_v47 = vld [vmem:[%s6511_s2 + $0x38] sm:$0xff]  }
   0xf   : > { %s366_s18 = scalar_lea.vmem %s6509_s0, %s3911_s15  ;;  %s371_s24 = scalar_lea.vmem %s6510_s1, %s4009_s19  ;;  %v4349_v24 = vld [vmem:[%s6511_s2 + $0x8] sm:$0xff]   ;;  %v4355_v51 = vld [vmem:[%s6511_s2 + $0x30] sm:$0xff]   ;;  %vm1185_vm4 = vcmask 1031168   ;;  %v4357_v61 = vld [vmem:[%s6511_s2 + $0x40] sm:$0xff]   ;;  %vm1307_vm5 = vcmask 916480   ;;  %vm1429_vm6 = vcmask 908288  }
  0x10   : > { %v397_v6 = vsub.s32 %v394_v5, %v396_v4  ;;  %v378_v7 = vld [vmem:[%s366_s18] sm:$0x3]  ;;  %s4381_s28 = smov 118   ;;  %s4382_s29 = smov 119   ;;  %v4352_v37 = vld [vmem:[%s6511_s2 + $0x28] sm:$0xff]   ;;  %vm1551_vm7 = vcmask 900096  }
  0x11   : > { %v459_v9 = vsel %vm405_vm1, %v378_v7, 0  ;;  %v929_v11 = vld [vmem:[%s371_s24] sm:$0xff]  ;;  %s4383_s30 = smov 111   ;;  %s4384_s11 = smov 112   ;;  %v4356_v55 = vld [vmem:[%s6513_s4 + $0x8] sm:$0xff]   ;;  %vm1673_vm8 = vcmask 785408  }
  0x12   : > { %v398_v8 = vrot.slane %v378_v7, %v397_v6  ;;  %4062 = vmatpush3.bf16.msra.mxu1 %v459_v9  ;;  %v943_v12 = vcombine.high %v929_v11, %v929_v11  ;;  %v4541_v13 = vrot.slane %v929_v11, %v397_v6  ;;  %s4386_s12 = smov 110   ;;  %s4387_s15 = smov 96   ;;  %v4358_v2 = vld [vmem:[%s6513_s4] sm:$0xff]   ;;  %vm1795_vm9 = vcmask 777216  }
  0x13   : > { %4073 = vmatprep.subr.bf16.mxu1 %v6522_v3  ;;  %s6550_s16 = smov 95   ;;  %s6552_s17 = smov 94   ;;  %vm6570_vm10 = vcmask 769024   ;;  %vm2149_vm11 = vcmask 1022976   ;;  %vm2180_vm12 = vcmask 1014784   ;;  %vm2211_vm13 = vcmask 1006592  }
  0x14   : > { %399 = vrot.lane.b32.xlu0 %v398_v8, %s4378_s25  ;;  %510 = vrot.lane.b32.xlu1 %v398_v8, %s4379_s26  ;;  %v4544_v14 = vrot.slane %v943_v12, %v397_v6  ;;  %v4551_v15 = vcombine.high %v4541_v13, %v4541_v13  ;;  %v1077_v56 = vsel %vm405_vm1, %v4541_v13, 0  ;;  %v4359_v12 = vld [vmem:[%s6513_s4 + $0x10] sm:$0xff]   ;;  %s4425_s20 = smov 124   ;;  %s4426_s21 = smov 109   ;;  %vm2335_vm14 = vcmask 891904  }
  0x15   : > { %4064 = vmatmul.mubr.msk.bf16.vlgmr.msra.gmra.mxu1 %vm401_vm2, %v4348_v10  ;;  %s4427_s22 = smov 108   ;;  %s4428_s23 = smov 107   ;;  %vm2366_vm15 = vcmask 883712  }
  0x16   : > { %4075 = vmatprep.mubr.msk.bf16.mxu1 %vm6568_vm0, %v6522_v3  ;;  %v959_v16 = vcombine.high %v4544_v14, %v4544_v14  ;;  %s4429_s24 = smov 93   ;;  %s6520_s18 = smov 79  }
  0x17   : > { %s4434_s19 = smov 125  }
  0x18   : > { %569 = vrot.lane.b32.xlu0 %v398_v8, %s4380_s27  ;;  %687 = vrot.lane.b32.xlu1 %v398_v8, %s4381_s28  ;;  %s4430_s27 = smov 92   ;;  %s4431_s28 = smov 91  }
  0x1c   : > { %628 = vrot.lane.b32.xlu0 %v398_v8, %s4382_s29  ;;  %805 = vrot.lane.b32.xlu1 %v398_v8, %s4383_s30  ;;  %s4432_s29 = smov 80  }
  0x20   : > { %960 = vrot.lane.b32.xlu1 %v4541_v13, %s4378_s25  ;;  %746 = vrot.lane.b32.xlu0 %v398_v8, %s4384_s11 }
  0x24   : > { %964 = vrot.lane.b32.xlu1 %v4544_v14, %s4378_s25  ;;  %962 = vrot.lane.b32.xlu0 %v4551_v15, %s4378_s25 }
  0x28   : > { %864 = vrot.lane.b32.xlu0 %v398_v8, %s4386_s12  ;;  %966 = vrot.lane.b32.xlu1 %v959_v16, %s4378_s25  ;;  %v1083_v8 = vsel %vm405_vm1, %v4544_v14, 0 }
  0x2c   : > { %1177 = vrot.lane.b32.xlu0 %v4541_v13, %s4379_s26  ;;  %1179 = vrot.lane.b32.xlu1 %v4551_v15, %s4379_s26 }
  0x30   : > { %1181 = vrot.lane.b32.xlu0 %v4544_v14, %s4379_s26  ;;  %1299 = vrot.lane.b32.xlu1 %v4541_v13, %s4384_s11 }
  0x34   : > { %1303 = vrot.lane.b32.xlu1 %v4544_v14, %s4384_s11  ;;  %1301 = vrot.lane.b32.xlu0 %v4551_v15, %s4384_s11 }
  0x38   : > { %1421 = vrot.lane.b32.xlu1 %v4541_v13, %s4383_s30  ;;  %1183 = vrot.lane.b32.xlu0 %v959_v16, %s4379_s26 }
  0x3c   : > { %1425 = vrot.lane.b32.xlu1 %v4544_v14, %s4383_s30  ;;  %1423 = vrot.lane.b32.xlu0 %v4551_v15, %s4383_s30 }
  0x40   : > { %1543 = vrot.lane.b32.xlu1 %v4541_v13, %s4386_s12  ;;  %1305 = vrot.lane.b32.xlu0 %v959_v16, %s4384_s11 }
  0x44   : > { %1547 = vrot.lane.b32.xlu1 %v4544_v14, %s4386_s12  ;;  %1545 = vrot.lane.b32.xlu0 %v4551_v15, %s4386_s12 }
  0x48   : > { %1665 = vrot.lane.b32.xlu1 %v4541_v13, %s4387_s15  ;;  %1427 = vrot.lane.b32.xlu0 %v959_v16, %s4383_s30 }
  0x4c   : > { %1669 = vrot.lane.b32.xlu1 %v4544_v14, %s4387_s15  ;;  %1667 = vrot.lane.b32.xlu0 %v4551_v15, %s4387_s15 }
  0x50   : > { %1787 = vrot.lane.b32.xlu1 %v4541_v13, %s6550_s16  ;;  %1549 = vrot.lane.b32.xlu0 %v959_v16, %s4386_s12 }
  0x54   : > { %1791 = vrot.lane.b32.xlu1 %v4544_v14, %s6550_s16  ;;  %1789 = vrot.lane.b32.xlu0 %v4551_v15, %s6550_s16 }
  0x58   : > { %1909 = vrot.lane.b32.xlu1 %v4541_v13, %s6552_s17  ;;  %1671 = vrot.lane.b32.xlu0 %v959_v16, %s4387_s15 }
  0x5c   : > { %1913 = vrot.lane.b32.xlu1 %v4544_v14, %s6552_s17  ;;  %1911 = vrot.lane.b32.xlu0 %v4551_v15, %s6552_s17 }
  0x60   : > { %1793 = vrot.lane.b32.xlu0 %v959_v16, %s6550_s16  ;;  %1915 = vrot.lane.b32.xlu1 %v959_v16, %s6552_s17 }
  0x64   : > { %917 = vperm.xlu0 %4272, %v379_v18   ;;  %922 = vperm.xlu1 %4273, %v380_v20  }
  0x68   : > { %2030 = vperm.xlu0 %4272, %v931_v19  }
  0x86   : > { %v400_v21 = vpop.permute.xlu0 %399  ;;  %v511_v22 = vpop.permute.xlu1 %510 }
  0x87   : > { %v407_v23 = vsel %vm405_vm1, %v400_v21, 0  ;;  %v516_v25 = vsel %vm405_vm1, %v511_v22, 0 }
  0x88   : > { %4056 = vmatpush3.bf16.msra.mxu0 %v407_v23  ;;  %v4360_v23 = vld [vmem:[%s6513_s4 + $0x18] sm:$0xff]  }
  0x89   : > { %4067 = vmatprep.subr.bf16.mxu0 %v6522_v3 }
  0x8a   : > { %v570_v26 = vpop.permute.xlu0 %569  ;;  %v688_v27 = vpop.permute.xlu1 %687 }
  0x8b   : > { %v575_v28 = vsel %vm405_vm1, %v570_v26, 0  ;;  %4058 = vmatmul.mubr.msk.bf16.vlgmr.msra.gmra.mxu0 %vm401_vm2, %v4349_v24  ;;  %v693_v30 = vsel %vm405_vm1, %v688_v27, 0 }
  0x8c   : > { %4074 = vmatpush3.bf16.msra.mxu1 %v575_v28  ;;  %4068 = vmatpush3.bf16.msra.mxu0 %v516_v25 }
  0x8d   : > { %4069 = vmatprep.mubr.msk.bf16.mxu0 %vm6568_vm0, %v6522_v3  ;;  %4085 = vmatprep.subr.bf16.mxu1 %v6522_v3 }
  0x8e   : > { %v629_v31 = vpop.permute.xlu0 %628  ;;  %4079 = vmatprep.subr.bf16.mxu0 %v6522_v3  ;;  %v806_v32 = vpop.permute.xlu1 %805 }
  0x8f   : > { %4076 = vmatmul.mubr.msk.bf16.vlgmr.msra.gmra.mxu1 %vm401_vm2, %v4350_v29  ;;  %v634_v34 = vsel %vm405_vm1, %v629_v31, 0  ;;  %v811_v38 = vsel %vm405_vm1, %v806_v32, 0 }
  0x90   : > { %4086 = vmatpush3.bf16.msra.mxu1 %v693_v30  ;;  %4087 = vmatprep.mubr.msk.bf16.mxu1 %vm6568_vm0, %v6522_v3 }
  0x91   : > { %4097 = vmatprep.subr.bf16.mxu1 %v6522_v3 }
  0x92   : > { %v961_v35 = vpop.permute.xlu1 %960  ;;  %v747_v36 = vpop.permute.xlu0 %746 }
  0x93   : > { %4070 = vmatmul.mubr.msk.bf16.vlgmr.msra.gmra.mxu0 %vm401_vm2, %v4351_v33  ;;  %v752_v43 = vsel %vm405_vm1, %v747_v36, 0  ;;  %v4361_v33 = vld [vmem:[%s6513_s4 + $0x20] sm:$0xff]  }
  0x94   : > { %4080 = vmatpush3.bf16.msra.mxu0 %v634_v34  ;;  %4081 = vmatprep.mubr.msk.bf16.mxu0 %vm6568_vm0, %v6522_v3 }
  0x95   : > { %4091 = vmatprep.subr.bf16.mxu0 %v6522_v3 }
  0x96   : > { %v965_v39 = vpop.permute.xlu1 %964  ;;  %v963_v40 = vpop.permute.xlu0 %962 }
  0x97   : > { %4088 = vmatmul.mubr.msk.bf16.vlgmr.msra.gmra.mxu1 %vm401_vm2, %v4352_v37  ;;  %v970_v42 = vsel %vm968_vm3, %v963_v40, %v965_v39  ;;  %v969_v44 = vsel %vm968_vm3, %v961_v35, %v963_v40 }
  0x98   : > { %4098 = vmatpush3.bf16.msra.mxu1 %v811_v38  ;;  %4099 = vmatprep.mubr.msk.bf16.mxu1 %vm6568_vm0, %v6522_v3  ;;  %v976_v48 = vsel %vm405_vm1, %v969_v44, 0 }
  0x99   : > { %3953 = vmatprep.subr.msk.bf16.mxu1 %vm405_vm1, %v970_v42 }
  0x9a   : > { %v865_v45 = vpop.permute.xlu0 %864  ;;  %v967_v46 = vpop.permute.xlu1 %966 }
  0x9b   : > { %4082 = vmatmul.mubr.msk.bf16.vlgmr.msra.gmra.mxu0 %vm401_vm2, %v4353_v41  ;;  %v870_v52 = vsel %vm405_vm1, %v865_v45, 0  ;;  %v971_v57 = vsel %vm968_vm3, %v965_v39, %v967_v46  ;;  %v4362_v41 = vld [vmem:[%s6513_s4 + $0x28] sm:$0xff]  }
  0x9c   : > { %4092 = vmatpush3.bf16.msra.mxu0 %v752_v43  ;;  %4093 = vmatprep.mubr.msk.bf16.mxu0 %vm6568_vm0, %v6522_v3  ;;  %v982_v62 = vsel %vm405_vm1, %v971_v57, 0 }
  0x9d   : > { %4103 = vmatprep.subr.bf16.mxu0 %v6522_v3 }
  0x9e   : > { %v1178_v49 = vpop.permute.xlu0 %1177  ;;  %v1180_v50 = vpop.permute.xlu1 %1179 }
  0x9f   : > { %4100 = vmatmul.mubr.msk.bf16.vlgmr.msra.gmra.mxu1 %vm401_vm2, %v4354_v47  ;;  %v1186_v63 = vsel %vm1185_vm4, %v1178_v49, %v1180_v50  ;;  %v4363_v49 = vld [vmem:[%s6513_s4 + $0x30] sm:$0xff]  }
  0xa0   : > { %999 = vmatpush1.bf16.msra.mxu1 %v976_v48  ;;  %1016 = vmatprep.mubr.bf16.mxu1 %v4385_v17  ;;  %v1193_v4 = vsel %vm405_vm1, %v1186_v63, 0 }
  0xa1   : > { %3957 = vmatprep.subr.msk.bf16.mxu1 %vm405_vm1, %v4551_v15 }
  0xa2   : > { %v1182_v53 = vpop.permute.xlu0 %1181  ;;  %v1300_v54 = vpop.permute.xlu1 %1299 }
  0xa3   : > { %4094 = vmatmul.mubr.msk.bf16.vlgmr.msra.gmra.mxu0 %vm401_vm2, %v4355_v51  ;;  %v1187_v58 = vsel %vm1185_vm4, %v1180_v50, %v1182_v53 }
  0xa4   : > { %4104 = vmatpush3.bf16.msra.mxu0 %v870_v52  ;;  %4105 = vmatprep.mubr.msk.bf16.mxu0 %vm6568_vm0, %v6522_v3 }
  0xa5   : > { %4109 = vmatprep.subr.bf16.mxu0 %v6522_v3 }
  0xa6   : > { %v1304_v59 = vpop.permute.xlu1 %1303  ;;  %v1302_v60 = vpop.permute.xlu0 %1301 }
  0xa7   : > { %3954 = vmatmul.mubr.msk.bf16.vlgmr.msra.gmra.mxu1 %vm401_vm2, %v4356_v55  ;;  %v1309_v5 = vsel %vm1307_vm5, %v1302_v60, %v1304_v59  ;;  %v1308_v9 = vsel %vm1307_vm5, %v1300_v54, %v1302_v60  ;;  %v4364_v60 = vld [vmem:[%s6513_s4 + $0x38] sm:$0xff]  }
  0xa8   : > { %1100 = vmatpush1.bf16.msra.mxu1 %v1077_v56  ;;  %1117 = vmatprep.mubr.bf16.mxu1 %v4385_v17  ;;  %v1315_v13 = vsel %vm405_vm1, %v1308_v9, 0 }
  0xa9   : > { %3963 = vmatprep.subr.msk.bf16.mxu1 %vm405_vm1, %v1187_v58 }
  0xaa   : > { %v1422_v0 = vpop.permute.xlu1 %1421  ;;  %v1184_v1 = vpop.permute.xlu0 %1183 }
  0xab   : > { %4106 = vmatmul.mubr.msk.bf16.vlgmr.msra.gmra.mxu0 %vm401_vm2, %v4357_v61  ;;  %v1188_v14 = vsel %vm1185_vm4, %v1182_v53, %v1184_v1 }
  0xac   : > { %4110 = vmatpush3.bf16.msra.mxu0 %v982_v62  ;;  %4111 = vmatprep.mubr.msk.bf16.mxu0 %vm6568_vm0, %v6522_v3  ;;  %v1199_v19 = vsel %vm405_vm1, %v1188_v14, 0 }
  0xad   : > { %4115 = vmatprep.subr.bf16.mxu0 %v6522_v3 }
  0xae   : > { %v1426_v6 = vpop.permute.xlu1 %1425  ;;  %v1424_v7 = vpop.permute.xlu0 %1423 }
  0xaf   : > { %3958 = vmatmul.mubr.msk.bf16.vlgmr.msra.gmra.mxu1 %vm401_vm2, %v4358_v2  ;;  %v1431_v15 = vsel %vm1429_vm6, %v1424_v7, %v1426_v6  ;;  %v1430_v20 = vsel %vm1429_vm6, %v1422_v0, %v1424_v7 }
  0xb0   : > { %1216 = vmatpush1.bf16.msra.mxu1 %v1193_v4  ;;  %1233 = vmatprep.mubr.bf16.mxu1 %v4385_v17  ;;  %v1437_v24 = vsel %vm405_vm1, %v1430_v20, 0 }
  0xb1   : > { %3969 = vmatprep.subr.msk.bf16.mxu1 %vm405_vm1, %v1309_v5  ;;  %v930_v5 = vld [vmem:[%s6514_s5] sm:$0xff] }
  0xb2   : > { %v1544_v10 = vpop.permute.xlu1 %1543  ;;  %v1306_v11 = vpop.permute.xlu0 %1305  ;;  %2025 = vperm.xlu1 %4273, %v930_v5  }
  0xb3   : > { %4112 = vmatmul.mubr.msk.bf16.vlgmr.msra.gmra.mxu0 %vm401_vm2, %v4356_v55  ;;  %v1310_v25 = vsel %vm1307_vm5, %v1304_v59, %v1306_v11 }
  0xb4   : > { %4116 = vmatpush3.bf16.msra.mxu0 %v1083_v8  ;;  %4117 = vmatprep.mubr.msk.bf16.mxu0 %vm6568_vm0, %v6522_v3  ;;  %v1321_v29 = vsel %vm405_vm1, %v1310_v25, 0  ;;  %v4390_v8 = vmov 2  }
  0xb5   : > { %4121 = vmatprep.subr.bf16.mxu0 %v6522_v3  ;;  %4275 = vset.pattern.permute.xlu0 %v4390_v8 }
  0xb6   : > { %v1548_v16 = vpop.permute.xlu1 %1547  ;;  %v1546_v18 = vpop.permute.xlu0 %1545 }
  0xb7   : > { %3964 = vmatmul.mubr.msk.bf16.vlgmr.msra.gmra.mxu1 %vm401_vm2, %v4359_v12  ;;  %v1553_v26 = vsel %vm1551_vm7, %v1546_v18, %v1548_v16  ;;  %v1552_v30 = vsel %vm1551_vm7, %v1544_v10, %v1546_v18 }
  0xb8   : > { %1338 = vmatpush1.bf16.msra.mxu1 %v1315_v13  ;;  %1355 = vmatprep.mubr.bf16.mxu1 %v4385_v17  ;;  %v1559_v34 = vsel %vm405_vm1, %v1552_v30, 0 }
  0xb9   : > { %3975 = vmatprep.subr.msk.bf16.mxu1 %vm405_vm1, %v1431_v15 }
  0xba   : > { %v1666_v21 = vpop.permute.xlu1 %1665  ;;  %v1428_v22 = vpop.permute.xlu0 %1427 }
  0xbb   : > { %4118 = vmatmul.mubr.msk.bf16.vlgmr.msra.gmra.mxu0 %vm401_vm2, %v4358_v2  ;;  %v1432_v35 = vsel %vm1429_vm6, %v1426_v6, %v1428_v22  ;;  %v4365_v2 = vld [vmem:[%s6513_s4 + $0x40] sm:$0xff]  }
  0xbc   : > { %4122 = vmatpush3.bf16.msra.mxu0 %v1199_v19  ;;  %4123 = vmatprep.mubr.msk.bf16.mxu0 %vm6568_vm0, %v6522_v3  ;;  %v1443_v39 = vsel %vm405_vm1, %v1432_v35, 0 }
  0xbd   : > { %4127 = vmatprep.subr.bf16.mxu0 %v6522_v3 }
  0xbe   : > { %v1670_v27 = vpop.permute.xlu1 %1669  ;;  %v1668_v28 = vpop.permute.xlu0 %1667 }
  0xbf   : > { %3970 = vmatmul.mubr.msk.bf16.vlgmr.msra.gmra.mxu1 %vm401_vm2, %v4360_v23  ;;  %v1675_v36 = vsel %vm1673_vm8, %v1668_v28, %v1670_v27  ;;  %v1674_v40 = vsel %vm1673_vm8, %v1666_v21, %v1668_v28 }
  0xc0   : > { %1460 = vmatpush1.bf16.msra.mxu1 %v1437_v24  ;;  %1477 = vmatprep.mubr.bf16.mxu1 %v4385_v17  ;;  %v1681_v42 = vsel %vm405_vm1, %v1674_v40, 0 }
  0xc1   : > { %3981 = vmatprep.subr.msk.bf16.mxu1 %vm405_vm1, %v1553_v26 }
  0xc2   : > { %v1788_v31 = vpop.permute.xlu1 %1787  ;;  %v1550_v32 = vpop.permute.xlu0 %1549 }
  0xc3   : > { %4124 = vmatmul.mubr.msk.bf16.vlgmr.msra.gmra.mxu0 %vm401_vm2, %v4359_v12  ;;  %v1554_v45 = vsel %vm1551_vm7, %v1548_v16, %v1550_v32 }
  0xc4   : > { %4128 = vmatpush3.bf16.msra.mxu0 %v1321_v29  ;;  %4129 = vmatprep.mubr.msk.bf16.mxu0 %vm6568_vm0, %v6522_v3  ;;  %v1565_v47 = vsel %vm405_vm1, %v1554_v45, 0 }
  0xc5   : > { %4133 = vmatprep.subr.bf16.mxu0 %v6522_v3 }
  0xc6   : > { %v1792_v37 = vpop.permute.xlu1 %1791  ;;  %v1790_v38 = vpop.permute.xlu0 %1789 }
  0xc7   : > { %3976 = vmatmul.mubr.msk.bf16.vlgmr.msra.gmra.mxu1 %vm401_vm2, %v4361_v33  ;;  %v1797_v46 = vsel %vm1795_vm9, %v1790_v38, %v1792_v37  ;;  %v1796_v48 = vsel %vm1795_vm9, %v1788_v31, %v1790_v38 }
  0xc8   : > { %1582 = vmatpush1.bf16.msra.mxu1 %v1559_v34  ;;  %1599 = vmatprep.mubr.bf16.mxu1 %v4385_v17  ;;  %v1803_v52 = vsel %vm405_vm1, %v1796_v48, 0 }
  0xc9   : > { %3987 = vmatprep.subr.msk.bf16.mxu1 %vm405_vm1, %v1675_v36 }
  0xca   : > { %v1910_v43 = vpop.permute.xlu1 %1909  ;;  %v1672_v44 = vpop.permute.xlu0 %1671 }
  0xcb   : > { %4130 = vmatmul.mubr.msk.bf16.vlgmr.msra.gmra.mxu0 %vm401_vm2, %v4360_v23  ;;  %v1676_v53 = vsel %vm1673_vm8, %v1670_v27, %v1672_v44 }
  0xcc   : > { %4134 = vmatpush3.bf16.msra.mxu0 %v1443_v39  ;;  %4135 = vmatprep.mubr.msk.bf16.mxu0 %vm6568_vm0, %v6522_v3  ;;  %v1687_v57 = vsel %vm405_vm1, %v1676_v53, 0 }
  0xcd   : > { %4139 = vmatprep.subr.bf16.mxu0 %v6522_v3 }
  0xce   : > { %v1914_v50 = vpop.permute.xlu1 %1913  ;;  %v1912_v51 = vpop.permute.xlu0 %1911 }
  0xcf   : > { %3982 = vmatmul.mubr.msk.bf16.vlgmr.msra.gmra.mxu1 %vm401_vm2, %v4362_v41  ;;  %v1919_v54 = vsel %vm6570_vm10, %v1912_v51, %v1914_v50  ;;  %v1918_v58 = vsel %vm6570_vm10, %v1910_v43, %v1912_v51 }
  0xd0   : > { %1704 = vmatpush1.bf16.msra.mxu1 %v1681_v42  ;;  %1721 = vmatprep.mubr.bf16.mxu1 %v4385_v17  ;;  %v1925_v63 = vsel %vm405_vm1, %v1918_v58, 0 }
  0xd1   : > { %3993 = vmatprep.subr.msk.bf16.mxu1 %vm405_vm1, %v1797_v46 }
  0xd2   : > { %v1794_v61 = vpop.permute.xlu0 %1793  ;;  %v1916_v4 = vpop.permute.xlu1 %1915 }
  0xd3   : > { %4136 = vmatmul.mubr.msk.bf16.vlgmr.msra.gmra.mxu0 %vm401_vm2, %v4361_v33  ;;  %v1798_v0 = vsel %vm1795_vm9, %v1792_v37, %v1794_v61  ;;  %v1920_v6 = vsel %vm6570_vm10, %v1914_v50, %v1916_v4 }
  0xd4   : > { %4140 = vmatpush3.bf16.msra.mxu0 %v1565_v47  ;;  %4141 = vmatprep.mubr.msk.bf16.mxu0 %vm6568_vm0, %v6522_v3  ;;  %v1809_v1 = vsel %vm405_vm1, %v1798_v0, 0  ;;  %v1931_v7 = vsel %vm405_vm1, %v1920_v6, 0 }
  0xd5   : > { %4145 = vmatprep.subr.bf16.mxu0 %v6522_v3  ;;  %v495_v55 = vpop.f32.mrf.mxu1 }
  0xd7   : > { %3988 = vmatmul.mubr.msk.bf16.vlgmr.msra.gmra.mxu1 %vm401_vm2, %v4363_v49  ;;  %v4065_v56 = vpop.f32.mrf.mxu1 }
  0xd8   : > { %1826 = vmatpush1.bf16.msra.mxu1 %v1803_v52  ;;  %1843 = vmatprep.mubr.bf16.mxu1 %v4385_v17 }
  0xd9   : > { %3999 = vmatprep.subr.msk.bf16.mxu1 %vm405_vm1, %v1919_v54  ;;  %v498_v59 = vpop.f32.mrf.mxu1  ;;  %vm2397_vm1 = vcmask 875520  }
  0xdb   : > { %4142 = vmatmul.mubr.msk.bf16.vlgmr.msra.gmra.mxu0 %vm401_vm2, %v4362_v41  ;;  %v4066_v62 = vpop.f32.mrf.mxu1 }
  0xdc   : > { %4146 = vmatpush3.bf16.msra.mxu0 %v1687_v57  ;;  %4147 = vmatprep.mubr.msk.bf16.mxu0 %vm6568_vm0, %v6522_v3 }
  0xdd   : > { %4151 = vmatprep.subr.bf16.mxu0 %v6522_v3 }
  0xdf   : > { %3994 = vmatmul.mubr.msk.bf16.vlgmr.msra.gmra.mxu1 %vm401_vm2, %v4364_v60  ;;  %v918_v56 = vpop.permute.xlu0 %917 }
  0xe0   : > { %1948 = vmatpush1.bf16.msra.mxu1 %v1925_v63  ;;  %1965 = vmatprep.mubr.bf16.mxu1 %v4385_v17 }
  0xe1   : > { %4163 = vmatprep.subr.bf16.mxu1 %v6522_v3 }
  0xe3   : > { %4148 = vmatmul.mubr.msk.bf16.vlgmr.msra.gmra.mxu0 %vm401_vm2, %v4363_v49 }
  0xe4   : > { %4152 = vmatpush3.bf16.msra.mxu0 %v1809_v1  ;;  %4153 = vmatprep.mubr.msk.bf16.mxu0 %vm6568_vm0, %v6522_v3 }
  0xe5   : > { %4157 = vmatprep.subr.bf16.mxu0 %v6522_v3 }
  0xe7   : > { %4000 = vmatmul.mubr.msk.bf16.vlgmr.msra.gmra.mxu1 %vm401_vm2, %v4365_v2 }
  0xe8   : > { %4165 = vmatprep.mubr.msk.bf16.mxu1 %vm6568_vm0, %v6522_v3 }
  0xeb   : > { %4154 = vmatmul.mubr.msk.bf16.vlgmr.msra.gmra.mxu0 %vm401_vm2, %v4364_v60 }
  0xec   : > { %4158 = vmatpush3.bf16.msra.mxu0 %v1931_v7  ;;  %4159 = vmatprep.mubr.msk.bf16.mxu0 %vm6568_vm0, %v6522_v3 }
  0xed   : > { %4169 = vmatprep.subr.bf16.mxu0 %v6522_v3 }
  0xf3   : > { %4160 = vmatmul.mubr.msk.bf16.vlgmr.msra.gmra.mxu0 %vm401_vm2, %v4365_v2  ;;  %vm6571_vm2 = vcmask 760832  }
  0xf4   : > { %4171 = vmatprep.mubr.msk.bf16.mxu0 %vm6568_vm0, %v6522_v3  ;;  %vm6572_vm0 = vcmask 752640  }
 0x14b   : > { %v443_v9 = vpop.f32.mrf.mxu0 }
 0x14c   : > { %v496_v23 = vadd.f32 %v495_v55, %v443_v9 }
 0x14d   : > { %v4059_v10 = vpop.f32.mrf.mxu0 }
 0x14f   : > { %v446_v11 = vpop.f32.mrf.mxu0  ;;  %v611_v12 = vpop.f32.mrf.mxu1 }
 0x150   : > { %v499_v20 = vadd.f32 %v498_v59, %v446_v11  ;;  %v4391_v11 = vmov 4  }
 0x151   : > { %v4060_v13 = vpop.f32.mrf.mxu0  ;;  %v4077_v14 = vpop.f32.mrf.mxu1 }
 0x153   : > { %v552_v15 = vpop.f32.mrf.mxu0  ;;  %v614_v16 = vpop.f32.mrf.mxu1 }
 0x154   : > { %v559_v27 = vadd.f32 %v552_v15, %v496_v23 }
 0x155   : > { %v4071_v18 = vpop.f32.mrf.mxu0  ;;  %v4078_v19 = vpop.f32.mrf.mxu1 }
 0x156   : > { %v618_v33 = vadd.f32 %v611_v12, %v559_v27  ;;  %v4392_v12 = vmov 1  }
 0x157   : > { %v555_v21 = vpop.f32.mrf.mxu0  ;;  %v729_v22 = vpop.f32.mrf.mxu1 }
 0x158   : > { %v560_v24 = vadd.f32 %v555_v21, %v499_v20  ;;  %v4393_v21 = vmov 8  }
 0x159   : > { %v4072_v25 = vpop.f32.mrf.mxu0  ;;  %v4089_v26 = vpop.f32.mrf.mxu1 }
 0x15a   : > { %v619_v28 = vadd.f32 %v614_v16, %v560_v24 }
 0x15b   : > { %v670_v29 = vpop.f32.mrf.mxu0  ;;  %v732_v30 = vpop.f32.mrf.mxu1 }
 0x15c   : > { %v677_v36 = vadd.f32 %v670_v29, %v618_v33  ;;  %v4396_v33 = vmov 5  }
 0x15d   : > { %v4083_v31 = vpop.f32.mrf.mxu0  ;;  %v4090_v32 = vpop.f32.mrf.mxu1 }
 0x15e   : > { %v736_v43 = vadd.f32 %v729_v22, %v677_v36  ;;  %v4394_v22 = vmov 3   ;;  %v4395_v32 = vmov 10  }
 0x15f   : > { %v673_v34 = vpop.f32.mrf.mxu0  ;;  %v847_v35 = vpop.f32.mrf.mxu1 }
 0x160   : > { %v678_v37 = vadd.f32 %v673_v34, %v619_v28 }
 0x161   : > { %v4084_v38 = vpop.f32.mrf.mxu0  ;;  %v4101_v39 = vpop.f32.mrf.mxu1 }
 0x162   : > { %v737_v40 = vadd.f32 %v732_v30, %v678_v37 }
 0x163   : > { %v788_v41 = vpop.f32.mrf.mxu0  ;;  %v850_v42 = vpop.f32.mrf.mxu1 }
 0x164   : > { %v795_v46 = vadd.f32 %v788_v41, %v736_v43  ;;  %v4398_v43 = vmov 9  }
 0x165   : > { %v4095_v44 = vpop.f32.mrf.mxu0  ;;  %v4102_v45 = vpop.f32.mrf.mxu1 }
 0x166   : > { %v854_v52 = vadd.f32 %v847_v35, %v795_v46 }
 0x167   : > { %v791_v47 = vpop.f32.mrf.mxu0  ;;  %v1018_v48 = vpop.f32.mrf.mxu1 }
 0x168   : > { %v796_v49 = vadd.f32 %v791_v47, %v737_v40 }
 0x169   : > { %v4096_v50 = vpop.f32.mrf.mxu0  ;;  %v4824_v51 = vpop.f32.mrf.mxu1 }
 0x16a   : > { %v4826_v53 = vadd.f32 %v850_v42, %v796_v49  ;;  %v4397_v42 = vmov 13  }
 0x16b   : > { %v906_v54 = vpop.f32.mrf.mxu0  ;;  %v1022_v55 = vpop.f32.mrf.mxu1 }
 0x16c   : > { %v913_v57 = vadd.f32 %v906_v54, %v854_v52  ;;  %v4399_v52 = vmov 18   ;;  %v4400_v54 = vmov 11  }
 0x16d   : > { %v4107_v58 = vpop.f32.mrf.mxu0  ;;  %v1024_v59 = vpop.f32.mrf.mxu1 }
 0x16e   : > { %v925_v60 = vadd.f32 %v918_v56, %v913_v57 }
 0x16f   : > { %v4828_v61 = vpop.f32.mrf.mxu0  ;;  %v1119_v62 = vpop.f32.mrf.mxu1 }
 0x170   : > { %v4830_v63 = vmax.f32 %v925_v60, 0.0  ;;  %v1120_v0 = vadd.f32 %v1119_v62, %v1018_v48 }
 0x171   : > { %v4108_v1 = vpop.f32.mrf.mxu0  ;;  %v4832_v2 = vpop.f32.mrf.mxu1 }
 0x172   : > { %2095 = vperm.xlu0 %4275, %v4830_v63   ;;  %2053 = vperm.xlu1 %4273, %v4830_v63  }
 0x173   : > { %v1061_v4 = vpop.f32.mrf.mxu0  ;;  %v1123_v5 = vpop.f32.mrf.mxu1 }
 0x174   : > { %v1124_v6 = vadd.f32 %v1123_v5, %v1022_v55  ;;  %v4402_v5 = vmov 12  }
 0x175   : > { %v4113_v7 = vpop.f32.mrf.mxu0  ;;  %v1125_v9 = vpop.f32.mrf.mxu1 }
 0x176   : > { %v1126_v10 = vadd.f32 %v1125_v9, %v1024_v59  ;;  %4277 = vset.pattern.permute.xlu0 %v4391_v11  ;;  %4274 = vset.pattern.permute.xlu1 %v4392_v12 }
 0x177   : > { %v1064_v13 = vpop.f32.mrf.mxu0  ;;  %v1235_v14 = vpop.f32.mrf.mxu1  ;;  %2157 = vperm.xlu0 %4277, %v4830_v63   ;;  %2064 = vperm.xlu1 %4274, %v4830_v63  }
 0x178   : > { %v1285_v15 = vadd.f32 %v1235_v14, %v1120_v0 }
 0x179   : > { %v4114_v16 = vpop.f32.mrf.mxu0  ;;  %v4840_v18 = vpop.f32.mrf.mxu1 }
 0x17b   : > { %v1162_v19 = vpop.f32.mrf.mxu0  ;;  %v1239_v20 = vpop.f32.mrf.mxu1  ;;  %4279 = vset.pattern.permute.xlu0 %v4393_v21  ;;  %4276 = vset.pattern.permute.xlu1 %v4394_v22 }
 0x17c   : > { %v1163_v23 = vadd.f32 %v1162_v19, %v1061_v4  ;;  %v1288_v24 = vadd.f32 %v1239_v20, %v1124_v6  ;;  %2219 = vperm.xlu0 %4279, %v4830_v63   ;;  %2126 = vperm.xlu1 %4276, %v4830_v63   ;;  %v4401_v4 = vmov 21   ;;  %v4403_v19 = vmov 26  }
 0x17d   : > { %v4119_v25 = vpop.f32.mrf.mxu0  ;;  %v1241_v26 = vpop.f32.mrf.mxu1  ;;  %v4404_v20 = vmov 16  }
 0x17e   : > { %v1289_v27 = vadd.f32 %v1241_v26, %v1126_v10 }
 0x17f   : > { %v1165_v28 = vpop.f32.mrf.mxu0  ;;  %v1357_v29 = vpop.f32.mrf.mxu1 }
 0x180   : > { %v1166_v30 = vadd.f32 %v1165_v28, %v1064_v13  ;;  %v1407_v31 = vadd.f32 %v1357_v29, %v1285_v15  ;;  %4281 = vset.pattern.permute.xlu0 %v4395_v32  ;;  %4278 = vset.pattern.permute.xlu1 %v4396_v33 }
 0x181   : > { %v4120_v34 = vpop.f32.mrf.mxu0  ;;  %v4848_v35 = vpop.f32.mrf.mxu1  ;;  %2281 = vperm.xlu0 %4281, %v4830_v63   ;;  %2188 = vperm.xlu1 %4278, %v4830_v63  }
 0x182   : > { %v4405_v34 = vmov 29  }
 0x183   : > { %v1278_v36 = vpop.f32.mrf.mxu0  ;;  %v1361_v37 = vpop.f32.mrf.mxu1 }
 0x184   : > { %v1287_v38 = vadd.f32 %v1278_v36, %v1163_v23  ;;  %v1410_v39 = vadd.f32 %v1361_v37, %v1288_v24  ;;  %v4406_v36 = vmov 17  }
 0x185   : > { %v4125_v40 = vpop.f32.mrf.mxu0  ;;  %v1363_v41 = vpop.f32.mrf.mxu1  ;;  %4284 = vset.pattern.permute.xlu0 %v4397_v42  ;;  %4280 = vset.pattern.permute.xlu1 %v4398_v43 }
 0x186   : > { %v1411_v44 = vadd.f32 %v1363_v41, %v1289_v27  ;;  %2374 = vperm.xlu0 %4284, %v4830_v63   ;;  %2250 = vperm.xlu1 %4280, %v4830_v63  }
 0x187   : > { %v1281_v45 = vpop.f32.mrf.mxu0  ;;  %v1479_v46 = vpop.f32.mrf.mxu1 }
 0x188   : > { %v1290_v47 = vadd.f32 %v1281_v45, %v1166_v30  ;;  %v1529_v48 = vadd.f32 %v1479_v46, %v1407_v31  ;;  %v4407_v46 = vmov 34  }
 0x189   : > { %v4126_v49 = vpop.f32.mrf.mxu0  ;;  %v4856_v50 = vpop.f32.mrf.mxu1 }
 0x18a   : > { %4287 = vset.pattern.permute.xlu0 %v4399_v52  ;;  %4282 = vset.pattern.permute.xlu1 %v4400_v54 }
 0x18b   : > { %v1400_v55 = vpop.f32.mrf.mxu0  ;;  %v1483_v56 = vpop.f32.mrf.mxu1  ;;  %2467 = vperm.xlu0 %4287, %v4830_v63   ;;  %2312 = vperm.xlu1 %4282, %v4830_v63  }
 0x18c   : > { %v1409_v57 = vadd.f32 %v1400_v55, %v1287_v38  ;;  %v1532_v58 = vadd.f32 %v1483_v56, %v1410_v39 }
 0x18d   : > { %v4131_v59 = vpop.f32.mrf.mxu0  ;;  %v1485_v60 = vpop.f32.mrf.mxu1 }
 0x18e   : > { %v1533_v62 = vadd.f32 %v1485_v60, %v1411_v44 }
 0x18f   : > { %v1403_v0 = vpop.f32.mrf.mxu0  ;;  %v1601_v1 = vpop.f32.mrf.mxu1  ;;  %4290 = vset.pattern.permute.xlu0 %v4401_v4  ;;  %4283 = vset.pattern.permute.xlu1 %v4402_v5 }
 0x190   : > { %v1412_v6 = vadd.f32 %v1403_v0, %v1290_v47  ;;  %v1651_v7 = vadd.f32 %v1601_v1, %v1529_v48  ;;  %2560 = vperm.xlu0 %4290, %v4830_v63   ;;  %2343 = vperm.xlu1 %4283, %v4830_v63   ;;  %v4408_v47 = vmov 19   ;;  %v4410_v0 = vmov 20  }
 0x191   : > { %v4132_v9 = vpop.f32.mrf.mxu0  ;;  %v4866_v10 = vpop.f32.mrf.mxu1 }
 0x193   : > { %v1522_v13 = vpop.f32.mrf.mxu0  ;;  %v1605_v14 = vpop.f32.mrf.mxu1 }
 0x194   : > { %v1531_v15 = vadd.f32 %v1522_v13, %v1409_v57  ;;  %v1654_v16 = vadd.f32 %v1605_v14, %v1532_v58  ;;  %4293 = vset.pattern.permute.xlu0 %v4403_v19  ;;  %4285 = vset.pattern.permute.xlu1 %v4404_v20 }
 0x195   : > { %v4137_v23 = vpop.f32.mrf.mxu0  ;;  %v1607_v24 = vpop.f32.mrf.mxu1  ;;  %2653 = vperm.xlu0 %4293, %v4830_v63   ;;  %2405 = vperm.xlu1 %4285, %v4830_v63  }
 0x196   : > { %v1655_v25 = vadd.f32 %v1607_v24, %v1533_v62  ;;  %v4409_v62 = vmov 37   ;;  %v4411_v24 = vmov 42  }
 0x197   : > { %v1525_v26 = vpop.f32.mrf.mxu0  ;;  %v1723_v27 = vpop.f32.mrf.mxu1 }
 0x198   : > { %v1534_v28 = vadd.f32 %v1525_v26, %v1412_v6  ;;  %v1773_v29 = vadd.f32 %v1723_v27, %v1651_v7  ;;  %v914_v26 = vadd.f32 %v4828_v61, %v4826_v53 }
 0x199   : > { %v4138_v30 = vpop.f32.mrf.mxu0  ;;  %v4872_v31 = vpop.f32.mrf.mxu1  ;;  %4296 = vset.pattern.permute.xlu0 %v4405_v34  ;;  %4286 = vset.pattern.permute.xlu1 %v4406_v36 }
 0x19a   : > { %2746 = vperm.xlu0 %4296, %v4830_v63   ;;  %2436 = vperm.xlu1 %4286, %v4830_v63  }
 0x19b   : > { %v1644_v37 = vpop.f32.mrf.mxu0  ;;  %v1727_v38 = vpop.f32.mrf.mxu1 }
 0x19c   : > { %v1653_v39 = vadd.f32 %v1644_v37, %v1531_v15  ;;  %v1776_v40 = vadd.f32 %v1727_v38, %v1654_v16 }
 0x19d   : > { %v4143_v41 = vpop.f32.mrf.mxu0  ;;  %v1729_v44 = vpop.f32.mrf.mxu1 }
 0x19e   : > { %v1777_v45 = vadd.f32 %v1729_v44, %v1655_v25  ;;  %4299 = vset.pattern.permute.xlu0 %v4407_v46  ;;  %4288 = vset.pattern.permute.xlu1 %v4408_v47  ;;  %v4412_v25 = vmov 24  }
 0x19f   : > { %v1647_v48 = vpop.f32.mrf.mxu0  ;;  %v1845_v49 = vpop.f32.mrf.mxu1  ;;  %2839 = vperm.xlu0 %4299, %v4830_v63   ;;  %2498 = vperm.xlu1 %4288, %v4830_v63  }
 0x1a0   : > { %v1656_v55 = vadd.f32 %v1647_v48, %v1534_v28  ;;  %v1895_v56 = vadd.f32 %v1845_v49, %v1773_v29  ;;  %v923_v28 = vpop.permute.xlu1 %922 }
 0x1a1   : > { %v4144_v57 = vpop.f32.mrf.mxu0  ;;  %v4882_v58 = vpop.f32.mrf.mxu1  ;;  %v926_v37 = vadd.f32 %v923_v28, %v914_v26 }
 0x1a2   : > { %v4416_v57 = vmov 28  }
 0x1a3   : > { %v1766_v59 = vpop.f32.mrf.mxu0  ;;  %v1849_v60 = vpop.f32.mrf.mxu1  ;;  %4302 = vset.pattern.permute.xlu0 %v4409_v62  ;;  %4289 = vset.pattern.permute.xlu1 %v4410_v0  ;;  %v4904_v41 = vmax.f32 %v926_v37, 0.0 }
 0x1a4   : > { %v1775_v1 = vadd.f32 %v1766_v59, %v1653_v39  ;;  %v4886_v6 = vadd.f32 %v1849_v60, %v1776_v40  ;;  %2932 = vperm.xlu0 %4302, %v4830_v63   ;;  %2529 = vperm.xlu1 %4289, %v4830_v63   ;;  %v4413_v39 = vmov 45   ;;  %v4414_v40 = vmov 25  }
 0x1a5   : > { %v4149_v7 = vpop.f32.mrf.mxu0  ;;  %v1851_v9 = vpop.f32.mrf.mxu1 }
 0x1a6   : > { %v4890_v13 = vadd.f32 %v1851_v9, %v1777_v45  ;;  %v4415_v45 = vmov 27   ;;  %v4419_v7 = vmov 35   ;;  %v4422_v9 = vmov 41  }
 0x1a7   : > { %v1769_v14 = vpop.f32.mrf.mxu0  ;;  %v1967_v15 = vpop.f32.mrf.mxu1 }
 0x1a8   : > { %v1778_v16 = vadd.f32 %v1769_v14, %v1656_v55  ;;  %v4892_v23 = vadd.f32 %v1967_v15, %v1895_v56  ;;  %4305 = vset.pattern.permute.xlu0 %v4411_v24  ;;  %4291 = vset.pattern.permute.xlu1 %v4412_v25  ;;  %v4955_v14 = vpop.permute.xlu0 %2030  ;;  %v4957_v15 = vpop.permute.xlu1 %2025 }
 0x1a9   : > { %v4150_v27 = vpop.f32.mrf.mxu0  ;;  %3025 = vperm.xlu0 %4305, %v4830_v63   ;;  %2591 = vperm.xlu1 %4291, %v4830_v63  }
 0x1ab   : > { %v1888_v29 = vpop.f32.mrf.mxu0 }
 0x1ac   : > { %v1897_v30 = vadd.f32 %v1888_v29, %v1775_v1  ;;  %v4417_v1 = vmov 32  }
 0x1ad   : > { %v4155_v38 = vpop.f32.mrf.mxu0  ;;  %4308 = vset.pattern.permute.xlu0 %v4413_v39  ;;  %4292 = vset.pattern.permute.xlu1 %v4414_v40 }
 0x1ae   : > { %3118 = vperm.xlu0 %4308, %v4830_v63   ;;  %2622 = vperm.xlu1 %4292, %v4830_v63  }
 0x1af   : > { %v1891_v53 = vpop.f32.mrf.mxu0 }
 0x1b0   : > { %v1900_v61 = vadd.f32 %v1891_v53, %v1778_v16 }
 0x1b1   : > { %v4156_v44 = vpop.f32.mrf.mxu0 }
 0x1b2   : > { %4309 = vset.pattern.permute.xlu0 %v4385_v17  ;;  %4294 = vset.pattern.permute.xlu1 %v4415_v45 }
 0x1b3   : > { %v2010_v48 = vpop.f32.mrf.mxu0  ;;  %2058 = vperm.xlu0 %4309, %v4904_v41   ;;  %2684 = vperm.xlu1 %4294, %v4830_v63  }
 0x1b4   : > { %v4909_v49 = vadd.f32 %v2010_v48, %v1897_v30 }
 0x1b5   : > { %v4161_v55 = vpop.f32.mrf.mxu0 }
 0x1b7   : > { %v2013_v56 = vpop.f32.mrf.mxu0  ;;  %4310 = vset.pattern.permute.xlu0 %v4392_v12  ;;  %4295 = vset.pattern.permute.xlu1 %v4416_v57  ;;  %v4418_v12 = vmov 33  }
 0x1b8   : > { %v4913_v59 = vadd.f32 %v2013_v56, %v1900_v61  ;;  %2068 = vperm.xlu0 %4310, %v4904_v41   ;;  %2715 = vperm.xlu1 %4295, %v4830_v63  }
 0x1b9   : > { %v4162_v60 = vpop.f32.mrf.mxu0 }
 0x1bc   : > { %4312 = vset.pattern.permute.xlu0 %v4394_v22  ;;  %4297 = vset.pattern.permute.xlu1 %v4417_v1  ;;  %v4420_v22 = vmov 36  }
 0x1bd   : > { %2130 = vperm.xlu0 %4312, %v4904_v41   ;;  %2777 = vperm.xlu1 %4297, %v4830_v63  }
 0x1c1   : > { %4314 = vset.pattern.permute.xlu0 %v4396_v33  ;;  %4298 = vset.pattern.permute.xlu1 %v4418_v12  ;;  %v1122_v33 = vadd.f32 %v4832_v2, %v4824_v51  ;;  %v4423_v2 = vmov 43  }
 0x1c2   : > { %2192 = vperm.xlu0 %4314, %v4904_v41   ;;  %2808 = vperm.xlu1 %4298, %v4830_v63  }
 0x1c6   : > { %4316 = vset.pattern.permute.xlu0 %v4398_v43  ;;  %4300 = vset.pattern.permute.xlu1 %v4419_v7  ;;  %v4421_v43 = vmov 40  }
 0x1c7   : > { %2254 = vperm.xlu0 %4316, %v4904_v41   ;;  %2870 = vperm.xlu1 %4300, %v4830_v63  }
 0x1cb   : > { %4318 = vset.pattern.permute.xlu0 %v4400_v54  ;;  %4301 = vset.pattern.permute.xlu1 %v4420_v22  ;;  %v1286_v54 = vadd.f32 %v4840_v18, %v1122_v33 }
 0x1cc   : > { %2316 = vperm.xlu0 %4318, %v4904_v41   ;;  %2901 = vperm.xlu1 %4301, %v4830_v63  }
 0x1cd   : > { %v1408_v51 = vadd.f32 %v4848_v35, %v1286_v54 }
 0x1cf   : > { %v1530_v18 = vadd.f32 %v4856_v50, %v1408_v51 }
 0x1d0   : > { %4321 = vset.pattern.permute.xlu0 %v4404_v20  ;;  %4303 = vset.pattern.permute.xlu1 %v4421_v43  ;;  %v4424_v20 = vmov 44  }
 0x1d1   : > { %2409 = vperm.xlu0 %4321, %v4904_v41   ;;  %2963 = vperm.xlu1 %4303, %v4830_v63  }
 0x1d5   : > { %4324 = vset.pattern.permute.xlu0 %v4408_v47  ;;  %4304 = vset.pattern.permute.xlu1 %v4422_v9  ;;  %v1652_v47 = vadd.f32 %v4866_v10, %v1530_v18 }
 0x1d6   : > { %2502 = vperm.xlu0 %4324, %v4904_v41   ;;  %2994 = vperm.xlu1 %4304, %v4830_v63  }
 0x1d7   : > { %v1774_v35 = vadd.f32 %v4872_v31, %v1652_v47 }
 0x1d9   : > { %v1896_v50 = vadd.f32 %v4882_v58, %v1774_v35 }
 0x1da   : > { %4327 = vset.pattern.permute.xlu0 %v4412_v25  ;;  %4306 = vset.pattern.permute.xlu1 %v4423_v2 }
 0x1db   : > { %2595 = vperm.xlu0 %4327, %v4904_v41   ;;  %3056 = vperm.xlu1 %4306, %v4830_v63  }
 0x1df   : > { %4330 = vset.pattern.permute.xlu0 %v4415_v45  ;;  %4307 = vset.pattern.permute.xlu1 %v4424_v20 }
 0x1e0   : > { %2688 = vperm.xlu0 %4330, %v4904_v41   ;;  %3087 = vperm.xlu1 %4307, %v4830_v63   ;;  %v1969_v63 = vpop.f32.mrf.mxu1 }
 0x1e1   : > { %v2018_v10 = vadd.f32 %v1969_v63, %v1896_v50 }
 0x1e2   : > { %v1971_v18 = vpop.f32.mrf.mxu1 }
 0x1e3   : > { %v2034_v58 = vadd.f32 %v4957_v15, %v2018_v10  ;;  %v2020_v50 = vadd.f32 %v1971_v18, %v4886_v6 }
 0x1e4   : > { %4333 = vset.pattern.permute.xlu0 %v4417_v1  ;;  %4311 = vset.pattern.permute.xlu1 %v4390_v8 }
 0x1e5   : > { %2781 = vperm.xlu0 %4333, %v4904_v41   ;;  %2099 = vperm.xlu1 %4311, %v4904_v41   ;;  %v4974_v25 = vmax.f32 %v2034_v58, 0.0  ;;  %v2036_v63 = vadd.f32 %v4955_v14, %v2020_v50 }
 0x1e9   : > { %4336 = vset.pattern.permute.xlu0 %v4419_v7  ;;  %4313 = vset.pattern.permute.xlu1 %v4391_v11 }
 0x1ea   : > { %2874 = vperm.xlu0 %4336, %v4904_v41   ;;  %2161 = vperm.xlu1 %4313, %v4904_v41  }
 0x1ed   : > { %v4962_v8 = vpop.permute.xlu1 %2053  ;;  %v4964_v31 = vpop.permute.xlu0 %2095 }
 0x1ee   : > { %6590 = vst [vmem:[#allocation2_spill] sm:$0xff] %v4962_v8  ;;  %4339 = vset.pattern.permute.xlu0 %v4421_v43  ;;  %4315 = vset.pattern.permute.xlu1 %v4393_v21  ;;  %v2103_v21 = vmul.f32 %v4964_v31, %v4974_v25 }
 0x1ef   : > { %2967 = vperm.xlu0 %4339, %v4904_v41   ;;  %2223 = vperm.xlu1 %4315, %v4904_v41  }
 0x1f2   : > { %v4970_v11 = vpop.permute.xlu1 %2064  ;;  %v4972_v16 = vpop.permute.xlu0 %2157 }
 0x1f3   : > { %4342 = vset.pattern.permute.xlu0 %v4423_v2  ;;  %4317 = vset.pattern.permute.xlu1 %v4395_v32  ;;  %v2165_v32 = vmul.f32 %v4972_v16, %v4974_v25  ;;  %v2072_v18 = vmul.f32 %v4970_v11, %v4974_v25 }
 0x1f4   : > { %3060 = vperm.xlu0 %4342, %v4904_v41   ;;  %2285 = vperm.xlu1 %4317, %v4904_v41  }
 0x1f7   : > { %v4981_v26 = vpop.permute.xlu1 %2126  ;;  %v4983_v27 = vpop.permute.xlu0 %2219 }
 0x1f8   : > { %2112 = vrot.lane.b32.xlu0 %v2103_v21, %s4379_s26  ;;  %4319 = vset.pattern.permute.xlu1 %v4402_v5  ;;  %v2227_v30 = vmul.f32 %v4983_v27, %v4974_v25 }
 0x1f9   : > { %4346 = vset.pattern.permute.xlu0 %v4385_v17  ;;  %2347 = vperm.xlu1 %4319, %v4904_v41  }
 0x1fc   : > { %v4991_v28 = vpop.permute.xlu1 %2188  ;;  %2174 = vrot.lane.b32.xlu0 %v2165_v32, %s4425_s20  ;;  %v4994_v29 = vpop.permute.xlu0 %2281 }
 0x1fd   : > { %4320 = vset.pattern.permute.xlu1 %v4397_v42  ;;  %v2289_v38 = vmul.f32 %v4994_v29, %v4974_v25 }
 0x1fe   : > { %2378 = vperm.xlu1 %4320, %v4904_v41  }
 0x200   : > { %2236 = vrot.lane.b32.xlu0 %v2227_v30, %s4384_s11 }
 0x201   : > { %v5001_v5 = vpop.permute.xlu1 %2250  ;;  %v5003_v37 = vpop.permute.xlu0 %2374 }
 0x202   : > { %4322 = vset.pattern.permute.xlu1 %v4406_v36 }
 0x203   : > { %2440 = vperm.xlu1 %4322, %v4904_v41  }
 0x204   : > { %2298 = vrot.lane.b32.xlu0 %v2289_v38, %s4386_s12 }
 0x206   : > { %v5010_v53 = vpop.permute.xlu1 %2312  ;;  %v5012_v42 = vpop.permute.xlu0 %2467 }
 0x207   : > { %v2320_v61 = vmul.f32 %v5010_v53, %v4974_v25  ;;  %4323 = vset.pattern.permute.xlu1 %v4399_v52  ;;  %v2382_v52 = vmul.f32 %v5003_v37, %v4974_v25  ;;  %v2475_v33 = vmul.f32 %v5012_v42, %v4974_v25 }
 0x208   : > { %2471 = vperm.xlu1 %4323, %v4904_v41  }
 0x209   : > { %2329 = vrot.lane.b32.xlu0 %v2320_v61, %s4426_s21 }
 0x20b   : > { %v5019_v44 = vpop.permute.xlu1 %2343  ;;  %v5021_v36 = vpop.permute.xlu0 %2560 }
 0x20c   : > { %v2351_v45 = vmul.f32 %v5019_v44, %v4974_v25  ;;  %4325 = vset.pattern.permute.xlu1 %v4410_v0 }
 0x20d   : > { %2533 = vperm.xlu1 %4325, %v4904_v41  }
 0x20e   : > { %2360 = vrot.lane.b32.xlu0 %v2351_v45, %s4427_s22 }
 0x210   : > { %v5030_v48 = vpop.permute.xlu1 %2405  ;;  %v5032_v55 = vpop.permute.xlu0 %2653 }
 0x211   : > { %4326 = vset.pattern.permute.xlu1 %v4401_v4  ;;  %v2413_v0 = vmul.f32 %v5030_v48, %v4974_v25 }
 0x212   : > { %2391 = vrot.lane.b32.xlu0 %v2382_v52, %s4428_s23  ;;  %2564 = vperm.xlu1 %4326, %v4904_v41  }
 0x215   : > { %v5039_v56 = vpop.permute.xlu1 %2436  ;;  %v5041_v60 = vpop.permute.xlu0 %2746 }
 0x216   : > { %2422 = vrot.lane.b32.xlu0 %v2413_v0, %s4387_s15  ;;  %4328 = vset.pattern.permute.xlu1 %v4414_v40  ;;  %v2444_v1 = vmul.f32 %v5039_v56, %v4974_v25 }
 0x217   : > { %2626 = vperm.xlu1 %4328, %v4904_v41  }
 0x21a   : > { %v5048_v4 = vpop.permute.xlu1 %2498  ;;  %2453 = vrot.lane.b32.xlu0 %v2444_v1, %s6550_s16  ;;  %v5051_v7 = vpop.permute.xlu0 %2839 }
 0x21b   : > { %4329 = vset.pattern.permute.xlu1 %v4403_v19  ;;  %v2506_v54 = vmul.f32 %v5048_v4, %v4974_v25 }
 0x21c   : > { %2657 = vperm.xlu1 %4329, %v4904_v41  }
 0x21e   : > { %2484 = vrot.lane.b32.xlu0 %v2475_v33, %s6552_s17 }
 0x21f   : > { %v5058_v40 = vpop.permute.xlu1 %2529  ;;  %v5060_v43 = vpop.permute.xlu0 %2932 }
 0x220   : > { %6591 = vst [vmem:[#allocation3_spill] sm:$0xff] %v5060_v43  ;;  %4331 = vset.pattern.permute.xlu1 %v4416_v57  ;;  %v2537_v19 = vmul.f32 %v5058_v40, %v4974_v25  ;;  %v2568_v57 = vmul.f32 %v5021_v36, %v4974_v25 }
 0x221   : > { %2719 = vperm.xlu1 %4331, %v4904_v41  }
 0x222   : > { %2515 = vrot.lane.b32.xlu0 %v2506_v54, %s4429_s24 }
 0x224   : > { %v5069_v51 = vpop.permute.xlu1 %2591  ;;  %v5071_v2 = vpop.permute.xlu0 %3025 }
 0x225   : > { %6592 = vst [vmem:[#allocation4_spill] sm:$0xff] %v5071_v2  ;;  %4332 = vset.pattern.permute.xlu1 %v4405_v34  ;;  %v2599_v34 = vmul.f32 %v5069_v51, %v4974_v25 }
 0x226   : > { %2546 = vrot.lane.b32.xlu0 %v2537_v19, %s4430_s27  ;;  %2750 = vperm.xlu1 %4332, %v4904_v41  }
 0x229   : > { %v5078_v47 = vpop.permute.xlu1 %2622  ;;  %v5080_v35 = vpop.permute.xlu0 %3118 }
 0x22a   : > { %6593 = vst [vmem:[#allocation5_spill] sm:$0xff] %v5080_v35  ;;  %2577 = vrot.lane.b32.xlu0 %v2568_v57, %s4431_s28  ;;  %4334 = vset.pattern.permute.xlu1 %v4418_v12  ;;  %v2630_v6 = vmul.f32 %v5078_v47, %v4974_v25  ;;  %v5098_v12 = vmax.f32 %v2036_v63, 0.0 }
 0x22b   : > { %2812 = vperm.xlu1 %4334, %v4904_v41  }
 0x22e   : > { %v5089_v10 = vpop.permute.xlu1 %2684  ;;  %2608 = vrot.lane.b32.xlu0 %v2599_v34, %s4432_s29  ;;  %v5092_v58 = vpop.permute.xlu0 %2058 }
 0x22f   : > { %6594 = vst [vmem:[#allocation6_spill] sm:$0xff] %v5092_v58  ;;  %4335 = vset.pattern.permute.xlu1 %v4407_v46 }
 0x230   : > { %2843 = vperm.xlu1 %4335, %v4904_v41  }
 0x232   : > { %2639 = vrot.lane.b32.xlu0 %v2630_v6, %s6520_s18  ;;  %s4435_s18 = smov 123  }
 0x233   : > { %v5101_v21 = vpop.permute.xlu1 %2715  ;;  %v5103_v32 = vpop.permute.xlu0 %2068 }
 0x234   : > { %v2073_v30 = vmul.f32 %v5103_v32, %v5098_v12  ;;  %4337 = vset.pattern.permute.xlu1 %v4420_v22 }
 0x235   : > { %2905 = vperm.xlu1 %4337, %v4904_v41  }
 0x236   : > { %2083 = vrot.lane.b32.xlu0 %v2073_v30, %s4378_s25 }
 0x238   : > { %v5110_v46 = vpop.permute.xlu1 %2777  ;;  %v5112_v38 = vpop.permute.xlu0 %2130 }
 0x239   : > { %6595 = vst [vmem:[#allocation7_spill] sm:$0xff] %v5110_v46  ;;  %4338 = vset.pattern.permute.xlu1 %v4409_v62 }
 0x23a   : > { %2936 = vperm.xlu1 %4338, %v4904_v41  }
 0x23d   : > { %v5116_v61 = vpop.permute.xlu1 %2808  ;;  %v5118_v45 = vpop.permute.xlu0 %2192 }
 0x23e   : > { %4340 = vset.pattern.permute.xlu1 %v4422_v9  ;;  %v2033_v9 = vadd.f32 %v4957_v15, %v4892_v23  ;;  %v1973_v23 = vpop.f32.mrf.mxu1 }
 0x23f   : > { %2998 = vperm.xlu1 %4340, %v4904_v41  }
 0x242   : > { %v5122_v22 = vpop.permute.xlu1 %2870  ;;  %v5124_v52 = vpop.permute.xlu0 %2254 }
 0x243   : > { %4341 = vset.pattern.permute.xlu1 %v4411_v24  ;;  %v5141_v24 = vmax.f32 %v2033_v9, 0.0 }
 0x244   : > { %3029 = vperm.xlu1 %4341, %v4904_v41  }
 0x245   : > { %v2071_v54 = vmul.f32 %v4970_v11, %v5141_v24  ;;  %v2102_v50 = vmul.f32 %v4964_v31, %v5141_v24  ;;  %v2133_v6 = vmul.f32 %v4981_v26, %v5141_v24  ;;  %v2226_v35 = vmul.f32 %v4983_v27, %v5141_v24 }
 0x247   : > { %v5128_v0 = vpop.permute.xlu1 %2901  ;;  %v5130_v62 = vpop.permute.xlu0 %2316 }
 0x248   : > { %6596 = vst [vmem:[#allocation8_spill] sm:$0xff] %v5128_v0  ;;  %4343 = vset.pattern.permute.xlu1 %v4424_v20 }
 0x249   : > { %3091 = vperm.xlu1 %4343, %v4904_v41  }
 0x24c   : > { %v5136_v1 = vpop.permute.xlu1 %2963  ;;  %v5138_v33 = vpop.permute.xlu0 %2409 }
 0x24d   : > { %6597 = vst [vmem:[#allocation9_spill] sm:$0xff] %v5136_v1  ;;  %4344 = vset.pattern.permute.xlu1 %v4413_v39 }
 0x24e   : > { %3122 = vperm.xlu1 %4344, %v4904_v41   ;;  %v2021_v41 = vadd.f32 %v1973_v23, %v4890_v13 }
 0x250   : > { %v2037_v34 = vadd.f32 %v4955_v14, %v2021_v41  ;;  %v2135_v41 = vmul.f32 %v5112_v38, %v5098_v12 }
 0x251   : > { %v5146_v19 = vpop.permute.xlu1 %2994  ;;  %v5148_v20 = vpop.permute.xlu0 %2502 }
 0x252   : > { %6598 = vst [vmem:[#allocation10_spill] sm:$0xff] %v5146_v19  ;;  %2079 = vrot.lane.b32.xlu1 %v2071_v54, %s4378_s25  ;;  %v5170_v30 = vmax.f32 %v2037_v34, 0.0  ;;  %v2134_v54 = vmul.f32 %v4981_v26, %v4974_v25 }
 0x253   : > { %4345 = vset.pattern.permute.xlu1 %v4385_v17 }
 0x256   : > { %v5154_v39 = vpop.permute.xlu1 %3056  ;;  %v5156_v57 = vpop.permute.xlu0 %2595  ;;  %2081 = vrot.lane.b32.xlu1 %v2072_v18, %s4378_s25  ;;  %v2164_v18 = vmul.f32 %v4972_v16, %v5141_v24 }
 0x257   : > { %6599 = vst [vmem:[#allocation11_spill] sm:$0xff] %v5154_v39 }
 0x25a   : > { %2110 = vrot.lane.b32.xlu1 %v2102_v50, %s4379_s26 }
 0x25b   : > { %v5164_v63 = vpop.permute.xlu1 %3087  ;;  %v5166_v17 = vpop.permute.xlu0 %2688 }
 0x25c   : > { %6600 = vst [vmem:[#allocation12_spill] sm:$0xff] %v5164_v63 }
 0x25e   : > { %2141 = vrot.lane.b32.xlu1 %v2133_v6, %s4434_s19  ;;  %v2195_v6 = vmul.f32 %v4991_v28, %v5141_v24 }
 0x260   : > { %v5173_v13 = vpop.permute.xlu1 %2099  ;;  %v5175_v9 = vpop.permute.xlu0 %2781 }
 0x261   : > { %v2105_v23 = vmul.f32 %v5173_v13, %v5170_v30 }
 0x262   : > { %2143 = vrot.lane.b32.xlu1 %v2134_v54, %s4434_s19 }
 0x263   : > { %2116 = vrot.lane.b32.xlu0 %v2105_v23, %s4379_s26 }
 0x265   : > { %v5187_v50 = vpop.permute.xlu1 %2161  ;;  %v5189_v34 = vpop.permute.xlu0 %2874 }
 0x266   : > { %2172 = vrot.lane.b32.xlu1 %v2164_v18, %s4425_s20  ;;  %v2167_v54 = vmul.f32 %v5187_v50, %v5170_v30  ;;  %v2196_v18 = vmul.f32 %v4991_v28, %v4974_v25 }
 0x267   : > { %2145 = vrot.lane.b32.xlu0 %v2135_v41, %s4434_s19  ;;  %v2197_v41 = vmul.f32 %v5118_v45, %v5098_v12 }
 0x26a   : > { %v5197_v23 = vpop.permute.xlu1 %2223  ;;  %2203 = vrot.lane.b32.xlu1 %v2195_v6, %s4435_s18  ;;  %v5200_v3 = vpop.permute.xlu0 %2967 }
 0x26b   : > { %6601 = vst [vmem:[#allocation13_spill] sm:$0xff] %v5200_v3  ;;  %2178 = vrot.lane.b32.xlu0 %v2167_v54, %s4425_s20  ;;  %v2229_v6 = vmul.f32 %v5197_v23, %v5170_v30  ;;  %v2038_v54 = vadd.f32 %v4955_v14, %v4913_v59  ;;  %v2258_v59 = vmul.f32 %v5001_v5, %v4974_v25 }
 0x26d   : > { %v5227_v2 = vmax.f32 %v2038_v54, 0.0 }
 0x26e   : > { %2205 = vrot.lane.b32.xlu1 %v2196_v18, %s4435_s18  ;;  %v2257_v18 = vmul.f32 %v5001_v5, %v5141_v24 }
 0x26f   : > { %2207 = vrot.lane.b32.xlu0 %v2197_v41, %s4435_s18  ;;  %v5209_v8 = vpop.permute.xlu1 %2285  ;;  %v5215_v63 = vpop.permute.xlu0 %3060  ;;  %v2259_v41 = vmul.f32 %v5124_v52, %v5098_v12  ;;  %v3264_v14 = vmul.f32 %v5103_v32, %v5227_v2 }
 0x270   : > { %6602 = vst [vmem:[#allocation14_spill] sm:$0xff] %v5215_v63  ;;  %v2035_v63 = vadd.f32 %v4957_v15, %v4909_v49  ;;  %v3278_v15 = vmul.f32 %v5173_v13, %v5227_v2 }
 0x272   : > { %2234 = vrot.lane.b32.xlu1 %v2226_v35, %s4384_s11 }
 0x273   : > { %2240 = vrot.lane.b32.xlu0 %v2229_v6, %s4384_s11  ;;  %v5231_v19 = vpop.permute.xlu0 %2112  ;;  %v5241_v6 = vmax.f32 %v2035_v63, 0.0 }
 0x274   : > { %v5225_v39 = vpop.permute.xlu1 %2347  ;;  %6603 = vst [vmem:[#allocation15_spill] sm:$0xff] %v5231_v19 }
 0x275   : > { %v3263_v49 = vmul.f32 %v4970_v11, %v5241_v6  ;;  %v3277_v63 = vmul.f32 %v4964_v31, %v5241_v6  ;;  %v2288_v31 = vmul.f32 %v4994_v29, %v5141_v24 }
 0x276   : > { %2265 = vrot.lane.b32.xlu1 %v2257_v18, %s4383_s30 }
 0x277   : > { %2269 = vrot.lane.b32.xlu0 %v2259_v41, %s4383_s30  ;;  %v5249_v54 = vpop.permute.xlu0 %2174  ;;  %v3292_v41 = vmul.f32 %v5112_v38, %v5227_v2 }
 0x278   : > { %6604 = vst [vmem:[#allocation16_spill] sm:$0xff] %v5249_v54  ;;  %v2350_v54 = vmul.f32 %v5019_v44, %v5141_v24 }
 0x279   : > { %v5239_v35 = vpop.permute.xlu1 %2378 }
 0x27a   : > { %2267 = vrot.lane.b32.xlu1 %v2258_v59, %s4383_s30 }
 0x27b   : > { %3269 = vrot.lane.b32.xlu0 %v3264_v14, %s4378_s25  ;;  %v5259_v59 = vpop.permute.xlu0 %2236  ;;  %v3291_v14 = vmul.f32 %v4981_v26, %v5241_v6  ;;  %v3305_v26 = vmul.f32 %v4972_v16, %v5241_v6  ;;  %v3319_v16 = vmul.f32 %v4991_v28, %v5241_v6  ;;  %v3333_v28 = vmul.f32 %v4983_v27, %v5241_v6 }
 0x27c   : > { %6605 = vst [vmem:[#allocation17_spill] sm:$0xff] %v5259_v59  ;;  %v3347_v27 = vmul.f32 %v5001_v5, %v5241_v6 }
 0x27e   : > { %v5251_v18 = vpop.permute.xlu1 %2440  ;;  %3267 = vrot.lane.b32.xlu1 %v3263_v49, %s4378_s25  ;;  %v2291_v49 = vmul.f32 %v5209_v8, %v5170_v30 }
 0x27f   : > { %3283 = vrot.lane.b32.xlu0 %v3278_v15, %s4379_s26  ;;  %v3306_v15 = vmul.f32 %v5187_v50, %v5227_v2 }
 0x282   : > { %3281 = vrot.lane.b32.xlu1 %v3277_v63, %s4379_s26  ;;  %v5275_v63 = vpop.permute.xlu0 %2298 }
 0x283   : > { %3297 = vrot.lane.b32.xlu0 %v3292_v41, %s4434_s19  ;;  %v5263_v11 = vpop.permute.xlu1 %2471  ;;  %6606 = vst [vmem:[#allocation18_spill] sm:$0xff] %v5275_v63  ;;  %v2319_v63 = vmul.f32 %v5010_v53, %v5141_v24 }
 0x286   : > { %3295 = vrot.lane.b32.xlu1 %v3291_v14, %s4434_s19  ;;  %v2322_v14 = vmul.f32 %v5130_v62, %v5170_v30  ;;  %v5287_v59 = vpop.permute.xlu0 %2329 }
 0x287   : > { %2302 = vrot.lane.b32.xlu0 %v2291_v49, %s4386_s12  ;;  %6607 = vst [vmem:[#allocation19_spill] sm:$0xff] %v5287_v59 }
 0x288   : > { %v5277_v41 = vpop.permute.xlu1 %2533 }
 0x28a   : > { %2296 = vrot.lane.b32.xlu1 %v2288_v31, %s4386_s12  ;;  %v3320_v31 = vmul.f32 %v5118_v45, %v5227_v2  ;;  %v5303_v59 = vpop.permute.xlu0 %2360 }
 0x28b   : > { %3311 = vrot.lane.b32.xlu0 %v3306_v15, %s4425_s20  ;;  %6608 = vst [vmem:[#allocation20_spill] sm:$0xff] %v5303_v59  ;;  %v2381_v59 = vmul.f32 %v5003_v37, %v5141_v24 }
 0x28d   : > { %v5285_v49 = vpop.permute.xlu1 %2564 }
 0x28e   : > { %3309 = vrot.lane.b32.xlu1 %v3305_v26, %s4425_s20  ;;  %v2353_v26 = vmul.f32 %v5225_v39, %v5170_v30 }
 0x28f   : > { %2333 = vrot.lane.b32.xlu0 %v2322_v14, %s4426_s21 }
 0x292   : > { %v5295_v15 = vpop.permute.xlu1 %2626  ;;  %2327 = vrot.lane.b32.xlu1 %v2319_v63, %s4426_s21  ;;  %v3334_v63 = vmul.f32 %v5197_v23, %v5227_v2 }
 0x293   : > { %3325 = vrot.lane.b32.xlu0 %v3320_v31, %s4435_s18  ;;  %v5313_v31 = vpop.permute.xlu0 %2391 }
 0x294   : > { %6609 = vst [vmem:[#allocation21_spill] sm:$0xff] %v5313_v31 }
 0x296   : > { %3323 = vrot.lane.b32.xlu1 %v3319_v16, %s4435_s18  ;;  %v2384_v16 = vmul.f32 %v5239_v35, %v5170_v30 }
 0x297   : > { %2364 = vrot.lane.b32.xlu0 %v2353_v26, %s4427_s22  ;;  %v5307_v14 = vpop.permute.xlu1 %2657  ;;  %v5329_v31 = vpop.permute.xlu0 %2422 }
 0x298   : > { %6610 = vst [vmem:[#allocation22_spill] sm:$0xff] %v5329_v31  ;;  %v2412_v31 = vmul.f32 %v5030_v48, %v5141_v24 }
 0x29a   : > { %2358 = vrot.lane.b32.xlu1 %v2350_v54, %s4427_s22  ;;  %v3348_v54 = vmul.f32 %v5124_v52, %v5227_v2 }
 0x29b   : > { %3339 = vrot.lane.b32.xlu0 %v3334_v63, %s4384_s11 }
 0x29c   : > { %v5321_v26 = vpop.permute.xlu1 %2719 }
 0x29e   : > { %3337 = vrot.lane.b32.xlu1 %v3333_v28, %s4384_s11  ;;  %v2415_v28 = vmul.f32 %v5138_v33, %v5170_v30 }
 0x29f   : > { %2395 = vrot.lane.b32.xlu0 %v2384_v16, %s4428_s23  ;;  %v5339_v16 = vpop.permute.xlu0 %2453 }
 0x2a0   : > { %6611 = vst [vmem:[#allocation23_spill] sm:$0xff] %v5339_v16 }
 0x2a1   : > { %v5331_v63 = vpop.permute.xlu1 %2750 }
 0x2a2   : > { %2389 = vrot.lane.b32.xlu1 %v2381_v59, %s4428_s23  ;;  %v3362_v59 = vmul.f32 %v5209_v8, %v5227_v2 }
 0x2a3   : > { %3353 = vrot.lane.b32.xlu0 %v3348_v54, %s4383_s30  ;;  %v3361_v54 = vmul.f32 %v4994_v29, %v5241_v6  ;;  %v5357_v16 = vpop.permute.xlu0 %2484  ;;  %v3375_v29 = vmul.f32 %v5010_v53, %v5241_v6  ;;  %v3389_v53 = vmul.f32 %v5019_v44, %v5241_v6  ;;  %v3403_v44 = vmul.f32 %v5003_v37, %v5241_v6 }
 0x2a4   : > { %6612 = vst [vmem:[#allocation24_spill] sm:$0xff] %v5357_v16  ;;  %v2474_v16 = vmul.f32 %v5012_v42, %v5141_v24 }
 0x2a6   : > { %v5341_v19 = vpop.permute.xlu1 %2812  ;;  %3351 = vrot.lane.b32.xlu1 %v3347_v27, %s4383_s30  ;;  %v2446_v27 = vmul.f32 %v5251_v18, %v5170_v30 }
 0x2a7   : > { %2426 = vrot.lane.b32.xlu0 %v2415_v28, %s4387_s15  ;;  %v2443_v28 = vmul.f32 %v5039_v56, %v5141_v24  ;;  %v5367_v58 = vpop.permute.xlu0 %2515 }
 0x2a8   : > { %6613 = vst [vmem:[#allocation25_spill] sm:$0xff] %v5367_v58 }
 0x2aa   : > { %2420 = vrot.lane.b32.xlu1 %v2412_v31, %s4387_s15  ;;  %v3376_v31 = vmul.f32 %v5130_v62, %v5227_v2 }
 0x2ab   : > { %3367 = vrot.lane.b32.xlu0 %v3362_v59, %s4386_s12  ;;  %v5351_v5 = vpop.permute.xlu1 %2843  ;;  %v5383_v58 = vpop.permute.xlu0 %2546 }
 0x2ac   : > { %6614 = vst [vmem:[#allocation26_spill] sm:$0xff] %v5383_v58  ;;  %v2505_v58 = vmul.f32 %v5048_v4, %v5141_v24 }
 0x2ae   : > { %3365 = vrot.lane.b32.xlu1 %v3361_v54, %s4386_s12  ;;  %v2477_v54 = vmul.f32 %v5263_v11, %v5170_v30 }
 0x2af   : > { %2457 = vrot.lane.b32.xlu0 %v2446_v27, %s6550_s16 }
 0x2b0   : > { %v5365_v59 = vpop.permute.xlu1 %2905 }
 0x2b2   : > { %2451 = vrot.lane.b32.xlu1 %v2443_v28, %s6550_s16  ;;  %v3390_v28 = vmul.f32 %v5225_v39, %v5227_v2 }
 0x2b3   : > { %3381 = vrot.lane.b32.xlu0 %v3376_v31, %s4426_s21 }
 0x2b5   : > { %v5375_v27 = vpop.permute.xlu1 %2936 }
 0x2b6   : > { %3379 = vrot.lane.b32.xlu1 %v3375_v29, %s4426_s21  ;;  %v2508_v29 = vmul.f32 %v5148_v20, %v5170_v30 }
 0x2b7   : > { %2488 = vrot.lane.b32.xlu0 %v2477_v54, %s6552_s17  ;;  %v5393_v54 = vpop.permute.xlu0 %2577 }
 0x2b8   : > { %6615 = vst [vmem:[#allocation27_spill] sm:$0xff] %v5393_v54  ;;  %v2536_v54 = vmul.f32 %v5058_v40, %v5141_v24 }
 0x2ba   : > { %v5385_v31 = vpop.permute.xlu1 %2998  ;;  %2482 = vrot.lane.b32.xlu1 %v2474_v16, %s6552_s17  ;;  %v3404_v16 = vmul.f32 %v5239_v35, %v5227_v2 }
 0x2bb   : > { %3395 = vrot.lane.b32.xlu0 %v3390_v28, %s4427_s22  ;;  %v2539_v28 = vmul.f32 %v5277_v41, %v5170_v30 }
 0x2be   : > { %3393 = vrot.lane.b32.xlu1 %v3389_v53, %s4427_s22  ;;  %v5409_v53 = vpop.permute.xlu0 %2608 }
 0x2bf   : > { %2519 = vrot.lane.b32.xlu0 %v2508_v29, %s4429_s24  ;;  %v5397_v3 = vpop.permute.xlu1 %3029  ;;  %6616 = vst [vmem:[#allocation28_spill] sm:$0xff] %v5409_v53  ;;  %v3417_v53 = vmul.f32 %v5030_v48, %v5241_v6  ;;  %v3431_v48 = vmul.f32 %v5039_v56, %v5241_v6 }
 0x2c2   : > { %2513 = vrot.lane.b32.xlu1 %v2505_v58, %s4429_s24  ;;  %v3418_v58 = vmul.f32 %v5138_v33, %v5227_v2  ;;  %v5421_v37 = vpop.permute.xlu0 %2639 }
 0x2c3   : > { %3409 = vrot.lane.b32.xlu0 %v3404_v16, %s4428_s23  ;;  %6619 = vst [vmem:[#allocation31_spill] sm:$0xff] %v5421_v37 }
 0x2c4   : > { %v5411_v29 = vpop.permute.xlu1 %3091 }
 0x2c5   : > { %6617 = vst [vmem:[#allocation29_spill] sm:$0xff] %v5411_v29 }
 0x2c6   : > { %3407 = vrot.lane.b32.xlu1 %v3403_v44, %s4428_s23  ;;  %v2570_v44 = vmul.f32 %v5285_v49, %v5170_v30  ;;  %v5437_v37 = vpop.permute.xlu0 %2083 }
 0x2c7   : > { %2550 = vrot.lane.b32.xlu0 %v2539_v28, %s4430_s27  ;;  %6621 = vst [vmem:[#allocation33_spill] sm:$0xff] %v5437_v37  ;;  %v2598_v37 = vmul.f32 %v5069_v51, %v5141_v24 }
 0x2c9   : > { %v5419_v16 = vpop.permute.xlu1 %3122 }
 0x2ca   : > { %6618 = vst [vmem:[#allocation30_spill] sm:$0xff] %v5419_v16  ;;  %2544 = vrot.lane.b32.xlu1 %v2536_v54, %s4430_s27  ;;  %v2567_v16 = vmul.f32 %v5021_v36, %v5141_v24  ;;  %v3432_v54 = vmul.f32 %v5251_v18, %v5227_v2 }
 0x2cb   : > { %3423 = vrot.lane.b32.xlu0 %v3418_v58, %s4387_s15 }
 0x2cd   : > { %v5429_v28 = vpop.permute.xlu1 %2079 }
 0x2ce   : > { %6620 = vst [vmem:[#allocation32_spill] sm:$0xff] %v5429_v28  ;;  %3421 = vrot.lane.b32.xlu1 %v3417_v53, %s4387_s15  ;;  %v2601_v53 = vmul.f32 %v5156_v57, %v5170_v30 }
 0x2cf   : > { %2581 = vrot.lane.b32.xlu0 %v2570_v44, %s4431_s28 }
 0x2d1   : > { %v5439_v58 = vpop.permute.xlu1 %2081 }
 0x2d2   : > { %6622 = vst [vmem:[#allocation34_spill] sm:$0xff] %v5439_v58  ;;  %2575 = vrot.lane.b32.xlu1 %v2567_v16, %s4431_s28  ;;  %v3446_v16 = vmul.f32 %v5263_v11, %v5227_v2 }
 0x2d3   : > { %3437 = vrot.lane.b32.xlu0 %v3432_v54, %s6550_s16 }
 0x2d5   : > { %v5447_v44 = vpop.permute.xlu0 %2116  ;;  %v5449_v28 = vpop.permute.xlu1 %2110 }
 0x2d6   : > { %6623 = vst [vmem:[#allocation35_spill] sm:$0xff] %v5449_v28  ;;  %3435 = vrot.lane.b32.xlu1 %v3431_v48, %s6550_s16  ;;  %v3445_v28 = vmul.f32 %v5012_v42, %v5241_v6  ;;  %v2632_v48 = vmul.f32 %v5295_v15, %v5170_v30  ;;  %s6627_s16 = smov 79  }
 0x2d7   : > { %2612 = vrot.lane.b32.xlu0 %v2601_v53, %s4432_s29 }
 0x2d9   : > { %v5457_v54 = vpop.permute.xlu0 %2145  ;;  %v5459_v56 = vpop.permute.xlu1 %2141 }
 0x2da   : > { %6624 = vst [vmem:[#allocation36_spill] sm:$0xff] %v5457_v54  ;;  %6625 = vst [vmem:[#allocation37_spill] sm:$0xff] %v5459_v56  ;;  %2606 = vrot.lane.b32.xlu1 %v2598_v37, %s4432_s29  ;;  %v2629_v54 = vmul.f32 %v5078_v47, %v5141_v24  ;;  %v3460_v37 = vmul.f32 %v5148_v20, %v5227_v2  ;;  %v2661_v56 = vmul.f32 %v5032_v55, %v4974_v25 }
 0x2db   : > { %3451 = vrot.lane.b32.xlu0 %v3446_v16, %s6552_s17 }
 0x2dd   : > { %v5467_v53 = vpop.permute.xlu0 %2178  ;;  %v5469_v58 = vpop.permute.xlu1 %2143 }
 0x2de   : > { %6626 = vst [vmem:[#allocation38_spill] sm:$0xff] %v5469_v58  ;;  %3449 = vrot.lane.b32.xlu1 %v3445_v28, %s6552_s17  ;;  %v2074_v28 = vmul.f32 %v5103_v32, %v5170_v30  ;;  %s4436_s17 = smov 78   ;;  %v2136_v32 = vmul.f32 %v5112_v38, %v5170_v30 }
 0x2df   : > { %2643 = vrot.lane.b32.xlu0 %v2632_v48, %s6627_s16 }
 0x2e1   : > { %v5477_v16 = vpop.permute.xlu0 %2207  ;;  %v5479_v42 = vpop.permute.xlu1 %2172 }
 0x2e2   : > { %6628 = vst [vmem:[#allocation39_spill] sm:$0xff] %v5477_v16  ;;  %6629 = vst [vmem:[#allocation40_spill] sm:$0xff] %v5479_v42  ;;  %2637 = vrot.lane.b32.xlu1 %v2629_v54, %s6627_s16  ;;  %v2104_v54 = vmul.f32 %v5173_v13, %v5098_v12 }
 0x2e3   : > { %3465 = vrot.lane.b32.xlu0 %v3460_v37, %s4429_s24  ;;  %v2663_v37 = vmul.f32 %v5307_v14, %v5170_v30 }
 0x2e5   : > { %v5487_v48 = vpop.permute.xlu0 %2240  ;;  %v5489_v58 = vpop.permute.xlu1 %2203 }
 0x2e6   : > { %6630 = vst [vmem:[#allocation41_spill] sm:$0xff] %v5489_v58  ;;  %2085 = vrot.lane.b32.xlu1 %v2074_v28, %s4378_s25  ;;  %s4437_s25 = smov 77  }
 0x2e7   : > { %2670 = vrot.lane.b32.xlu0 %v2661_v56, %s4436_s17  ;;  %v3474_v56 = vmul.f32 %v5277_v41, %v5227_v2 }
 0x2e9   : > { %v5497_v16 = vpop.permute.xlu0 %2269  ;;  %v5499_v42 = vpop.permute.xlu1 %2205 }
 0x2ea   : > { %6631 = vst [vmem:[#allocation42_spill] sm:$0xff] %v5497_v16  ;;  %6632 = vst [vmem:[#allocation43_spill] sm:$0xff] %v5499_v42  ;;  %2114 = vrot.lane.b32.xlu1 %v2104_v54, %s4379_s26  ;;  %v2692_v16 = vmul.f32 %v5089_v10, %v4974_v25  ;;  %v2166_v54 = vmul.f32 %v5187_v50, %v5098_v12  ;;  %v2228_v50 = vmul.f32 %v5197_v23, %v5098_v12  ;;  %s4438_s26 = smov 76  }
 0x2eb   : > { %2674 = vrot.lane.b32.xlu0 %v2663_v37, %s4436_s17 }
 0x2ed   : > { %v5507_v28 = vpop.permute.xlu0 %3269  ;;  %v5509_v13 = vpop.permute.xlu1 %2234 }
 0x2ee   : > { %6633 = vst [vmem:[#allocation44_spill] sm:$0xff] %v5509_v13  ;;  %2147 = vrot.lane.b32.xlu1 %v2136_v32, %s4434_s19  ;;  %v2198_v32 = vmul.f32 %v5118_v45, %v5170_v30 }
 0x2ef   : > { %3479 = vrot.lane.b32.xlu0 %v3474_v56, %s4430_s27  ;;  %v2694_v56 = vmul.f32 %v5166_v17, %v5170_v30 }
 0x2f1   : > { %v5517_v37 = vpop.permute.xlu0 %3283  ;;  %v5519_v38 = vpop.permute.xlu1 %2265 }
 0x2f2   : > { %6634 = vst [vmem:[#allocation45_spill] sm:$0xff] %v5519_v38  ;;  %2176 = vrot.lane.b32.xlu1 %v2166_v54, %s4425_s20  ;;  %v2723_v38 = vmul.f32 %v5101_v21, %v4974_v25  ;;  %s4441_s20 = smov 63  }
 0x2f3   : > { %2701 = vrot.lane.b32.xlu0 %v2692_v16, %s4437_s25  ;;  %v3488_v16 = vmul.f32 %v5285_v49, %v5227_v2 }
 0x2f5   : > { %v5527_v13 = vpop.permute.xlu0 %3297  ;;  %v5529_v58 = vpop.permute.xlu1 %2267 }
 0x2f6   : > { %6635 = vst [vmem:[#allocation46_spill] sm:$0xff] %v5529_v58  ;;  %2209 = vrot.lane.b32.xlu1 %v2198_v32, %s4435_s18  ;;  %v2260_v32 = vmul.f32 %v5124_v52, %v5170_v30  ;;  %v2321_v52 = vmul.f32 %v5130_v62, %v5098_v12  ;;  %s4451_s18 = smov 43  }
 0x2f7   : > { %2705 = vrot.lane.b32.xlu0 %v2694_v56, %s4437_s25 }
 0x2f9   : > { %v5537_v54 = vpop.permute.xlu0 %2302  ;;  %v5539_v45 = vpop.permute.xlu1 %3267 }
 0x2fa   : > { %6636 = vst [vmem:[#allocation47_spill] sm:$0xff] %v5539_v45  ;;  %2238 = vrot.lane.b32.xlu1 %v2228_v50, %s4384_s11  ;;  %v2290_v50 = vmul.f32 %v5209_v8, %v5098_v12  ;;  %s6644_s11 = smov 95  }
 0x2fb   : > { %3493 = vrot.lane.b32.xlu0 %v3488_v16, %s4431_s28  ;;  %v2725_v16 = vmul.f32 %v5321_v26, %v5170_v30 }
 0x2fd   : > { %v5547_v56 = vpop.permute.xlu0 %3311  ;;  %v5549_v23 = vpop.permute.xlu1 %3281 }
 0x2fe   : > { %6637 = vst [vmem:[#allocation48_spill] sm:$0xff] %v5549_v23  ;;  %2271 = vrot.lane.b32.xlu1 %v2260_v32, %s4383_s30  ;;  %s4439_s30 = smov 75  }
 0x2ff   : > { %2732 = vrot.lane.b32.xlu0 %v2723_v38, %s4438_s26  ;;  %v3502_v38 = vmul.f32 %v5156_v57, %v5227_v2 }
 0x301   : > { %v5557_v58 = vpop.permute.xlu0 %2333  ;;  %v5559_v42 = vpop.permute.xlu1 %3295 }
 0x302   : > { %6638 = vst [vmem:[#allocation49_spill] sm:$0xff] %v5559_v42  ;;  %2300 = vrot.lane.b32.xlu1 %v2290_v50, %s4386_s12  ;;  %v2754_v42 = vmul.f32 %v5041_v60, %v4974_v25  ;;  %v2352_v50 = vmul.f32 %v5225_v39, %v5098_v12  ;;  %v2414_v39 = vmul.f32 %v5138_v33, %v5098_v12  ;;  %s4440_s12 = smov 64  }
 0x303   : > { %2736 = vrot.lane.b32.xlu0 %v2725_v16, %s4438_s26 }
 0x305   : > { %v5567_v32 = vpop.permute.xlu0 %3325  ;;  %v5569_v8 = vpop.permute.xlu1 %2296 }
 0x306   : > { %6639 = vst [vmem:[#allocation50_spill] sm:$0xff] %v5569_v8  ;;  %2331 = vrot.lane.b32.xlu1 %v2321_v52, %s4426_s21  ;;  %v2383_v52 = vmul.f32 %v5239_v35, %v5098_v12  ;;  %s4442_s21 = smov 62  }
 0x307   : > { %3507 = vrot.lane.b32.xlu0 %v3502_v38, %s4432_s29  ;;  %v2756_v38 = vmul.f32 %v5331_v63, %v5170_v30 }
 0x309   : > { %v5577_v16 = vpop.permute.xlu0 %2364  ;;  %v5579_v62 = vpop.permute.xlu1 %3309 }
 0x30a   : > { %6640 = vst [vmem:[#allocation51_spill] sm:$0xff] %v5579_v62  ;;  %2362 = vrot.lane.b32.xlu1 %v2352_v50, %s4427_s22  ;;  %s4443_s22 = smov 61  }
 0x30b   : > { %2763 = vrot.lane.b32.xlu0 %v2754_v42, %s4439_s30  ;;  %v3516_v42 = vmul.f32 %v5295_v15, %v5227_v2 }
 0x30d   : > { %v5587_v8 = vpop.permute.xlu0 %3339  ;;  %v5589_v23 = vpop.permute.xlu1 %2327 }
 0x30e   : > { %6641 = vst [vmem:[#allocation52_spill] sm:$0xff] %v5589_v23  ;;  %2393 = vrot.lane.b32.xlu1 %v2383_v52, %s4428_s23  ;;  %v2785_v23 = vmul.f32 %v5110_v46, %v4974_v25  ;;  %v2445_v52 = vmul.f32 %v5251_v18, %v5098_v12  ;;  %v2507_v18 = vmul.f32 %v5148_v20, %v5098_v12  ;;  %s4444_s23 = smov 60  }
 0x30f   : > { %2767 = vrot.lane.b32.xlu0 %v2756_v38, %s4439_s30 }
 0x311   : > { %v5597_v50 = vpop.permute.xlu0 %2395  ;;  %v5599_v35 = vpop.permute.xlu1 %3323 }
 0x312   : > { %6642 = vst [vmem:[#allocation53_spill] sm:$0xff] %v5599_v35  ;;  %2424 = vrot.lane.b32.xlu1 %v2414_v39, %s4387_s15  ;;  %v2787_v39 = vmul.f32 %v5175_v9, %v5170_v30  ;;  %s6646_s15 = smov 94  }
 0x313   : > { %3521 = vrot.lane.b32.xlu0 %v3516_v42, %s6627_s16  ;;  %v2476_v42 = vmul.f32 %v5263_v11, %v5098_v12  ;;  %v2816_v11 = vmul.f32 %v5116_v61, %v4974_v25 }
 0x315   : > { %v5607_v38 = vpop.permute.xlu0 %3353  ;;  %v5609_v33 = vpop.permute.xlu1 %2358 }
 0x316   : > { %6643 = vst [vmem:[#allocation54_spill] sm:$0xff] %v5609_v33  ;;  %2455 = vrot.lane.b32.xlu1 %v2445_v52, %s6644_s11 }
 0x317   : > { %2794 = vrot.lane.b32.xlu0 %v2785_v23, %s4440_s12  ;;  %v3530_v23 = vmul.f32 %v5307_v14, %v5227_v2 }
 0x319   : > { %v5617_v35 = vpop.permute.xlu0 %2426  ;;  %v5619_v62 = vpop.permute.xlu1 %3337 }
 0x31a   : > { %6645 = vst [vmem:[#allocation55_spill] sm:$0xff] %v5619_v62  ;;  %2486 = vrot.lane.b32.xlu1 %v2476_v42, %s6646_s15 }
 0x31b   : > { %2798 = vrot.lane.b32.xlu0 %v2787_v39, %s4440_s12  ;;  %v2538_v39 = vmul.f32 %v5277_v41, %v5098_v12  ;;  %v2600_v41 = vmul.f32 %v5156_v57, %v5098_v12 }
 0x31d   : > { %v5627_v52 = vpop.permute.xlu0 %3367  ;;  %v5629_v33 = vpop.permute.xlu1 %2389 }
 0x31e   : > { %6647 = vst [vmem:[#allocation56_spill] sm:$0xff] %v5629_v33  ;;  %2517 = vrot.lane.b32.xlu1 %v2507_v18, %s4429_s24  ;;  %v2569_v18 = vmul.f32 %v5285_v49, %v5098_v12 }
 0x31f   : > { %3535 = vrot.lane.b32.xlu0 %v3530_v23, %s4436_s17  ;;  %v2818_v23 = vmul.f32 %v5341_v19, %v5170_v30 }
 0x321   : > { %v5637_v42 = vpop.permute.xlu0 %2457  ;;  %v5639_v20 = vpop.permute.xlu1 %3351 }
 0x322   : > { %6648 = vst [vmem:[#allocation57_spill] sm:$0xff] %v5639_v20  ;;  %2548 = vrot.lane.b32.xlu1 %v2538_v39, %s4430_s27 }
 0x323   : > { %2825 = vrot.lane.b32.xlu0 %v2816_v11, %s4441_s20  ;;  %v3544_v11 = vmul.f32 %v5166_v17, %v5227_v2 }
 0x325   : > { %v5647_v33 = vpop.permute.xlu0 %3381  ;;  %v5649_v62 = vpop.permute.xlu1 %2420 }
 0x326   : > { %6649 = vst [vmem:[#allocation58_spill] sm:$0xff] %v5649_v62  ;;  %2579 = vrot.lane.b32.xlu1 %v2569_v18, %s4431_s28  ;;  %v2847_v62 = vmul.f32 %v5051_v7, %v4974_v25  ;;  %v2631_v18 = vmul.f32 %v5295_v15, %v5098_v12  ;;  %v2660_v15 = vmul.f32 %v5032_v55, %v5141_v24 }
 0x327   : > { %2829 = vrot.lane.b32.xlu0 %v2818_v23, %s4441_s20 }
 0x329   : > { %v5657_v39 = vpop.permute.xlu0 %2488  ;;  %v5659_v49 = vpop.permute.xlu1 %3365 }
 0x32a   : > { %6650 = vst [vmem:[#allocation59_spill] sm:$0xff] %v5659_v49  ;;  %2610 = vrot.lane.b32.xlu1 %v2600_v41, %s4432_s29  ;;  %v3459_v41 = vmul.f32 %v5048_v4, %v5241_v6 }
 0x32b   : > { %3549 = vrot.lane.b32.xlu0 %v3544_v11, %s4437_s25  ;;  %v2849_v11 = vmul.f32 %v5351_v5, %v5170_v30 }
 0x32d   : > { %v5667_v23 = vpop.permute.xlu0 %3395  ;;  %v5669_v57 = vpop.permute.xlu1 %2451 }
 0x32e   : > { %6651 = vst [vmem:[#allocation60_spill] sm:$0xff] %v5669_v57  ;;  %2641 = vrot.lane.b32.xlu1 %v2631_v18, %s6627_s16  ;;  %v2878_v57 = vmul.f32 %v5122_v22, %v4974_v25 }
 0x32f   : > { %2856 = vrot.lane.b32.xlu0 %v2847_v62, %s4442_s21  ;;  %v3558_v62 = vmul.f32 %v5321_v26, %v5227_v2 }
 0x331   : > { %v5677_v49 = vpop.permute.xlu0 %2519  ;;  %v5679_v20 = vpop.permute.xlu1 %3379 }
 0x332   : > { %6652 = vst [vmem:[#allocation61_spill] sm:$0xff] %v5679_v20  ;;  %3463 = vrot.lane.b32.xlu1 %v3459_v41, %s4429_s24  ;;  %v2662_v41 = vmul.f32 %v5307_v14, %v5098_v12  ;;  %v2691_v14 = vmul.f32 %v5089_v10, %v5141_v24  ;;  %s4445_s24 = smov 59  }
 0x333   : > { %2860 = vrot.lane.b32.xlu0 %v2849_v11, %s4442_s21 }
 0x335   : > { %v5687_v18 = vpop.permute.xlu0 %3409  ;;  %v5689_v4 = vpop.permute.xlu1 %2482 }
 0x336   : > { %6653 = vst [vmem:[#allocation62_spill] sm:$0xff] %v5689_v4  ;;  %2668 = vrot.lane.b32.xlu1 %v2660_v15, %s4436_s17  ;;  %v3473_v15 = vmul.f32 %v5058_v40, %v5241_v6 }
 0x337   : > { %3563 = vrot.lane.b32.xlu0 %v3558_v62, %s4438_s26  ;;  %v2880_v62 = vmul.f32 %v5189_v34, %v5170_v30 }
 0x339   : > { %v5697_v11 = vpop.permute.xlu0 %2550  ;;  %v5699_v20 = vpop.permute.xlu1 %3393 }
 0x33a   : > { %6654 = vst [vmem:[#allocation63_spill] sm:$0xff] %v5699_v20  ;;  %2672 = vrot.lane.b32.xlu1 %v2662_v41, %s4436_s17 }
 0x33b   : > { %2887 = vrot.lane.b32.xlu0 %v2878_v57, %s4443_s22  ;;  %v3572_v57 = vmul.f32 %v5331_v63, %v5227_v2 }
 0x33d   : > { %v5707_v4 = vpop.permute.xlu0 %3423  ;;  %v5709_v45 = vpop.permute.xlu1 %2513 }
 0x33e   : > { %6655 = vst [vmem:[#allocation64_spill] sm:$0xff] %v5709_v45  ;;  %3477 = vrot.lane.b32.xlu1 %v3473_v15, %s4430_s27  ;;  %v2909_v45 = vmul.f32 %v5128_v0, %v4974_v25  ;;  %v2693_v15 = vmul.f32 %v5166_v17, %v5098_v12  ;;  %v2722_v17 = vmul.f32 %v5101_v21, %v5141_v24  ;;  %s4446_s27 = smov 48  }
 0x33f   : > { %2891 = vrot.lane.b32.xlu0 %v2880_v62, %s4443_s22 }
 0x341   : > { %v5717_v41 = vpop.permute.xlu0 %2581  ;;  %v5719_v40 = vpop.permute.xlu1 %3407 }
 0x342   : > { %6656 = vst [vmem:[#allocation65_spill] sm:$0xff] %v5717_v41  ;;  %6657 = vst [vmem:[#allocation66_spill] sm:$0xff] %v5719_v40  ;;  %2699 = vrot.lane.b32.xlu1 %v2691_v14, %s4437_s25  ;;  %v3487_v14 = vmul.f32 %v5021_v36, %v5241_v6 }
 0x343   : > { %3577 = vrot.lane.b32.xlu0 %v3572_v57, %s4439_s30  ;;  %v2911_v57 = vmul.f32 %v5365_v59, %v5170_v30 }
 0x345   : > { %v5727_v62 = vpop.permute.xlu0 %3437  ;;  %v5729_v20 = vpop.permute.xlu1 %2544 }
 0x346   : > { %6658 = vst [vmem:[#allocation67_spill] sm:$0xff] %v5729_v20  ;;  %2703 = vrot.lane.b32.xlu1 %v2693_v15, %s4437_s25  ;;  %v2940_v20 = vmul.f32 %v5060_v43, %v4974_v25 }
 0x347   : > { %2918 = vrot.lane.b32.xlu0 %v2909_v45, %s4444_s23  ;;  %v3586_v45 = vmul.f32 %v5175_v9, %v5227_v2 }
 0x349   : > { %v5737_v40 = vpop.permute.xlu0 %2612  ;;  %v5739_v0 = vpop.permute.xlu1 %3421 }
 0x34a   : > { %6659 = vst [vmem:[#allocation68_spill] sm:$0xff] %v5737_v40  ;;  %6660 = vst [vmem:[#allocation69_spill] sm:$0xff] %v5739_v0  ;;  %3491 = vrot.lane.b32.xlu1 %v3487_v14, %s4431_s28  ;;  %v2724_v14 = vmul.f32 %v5321_v26, %v5098_v12  ;;  %v2753_v26 = vmul.f32 %v5041_v60, %v5141_v24  ;;  %s4449_s28 = smov 45  }
 0x34b   : > { %2922 = vrot.lane.b32.xlu0 %v2911_v57, %s4444_s23 }
 0x34d   : > { %v5747_v15 = vpop.permute.xlu0 %3451  ;;  %v5749_v36 = vpop.permute.xlu1 %2575 }
 0x34e   : > { %6661 = vst [vmem:[#allocation70_spill] sm:$0xff] %v5749_v36  ;;  %2730 = vrot.lane.b32.xlu1 %v2722_v17, %s4438_s26  ;;  %v3501_v17 = vmul.f32 %v5069_v51, %v5241_v6 }
 0x34f   : > { %3591 = vrot.lane.b32.xlu0 %v3586_v45, %s4440_s12  ;;  %v2942_v45 = vmul.f32 %v5375_v27, %v5170_v30 }
 0x351   : > { %v5757_v57 = vpop.permute.xlu0 %2643  ;;  %v5759_v0 = vpop.permute.xlu1 %3435 }
 0x352   : > { %6662 = vst [vmem:[#allocation71_spill] sm:$0xff] %v5757_v57  ;;  %6663 = vst [vmem:[#allocation72_spill] sm:$0xff] %v5759_v0  ;;  %2734 = vrot.lane.b32.xlu1 %v2724_v14, %s4438_s26 }
 0x353   : > { %2949 = vrot.lane.b32.xlu0 %v2940_v20, %s4445_s24  ;;  %v3600_v20 = vmul.f32 %v5341_v19, %v5227_v2 }
 0x355   : > { %v5767_v36 = vpop.permute.xlu0 %3465  ;;  %v5769_v43 = vpop.permute.xlu1 %2606 }
 0x356   : > { %6664 = vst [vmem:[#allocation73_spill] sm:$0xff] %v5769_v43  ;;  %3505 = vrot.lane.b32.xlu1 %v3501_v17, %s4432_s29  ;;  %v2971_v43 = vmul.f32 %v5136_v1, %v4974_v25  ;;  %v2755_v17 = vmul.f32 %v5331_v63, %v5098_v12  ;;  %v2784_v63 = vmul.f32 %v5110_v46, %v5141_v24  ;;  %v6673_v46 = vld [vmem:[#allocation10_spill] sm:$0xff]  ;;  %s4450_s29 = smov 44  }
 0x357   : > { %2953 = vrot.lane.b32.xlu0 %v2942_v45, %s4445_s24 }
 0x359   : > { %v5777_v14 = vpop.permute.xlu0 %2670  ;;  %v5779_v51 = vpop.permute.xlu1 %3449 }
 0x35a   : > { %6665 = vst [vmem:[#allocation74_spill] sm:$0xff] %v5777_v14  ;;  %6666 = vst [vmem:[#allocation75_spill] sm:$0xff] %v5779_v51  ;;  %2761 = vrot.lane.b32.xlu1 %v2753_v26, %s4439_s30  ;;  %v3515_v26 = vmul.f32 %v5078_v47, %v5241_v6 }
 0x35b   : > { %3605 = vrot.lane.b32.xlu0 %v3600_v20, %s4441_s20  ;;  %v6669_v20 = vld [vmem:[#allocation13_spill] sm:$0xff] }
 0x35c   : > { %v2973_v14 = vmul.f32 %v6669_v20, %v5170_v30  ;;  %v2786_v20 = vmul.f32 %v5175_v9, %v5098_v12  ;;  %v3286_v9 = vsel %vm1185_vm4, %v5447_v44, %v5517_v37  ;;  %v3628_v37 = vmul.f32 %v5189_v34, %v5227_v2 }
 0x35d   : > { %v5787_v45 = vpop.permute.xlu0 %2674  ;;  %v5789_v0 = vpop.permute.xlu1 %2637 }
 0x35e   : > { %6667 = vst [vmem:[#allocation76_spill] sm:$0xff] %v5787_v45  ;;  %6668 = vst [vmem:[#allocation77_spill] sm:$0xff] %v5789_v0  ;;  %2765 = vrot.lane.b32.xlu1 %v2755_v17, %s4439_s30  ;;  %v3002_v45 = vmul.f32 %v6673_v46, %v4974_v25 }
 0x35f   : > { %2980 = vrot.lane.b32.xlu0 %v2971_v43, %s4446_s27  ;;  %v3614_v43 = vmul.f32 %v5351_v5, %v5227_v2 }
 0x361   : > { %v5797_v51 = vpop.permute.xlu0 %3479  ;;  %v5799_v1 = vpop.permute.xlu1 %2085 }
 0x362   : > { %3519 = vrot.lane.b32.xlu1 %v3515_v26, %s6627_s16  ;;  %v3272_v0 = vsel %vm968_vm3, %v5799_v1, %v5507_v28  ;;  %s4447_s16 = smov 47   ;;  %v3529_v28 = vmul.f32 %v5032_v55, %v5241_v6 }
 0x363   : > { %2984 = vrot.lane.b32.xlu0 %v2973_v14, %s4446_s27  ;;  %v6672_v14 = vld [vmem:[#allocation6_spill] sm:$0xff] }
 0x364   : > { %v3262_v26 = vmul.f32 %v6672_v14, %v5170_v30 }
 0x365   : > { %v5807_v17 = vpop.permute.xlu0 %2701  ;;  %v5809_v47 = vpop.permute.xlu1 %2114 }
 0x366   : > { %6670 = vst [vmem:[#allocation78_spill] sm:$0xff] %v5807_v17  ;;  %6671 = vst [vmem:[#allocation79_spill] sm:$0xff] %v5809_v47  ;;  %2792 = vrot.lane.b32.xlu1 %v2784_v63, %s4440_s12  ;;  %v3276_v47 = vadd.f32 %v3272_v0, %v3262_v26  ;;  %v3004_v63 = vmul.f32 %v5385_v31, %v5170_v30 }
 0x367   : > { %3619 = vrot.lane.b32.xlu0 %v3614_v43, %s4442_s21 }
 0x369   : > { %v5822_v17 = vpop.permute.xlu0 %2705  ;;  %v5824_v57 = vpop.permute.xlu1 %2147 }
 0x36a   : > { %6674 = vst [vmem:[#allocation6_spill] sm:$0xff] %v5822_v17  ;;  %6675 = vst [vmem:[#allocation80_spill] sm:$0xff] %v5824_v57  ;;  %2796 = vrot.lane.b32.xlu1 %v2786_v20, %s4440_s12  ;;  %v3300_v0 = vsel %vm2149_vm11, %v5824_v57, %v5527_v13  ;;  %v3290_v20 = vadd.f32 %v3286_v9, %v3276_v47  ;;  %v3314_v47 = vsel %vm2180_vm12, %v5467_v53, %v5547_v56  ;;  %v6678_v9 = vld [vmem:[#allocation4_spill] sm:$0xff] }
 0x36b   : > { %3011 = vrot.lane.b32.xlu0 %v3002_v45, %s4447_s16  ;;  %v2815_v45 = vmul.f32 %v5116_v61, %v5141_v24  ;;  %v3543_v56 = vmul.f32 %v5089_v10, %v5241_v6 }
 0x36c   : > { %v3304_v55 = vadd.f32 %v3300_v0, %v3290_v20  ;;  %v3033_v0 = vmul.f32 %v6678_v9, %v4974_v25  ;;  %v2817_v20 = vmul.f32 %v5341_v19, %v5098_v12  ;;  %v3342_v19 = vsel %vm1307_vm5, %v5487_v48, %v5587_v8 }
 0x36d   : > { %v5838_v43 = vpop.permute.xlu0 %3493  ;;  %v5840_v26 = vpop.permute.xlu1 %2176  ;;  %v3642_v8 = vmul.f32 %v5365_v59, %v5227_v2 }
 0x36e   : > { %6676 = vst [vmem:[#allocation81_spill] sm:$0xff] %v5840_v26  ;;  %3533 = vrot.lane.b32.xlu1 %v3529_v28, %s4436_s17  ;;  %s4448_s17 = smov 46  }
 0x36f   : > { %3015 = vrot.lane.b32.xlu0 %v3004_v63, %s4447_s16  ;;  %v3318_v63 = vadd.f32 %v3314_v47, %v3304_v55 }
 0x371   : > { %v5848_v46 = vpop.permute.xlu0 %2732  ;;  %v5850_v13 = vpop.permute.xlu1 %2209 }
 0x372   : > { %6677 = vst [vmem:[#allocation82_spill] sm:$0xff] %v5848_v46  ;;  %v3328_v28 = vsel %vm2211_vm13, %v5850_v13, %v5567_v32  ;;  %2823 = vrot.lane.b32.xlu1 %v2815_v45, %s4441_s20  ;;  %v3035_v32 = vmul.f32 %v5397_v3, %v5170_v30 }
 0x373   : > { %3633 = vrot.lane.b32.xlu0 %v3628_v37, %s4443_s22  ;;  %v3332_v26 = vadd.f32 %v3328_v28, %v3318_v63  ;;  %v2846_v28 = vmul.f32 %v5051_v7, %v5141_v24  ;;  %v3370_v63 = vsel %vm1551_vm7, %v5537_v54, %v5627_v52  ;;  %v2848_v52 = vmul.f32 %v5351_v5, %v5098_v12 }
 0x375   : > { %v5864_v46 = vpop.permute.xlu0 %2736  ;;  %v5866_v57 = vpop.permute.xlu1 %2238  ;;  %v3346_v37 = vadd.f32 %v3342_v19, %v3332_v26 }
 0x376   : > { %6679 = vst [vmem:[#allocation4_spill] sm:$0xff] %v5864_v46  ;;  %2827 = vrot.lane.b32.xlu1 %v2817_v20, %s4441_s20  ;;  %v3384_v20 = vsel %vm2335_vm14, %v5557_v58, %v5647_v33 }
 0x377   : > { %3042 = vrot.lane.b32.xlu0 %v3033_v0, %s4448_s17 }
 0x379   : > { %v5877_v55 = vpop.permute.xlu0 %3507  ;;  %v5879_v45 = vpop.permute.xlu1 %2271 }
 0x37a   : > { %v3356_v47 = vsel %vm1429_vm6, %v5879_v45, %v5607_v38  ;;  %3547 = vrot.lane.b32.xlu1 %v3543_v56, %s4437_s25 }
 0x37b   : > { %3046 = vrot.lane.b32.xlu0 %v3035_v32, %s4448_s17  ;;  %v3360_v10 = vadd.f32 %v3356_v47, %v3346_v37  ;;  %v6681_v32 = vld [vmem:[#allocation11_spill] sm:$0xff]  ;;  %v3398_v37 = vsel %vm2366_vm15, %v5577_v16, %v5667_v23  ;;  %v6682_v23 = vld [vmem:[#allocation14_spill] sm:$0xff] }
 0x37c   : > { %v3064_v19 = vmul.f32 %v6681_v32, %v4974_v25 }
 0x37d   : > { %v5893_v26 = vpop.permute.xlu0 %2763  ;;  %v3374_v0 = vadd.f32 %v3370_v63, %v3360_v10  ;;  %v5895_v38 = vpop.permute.xlu1 %2300  ;;  %v3066_v63 = vmul.f32 %v6682_v23, %v5170_v30 }
 0x37e   : > { %6680 = vst [vmem:[#allocation83_spill] sm:$0xff] %v5893_v26  ;;  %2854 = vrot.lane.b32.xlu1 %v2846_v28, %s4442_s21  ;;  %v3412_v28 = vsel %vm2397_vm1, %v5597_v50, %v5687_v18  ;;  %v3440_v18 = vsel %vm1795_vm9, %v5637_v42, %v5727_v62 }
 0x37f   : > { %3647 = vrot.lane.b32.xlu0 %v3642_v8, %s4444_s23  ;;  %v3388_v56 = vadd.f32 %v3384_v20, %v3374_v0  ;;  %v3557_v8 = vmul.f32 %v5101_v21, %v5241_v6  ;;  %v3426_v0 = vsel %vm1673_vm8, %v5617_v35, %v5707_v4  ;;  %v3454_v4 = vsel %vm6570_vm10, %v5657_v39, %v5747_v15 }
 0x380   : > { %v2879_v15 = vmul.f32 %v5189_v34, %v5098_v12  ;;  %vm6573_vm10 = vcmask 744448  }
 0x381   : > { %v5909_v47 = vpop.permute.xlu0 %2767  ;;  %v3402_v33 = vadd.f32 %v3398_v37, %v3388_v56  ;;  %v5911_v10 = vpop.permute.xlu1 %2331 }
 0x382   : > { %2858 = vrot.lane.b32.xlu1 %v2848_v52, %s4442_s21  ;;  %v3656_v52 = vmul.f32 %v5375_v27, %v5227_v2 }
 0x383   : > { %3073 = vrot.lane.b32.xlu0 %v3064_v19, %s4449_s28  ;;  %v3416_v5 = vadd.f32 %v3412_v28, %v3402_v33  ;;  %v2877_v19 = vmul.f32 %v5122_v22, %v5141_v24 }
 0x385   : > { %v3522_v20 = vpop.permute.xlu0 %3521  ;;  %v3430_v56 = vadd.f32 %v3426_v0, %v3416_v5  ;;  %v5925_v37 = vpop.permute.xlu1 %2362  ;;  %v3468_v5 = vsel %vm6571_vm2, %v5677_v49, %v5767_v36  ;;  %vm2614_vm2 = vcmask 654336  }
 0x386   : > { %3561 = vrot.lane.b32.xlu1 %v3557_v8, %s4438_s26 }
 0x387   : > { %3077 = vrot.lane.b32.xlu0 %v3066_v63, %s4449_s28  ;;  %v3444_v21 = vadd.f32 %v3440_v18, %v3430_v56  ;;  %v6684_v63 = vld [vmem:[#allocation12_spill] sm:$0xff]  ;;  %v3482_v56 = vsel %vm6572_vm0, %v5697_v11, %v5797_v51  ;;  %v3571_v51 = vmul.f32 %v5041_v60, %v5241_v6  ;;  %vm2645_vm0 = vcmask 646144  }
 0x388   : > { %v3095_v0 = vmul.f32 %v6684_v63, %v4974_v25 }
 0x389   : > { %v5939_v33 = vpop.permute.xlu0 %2794  ;;  %v3458_v28 = vadd.f32 %v3454_v4, %v3444_v21  ;;  %v5941_v62 = vpop.permute.xlu1 %2393  ;;  %v3510_v4 = vsel %vm2614_vm2, %v5737_v40, %v5877_v55  ;;  %v3726_v40 = vmul.f32 %v5411_v29, %v5227_v2 }
 0x38a   : > { %6683 = vst [vmem:[#allocation84_spill] sm:$0xff] %v5939_v33  ;;  %2885 = vrot.lane.b32.xlu1 %v2877_v19, %s4443_s22  ;;  %v3496_v19 = vsel %vm6573_vm10, %v5717_v41, %v5838_v43  ;;  %vm6575_vm10 = vcmask 637952  }
 0x38b   : > { %3661 = vrot.lane.b32.xlu0 %v3656_v52, %s4445_s24  ;;  %v3472_v8 = vadd.f32 %v3468_v5, %v3458_v28  ;;  %v3097_v52 = vmul.f32 %v5411_v29, %v5170_v30  ;;  %v6712_v29 = vld [vmem:[#allocation47_spill] sm:$0xff] }
 0x38d   : > { %v5955_v18 = vpop.permute.xlu0 %2798  ;;  %v3486_v36 = vadd.f32 %v3482_v56, %v3472_v8  ;;  %v5957_v21 = vpop.permute.xlu1 %2424  ;;  %v6685_v8 = vld [vmem:[#allocation71_spill] sm:$0xff] }
 0x38e   : > { %2889 = vrot.lane.b32.xlu1 %v2879_v15, %s4443_s22  ;;  %v6686_v15 = vld [vmem:[#allocation8_spill] sm:$0xff] }
 0x38f   : > { %3104 = vrot.lane.b32.xlu0 %v3095_v0, %s4450_s29  ;;  %v3500_v34 = vadd.f32 %v3496_v19, %v3486_v36  ;;  %v3524_v0 = vsel %vm2645_vm0, %v6685_v8, %v3522_v20  ;;  %v2908_v56 = vmul.f32 %v6686_v15, %v5141_v24  ;;  %v6687_v36 = vld [vmem:[#allocation13_spill] sm:$0xff]  ;;  %v6688_v19 = vld [vmem:[#allocation76_spill] sm:$0xff]  ;;  %v6704_v8 = vld [vmem:[#allocation35_spill] sm:$0xff] }
 0x390   : > { %v3670_v55 = vmul.f32 %v6687_v36, %v5227_v2  ;;  %v6690_v20 = vld [vmem:[#allocation5_spill] sm:$0xff] }
 0x391   : > { %v3536_v28 = vpop.permute.xlu0 %3535  ;;  %v3514_v43 = vadd.f32 %v3510_v4, %v3500_v34  ;;  %v5971_v5 = vpop.permute.xlu1 %2455 }
 0x392   : > { %3575 = vrot.lane.b32.xlu1 %v3571_v51, %s4439_s30  ;;  %v3538_v34 = vsel %vm6575_vm10, %v6688_v19, %v3536_v28  ;;  %v3126_v51 = vmul.f32 %v6690_v20, %v4974_v25  ;;  %vm6578_vm10 = vcmask 629760   ;;  %v6692_v28 = vld [vmem:[#allocation7_spill] sm:$0xff] }
 0x393   : > { %3108 = vrot.lane.b32.xlu0 %v3097_v52, %s4450_s29  ;;  %v3528_v60 = vadd.f32 %v3524_v0, %v3514_v43  ;;  %v2910_v52 = vmul.f32 %v5365_v59, %v5098_v12 }
 0x395   : > { %v5983_v4 = vpop.permute.xlu0 %2825  ;;  %v3542_v33 = vadd.f32 %v3538_v34, %v3528_v60  ;;  %v5985_v63 = vpop.permute.xlu1 %2486  ;;  %v3585_v60 = vmul.f32 %v6692_v28, %v5241_v6  ;;  %v3684_v28 = vmul.f32 %v5385_v31, %v5227_v2 }
 0x396   : > { %6689 = vst [vmem:[#allocation8_spill] sm:$0xff] %v5983_v4  ;;  %2916 = vrot.lane.b32.xlu1 %v2908_v56, %s4444_s23  ;;  %v6693_v56 = vld [vmem:[#allocation30_spill] sm:$0xff] }
 0x397   : > { %3675 = vrot.lane.b32.xlu0 %v3670_v55, %s4446_s27  ;;  %v3128_v55 = vmul.f32 %v6693_v56, %v5170_v30 }
 0x399   : > { %v5993_v43 = vpop.permute.xlu0 %2829  ;;  %v5995_v0 = vpop.permute.xlu1 %2517 }
 0x39a   : > { %6691 = vst [vmem:[#allocation13_spill] sm:$0xff] %v5993_v43  ;;  %2920 = vrot.lane.b32.xlu1 %v2910_v52, %s4444_s23  ;;  %v6707_v43 = vld [vmem:[#allocation37_spill] sm:$0xff] }
 0x39b   : > { %3135 = vrot.lane.b32.xlu0 %v3126_v51, %s4451_s18  ;;  %v6694_v51 = vld [vmem:[#allocation3_spill] sm:$0xff] }
 0x39c   : > { %v2939_v52 = vmul.f32 %v6694_v51, %v5141_v24 }
 0x39d   : > { %v3550_v34 = vpop.permute.xlu0 %3549  ;;  %v6003_v4 = vpop.permute.xlu1 %2548 }
 0x39e   : > { %v3552_v59 = vsel %vm6578_vm10, %v5822_v17, %v3550_v34  ;;  %3589 = vrot.lane.b32.xlu1 %v3585_v60, %s4440_s12  ;;  %v3698_v60 = vmul.f32 %v5397_v3, %v5227_v2  ;;  %vm2738_vm10 = vcmask 621568  }
 0x39f   : > { %v3556_v20 = vadd.f32 %v3552_v59, %v3542_v33  ;;  %3139 = vrot.lane.b32.xlu0 %v3128_v55, %s4451_s18  ;;  %v2941_v33 = vmul.f32 %v5375_v27, %v5098_v12  ;;  %v3599_v59 = vmul.f32 %v5116_v61, %v5241_v6  ;;  %v6700_v27 = vld [vmem:[#allocation32_spill] sm:$0xff] }
 0x3a1   : > { %v6013_v26 = vpop.permute.xlu0 %2856  ;;  %v6015_v30 = vpop.permute.xlu1 %2579 }
 0x3a2   : > { %6695 = vst [vmem:[#allocation7_spill] sm:$0xff] %v6013_v26  ;;  %6696 = vst [vmem:[#allocation85_spill] sm:$0xff] %v6015_v30  ;;  %2947 = vrot.lane.b32.xlu1 %v2939_v52, %s4445_s24  ;;  %v3712_v52 = vmul.f32 %v6682_v23, %v5227_v2  ;;  %v6713_v30 = vld [vmem:[#allocation79_spill] sm:$0xff] }
 0x3a3   : > { %3689 = vrot.lane.b32.xlu0 %v3684_v28, %s4447_s16  ;;  %v6699_v28 = vld [vmem:[#allocation34_spill] sm:$0xff] }
 0x3a4   : > { %v2088_v26 = vsel %vm968_vm3, %v6700_v27, %v6699_v28  ;;  %v6705_v27 = vld [vmem:[#allocation9_spill] sm:$0xff] }
 0x3a5   : > { %v6023_v55 = vpop.permute.xlu0 %2860  ;;  %v6025_v34 = vpop.permute.xlu1 %2610 }
 0x3a6   : > { %6697 = vst [vmem:[#allocation86_spill] sm:$0xff] %v6023_v55  ;;  %6698 = vst [vmem:[#allocation87_spill] sm:$0xff] %v6025_v34  ;;  %2951 = vrot.lane.b32.xlu1 %v2941_v33, %s4445_s24  ;;  %v6701_v55 = vld [vmem:[#allocation2_spill] sm:$0xff]  ;;  %v2970_v34 = vmul.f32 %v6705_v27, %v5141_v24 }
 0x3a7   : > { %3703 = vrot.lane.b32.xlu0 %v3698_v60, %s4448_s17  ;;  %v2061_v17 = vmul.f32 %v6701_v55, %v5141_v24  ;;  %v6703_v60 = vld [vmem:[#allocation15_spill] sm:$0xff] }
 0x3a8   : > { %v2119_v61 = vsel %vm1185_vm4, %v6704_v8, %v6703_v60 }
 0x3a9   : > { %v3564_v51 = vpop.permute.xlu0 %3563  ;;  %v6038_v19 = vpop.permute.xlu1 %2641  ;;  %v2092_v23 = vadd.f32 %v2088_v26, %v2061_v17 }
 0x3aa   : > { %6702 = vst [vmem:[#allocation34_spill] sm:$0xff] %v6038_v19  ;;  %v3566_v33 = vsel %vm2738_vm10, %v5864_v46, %v3564_v51  ;;  %3603 = vrot.lane.b32.xlu1 %v3599_v59, %s4441_s20  ;;  %v6706_v19 = vld [vmem:[#allocation38_spill] sm:$0xff]  ;;  %v6708_v46 = vld [vmem:[#allocation33_spill] sm:$0xff]  ;;  %v2062_v59 = vmul.f32 %v6672_v14, %v5098_v12  ;;  %v2972_v14 = vmul.f32 %v6687_v36, %v5098_v12 }
 0x3ab   : > { %v3570_v32 = vadd.f32 %v3566_v33, %v3556_v20  ;;  %3717 = vrot.lane.b32.xlu0 %v3712_v52, %s4449_s28  ;;  %v2150_v51 = vsel %vm2149_vm11, %v6707_v43, %v6706_v19  ;;  %v2089_v8 = vsel %vm968_vm3, %v6708_v46, %v5799_v1  ;;  %v2123_v17 = vadd.f32 %v2119_v61, %v2092_v23  ;;  %v6710_v52 = vld [vmem:[#allocation16_spill] sm:$0xff] }
 0x3ac   : > { %v6711_v33 = vld [vmem:[#allocation40_spill] sm:$0xff]  ;;  %v3271_v43 = vsel %vm968_vm3, %v6699_v28, %v6712_v29  ;;  %v2120_v46 = vsel %vm1185_vm4, %v6713_v30, %v5447_v44  ;;  %v3261_v1 = vmul.f32 %v6701_v55, %v4974_v25  ;;  %v2093_v61 = vadd.f32 %v2089_v8, %v2062_v59  ;;  %v6714_v29 = vld [vmem:[#allocation43_spill] sm:$0xff]  ;;  %v6715_v28 = vld [vmem:[#allocation41_spill] sm:$0xff] }
 0x3ad   : > { %v6057_v20 = vpop.permute.xlu0 %2887  ;;  %v6061_v26 = vpop.permute.xlu1 %3463  ;;  %v2181_v27 = vsel %vm2180_vm12, %v6711_v33, %v6710_v52  ;;  %v2154_v23 = vadd.f32 %v2150_v51, %v2123_v17  ;;  %v3740_v33 = vmul.f32 %v6693_v56, %v5227_v2  ;;  %v6716_v44 = vld [vmem:[#allocation48_spill] sm:$0xff]  ;;  %v6719_v2 = vld [vmem:[#allocation17_spill] sm:$0xff]  ;;  %vm2769_vm3 = vcmask 613376  }
 0x3ae   : > { %6709 = vst [vmem:[#allocation32_spill] sm:$0xff] %v6057_v20  ;;  %2978 = vrot.lane.b32.xlu1 %v2970_v34, %s4446_s27  ;;  %v2212_v20 = vsel %vm2211_vm13, %v6715_v28, %v6714_v29  ;;  %v3285_v30 = vsel %vm1185_vm4, %v6703_v60, %v6716_v44  ;;  %v6718_v34 = vld [vmem:[#allocation36_spill] sm:$0xff]  ;;  %v3275_v51 = vadd.f32 %v3271_v43, %v3261_v1  ;;  %v6721_v28 = vld [vmem:[#allocation49_spill] sm:$0xff]  ;;  %vm2800_vm4 = vcmask 523264  }
 0x3af   : > { %3731 = vrot.lane.b32.xlu0 %v3726_v40, %s4450_s29  ;;  %v6717_v40 = vld [vmem:[#allocation80_spill] sm:$0xff]  ;;  %v2185_v36 = vadd.f32 %v2181_v27, %v2154_v23  ;;  %v2124_v8 = vadd.f32 %v2120_v46, %v2093_v61  ;;  %v3299_v41 = vsel %vm2149_vm11, %v6706_v19, %v6721_v28  ;;  %v6722_v60 = vld [vmem:[#allocation81_spill] sm:$0xff]  ;;  %v3613_v1 = vmul.f32 %v5051_v7, %v5241_v6  ;;  %v6723_v23 = vld [vmem:[#allocation46_spill] sm:$0xff] }
 0x3b0   : > { %v2151_v25 = vsel %vm2149_vm11, %v6718_v34, %v6717_v40  ;;  %v6720_v17 = vld [vmem:[#allocation44_spill] sm:$0xff]  ;;  %v2182_v44 = vsel %vm2180_vm12, %v6722_v60, %v5467_v53  ;;  %v3289_v43 = vadd.f32 %v3285_v30, %v3275_v51  ;;  %v6724_v61 = vld [vmem:[#allocation45_spill] sm:$0xff]  ;;  %v6725_v19 = vld [vmem:[#allocation51_spill] sm:$0xff]  ;;  %vm6762_vm11 = vcmask 744448  }
 0x3b1   : > { %v6089_v55 = vpop.permute.xlu0 %2891  ;;  %v6091_v59 = vpop.permute.xlu1 %2668  ;;  %v2243_v56 = vsel %vm1307_vm5, %v6720_v17, %v6719_v2  ;;  %v2216_v27 = vadd.f32 %v2212_v20, %v2185_v36  ;;  %v2155_v46 = vadd.f32 %v2151_v25, %v2124_v8  ;;  %v2274_v40 = vsel %vm1429_vm6, %v6724_v61, %v6723_v23  ;;  %v6726_v53 = vld [vmem:[#allocation39_spill] sm:$0xff]  ;;  %v6727_v36 = vld [vmem:[#allocation18_spill] sm:$0xff]  ;;  %v6729_v28 = vld [vmem:[#allocation53_spill] sm:$0xff] }
 0x3b2   : > { %2982 = vrot.lane.b32.xlu1 %v2972_v14, %s4446_s27  ;;  %v3313_v34 = vsel %vm2180_vm12, %v6710_v52, %v6725_v19  ;;  %v2213_v14 = vsel %vm2211_vm13, %v6726_v53, %v5850_v13  ;;  %v3303_v20 = vadd.f32 %v3299_v41, %v3289_v43  ;;  %v6728_v51 = vld [vmem:[#allocation50_spill] sm:$0xff]  ;;  %v3327_v52 = vsel %vm2211_vm13, %v6714_v29, %v6729_v28  ;;  %v6732_v61 = vld [vmem:[#allocation52_spill] sm:$0xff]  ;;  %v6733_v53 = vld [vmem:[#allocation55_spill] sm:$0xff] }
 0x3b3   : > { %3745 = vrot.lane.b32.xlu0 %v3740_v33, %s4451_s18  ;;  %v2247_v17 = vadd.f32 %v2243_v56, %v2216_v27  ;;  %v2186_v30 = vadd.f32 %v2182_v44, %v2155_v46  ;;  %v2305_v8 = vsel %vm1551_vm7, %v6728_v51, %v6727_v36  ;;  %v2244_v13 = vsel %vm1307_vm5, %v5866_v57, %v5487_v48  ;;  %v6730_v27 = vld [vmem:[#allocation10_spill] sm:$0xff]  ;;  %v6731_v46 = vld [vmem:[#allocation19_spill] sm:$0xff] }
 0x3b4   : > { %v3317_v60 = vadd.f32 %v3313_v34, %v3303_v20  ;;  %v3001_v43 = vmul.f32 %v6730_v27, %v5141_v24  ;;  %v2336_v19 = vsel %vm2335_vm14, %v6732_v61, %v6731_v46  ;;  %v3341_v29 = vsel %vm1307_vm5, %v6719_v2, %v6733_v53  ;;  %v6742_v53 = vld [vmem:[#allocation58_spill] sm:$0xff] }
 0x3b5   : > { %v3578_v33 = vpop.permute.xlu0 %3577  ;;  %v6115_v25 = vpop.permute.xlu1 %2672  ;;  %v2278_v41 = vadd.f32 %v2274_v40, %v2247_v17  ;;  %v2217_v44 = vadd.f32 %v2213_v14, %v2186_v30  ;;  %v6735_v14 = vld [vmem:[#allocation20_spill] sm:$0xff]  ;;  %v6736_v17 = vld [vmem:[#allocation54_spill] sm:$0xff]  ;;  %v6737_v30 = vld [vmem:[#allocation57_spill] sm:$0xff]  ;;  %v2306_v2 = vsel %vm1551_vm7, %v5895_v38, %v5537_v54  ;;  %v3003_v28 = vmul.f32 %v5385_v31, %v5098_v12 }
 0x3b6   : > { %v3580_v7 = vsel %vm2769_vm3, %v5909_v47, %v3578_v33  ;;  %3617 = vrot.lane.b32.xlu1 %v3613_v1, %s4442_s21  ;;  %v6734_v33 = vld [vmem:[#allocation42_spill] sm:$0xff]  ;;  %v3331_v1 = vadd.f32 %v3327_v52, %v3317_v60  ;;  %v2367_v20 = vsel %vm2366_vm15, %v6736_v17, %v6735_v14  ;;  %v6738_v52 = vld [vmem:[#allocation21_spill] sm:$0xff]  ;;  %v6740_v60 = vld [vmem:[#allocation59_spill] sm:$0xff]  ;;  %v2337_v54 = vsel %vm2335_vm14, %v5911_v10, %v5557_v58 }
 0x3b7   : > { %v3584_v56 = vadd.f32 %v3580_v7, %v3570_v32  ;;  %v2275_v48 = vsel %vm1429_vm6, %v6734_v33, %v5879_v45  ;;  %v2309_v32 = vadd.f32 %v2305_v8, %v2278_v41  ;;  %v2248_v40 = vadd.f32 %v2244_v13, %v2217_v44  ;;  %v6739_v13 = vld [vmem:[#allocation56_spill] sm:$0xff]  ;;  %v6741_v31 = vld [vmem:[#allocation22_spill] sm:$0xff]  ;;  %v6743_v33 = vld [vmem:[#allocation61_spill] sm:$0xff] }
 0x3b8   : > { %v3355_v7 = vsel %vm1429_vm6, %v6723_v23, %v6737_v30  ;;  %v3345_v51 = vadd.f32 %v3341_v29, %v3331_v1  ;;  %v2398_v41 = vsel %vm2397_vm1, %v6739_v13, %v6738_v52  ;;  %v3369_v23 = vsel %vm1551_vm7, %v6727_v36, %v6740_v60  ;;  %v6745_v17 = vld [vmem:[#allocation60_spill] sm:$0xff]  ;;  %v6746_v30 = vld [vmem:[#allocation63_spill] sm:$0xff] }
 0x3b9   : > { %v6140_v57 = vpop.permute.xlu0 %2918  ;;  %v6142_v34 = vpop.permute.xlu1 %3477  ;;  %v2340_v45 = vadd.f32 %v2336_v19, %v2309_v32  ;;  %v2279_v8 = vadd.f32 %v2275_v48, %v2248_v40  ;;  %v2429_v29 = vsel %vm1673_vm8, %v6742_v53, %v6741_v31  ;;  %v3383_v48 = vsel %vm2335_vm14, %v6731_v46, %v6743_v33  ;;  %v6744_v40 = vld [vmem:[#allocation23_spill] sm:$0xff] }
 0x3ba   : > { %3009 = vrot.lane.b32.xlu1 %v3001_v43, %s4447_s16  ;;  %v3359_v43 = vadd.f32 %v3355_v7, %v3345_v51  ;;  %v2368_v36 = vsel %vm2366_vm15, %v5925_v37, %v5577_v16  ;;  %v3627_v1 = vmul.f32 %v5122_v22, %v5241_v6  ;;  %v3397_v46 = vsel %vm2366_vm15, %v6735_v14, %v6746_v30 }
 0x3bb   : > { %v2371_v44 = vadd.f32 %v2367_v20, %v2340_v45  ;;  %v2310_v61 = vadd.f32 %v2306_v2, %v2279_v8  ;;  %v2460_v20 = vsel %vm1795_vm9, %v6745_v17, %v6744_v40  ;;  %v2399_v16 = vsel %vm2397_vm1, %v5941_v62, %v5597_v50  ;;  %v6747_v8 = vld [vmem:[#allocation24_spill] sm:$0xff] }
 0x3bc   : > { %v3373_v10 = vadd.f32 %v3369_v23, %v3359_v43  ;;  %vm6749_vm5 = vcmask 769024   ;;  %v2430_v50 = vsel %vm1673_vm8, %v5957_v21, %v5617_v35  ;;  %v6751_v43 = vld [vmem:[#allocation25_spill] sm:$0xff]  ;;  %vm6753_vm6 = vcmask 760832  }
 0x3bd   : > { %v6165_v38 = vpop.permute.xlu0 %2922  ;;  %v6167_v19 = vpop.permute.xlu1 %2699  ;;  %v2402_v58 = vadd.f32 %v2398_v41, %v2371_v44  ;;  %v2341_v32 = vadd.f32 %v2337_v54, %v2310_v61  ;;  %v6750_v41 = vld [vmem:[#allocation66_spill] sm:$0xff]  ;;  %v3032_v44 = vmul.f32 %v6678_v9, %v5141_v24  ;;  %v6752_v61 = vld [vmem:[#allocation64_spill] sm:$0xff]  ;;  %v2461_v35 = vsel %vm1795_vm9, %v5971_v5, %v5637_v42  ;;  %vm6764_vm12 = vmmov %vm6749_vm5 }
 0x3be   : > { %3013 = vrot.lane.b32.xlu1 %v3003_v28, %s4447_s16  ;;  %v3387_v2 = vadd.f32 %v3383_v48, %v3373_v10  ;;  %v6748_v28 = vld [vmem:[#allocation62_spill] sm:$0xff]  ;;  %v3411_v14 = vsel %vm2397_vm1, %v6738_v52, %v6750_v41  ;;  %v2522_v53 = vsel %vm6753_vm6, %v6752_v61, %v6751_v43  ;;  %v6756_v10 = vld [vmem:[#allocation67_spill] sm:$0xff]  ;;  %vm6757_vm7 = vcmask 752640   ;;  %vm6769_vm14 = vmmov %vm6753_vm6 }
 0x3bf   : > { %v2433_v7 = vadd.f32 %v2429_v29, %v2402_v58  ;;  %v2372_v45 = vadd.f32 %v2368_v36, %v2341_v32  ;;  %v2491_v13 = vsel %vm6749_vm5, %v6748_v28, %v6747_v8  ;;  %v6754_v29 = vld [vmem:[#allocation69_spill] sm:$0xff]  ;;  %v6755_v58 = vld [vmem:[#allocation26_spill] sm:$0xff]  ;;  %v3034_v30 = vmul.f32 %v5397_v3, %v5098_v12  ;;  %vm6768_vm13 = vmmov %vm6757_vm7 }
 0x3c0   : > { %v3401_v23 = vadd.f32 %v3397_v46, %v3387_v2  ;;  %v3425_v52 = vsel %vm1673_vm8, %v6741_v31, %v6754_v29  ;;  %v2553_v32 = vsel %vm6757_vm7, %v6756_v10, %v6755_v58  ;;  %vm6759_vm8 = vmmov %vm6749_vm5  ;;  %v6760_v46 = vld [vmem:[#allocation27_spill] sm:$0xff]  ;;  %v6767_v3 = vld [vmem:[#allocation73_spill] sm:$0xff]  ;;  %vm2831_vm15 = vcmask 515072  }
 0x3c1   : > { %v3592_v37 = vpop.permute.xlu0 %3591  ;;  %v6190_v51 = vpop.permute.xlu1 %2703  ;;  %v2464_v60 = vadd.f32 %v2460_v20, %v2433_v7  ;;  %v2403_v54 = vadd.f32 %v2399_v16, %v2372_v45  ;;  %v2492_v31 = vsel %vm6759_vm8, %v5985_v63, %v5657_v39  ;;  %v6761_v16 = vld [vmem:[#allocation70_spill] sm:$0xff]  ;;  %v6763_v7 = vld [vmem:[#allocation75_spill] sm:$0xff]  ;;  %v6772_v61 = vld [vmem:[#allocation65_spill] sm:$0xff]  ;;  %vm6786_vm8 = vcmask 629760  }
 0x3c2   : > { %v3594_v22 = vsel %vm2800_vm4, %v5955_v18, %v3592_v37  ;;  %3631 = vrot.lane.b32.xlu1 %v3627_v1, %s4443_s22  ;;  %v3415_v33 = vadd.f32 %v3411_v14, %v3401_v23  ;;  %v6758_v1 = vld [vmem:[#allocation72_spill] sm:$0xff]  ;;  %v2584_v37 = vsel %vm6762_vm11, %v6761_v16, %v6760_v46  ;;  %v2554_v14 = vsel %vm6768_vm13, %v6003_v4, %v5697_v11  ;;  %v6770_v23 = vld [vmem:[#allocation31_spill] sm:$0xff]  ;;  %vm6774_vm1 = vmmov %vm6762_vm11 }
 0x3c3   : > { %v3598_v62 = vadd.f32 %v3594_v22, %v3584_v56  ;;  %v2495_v56 = vadd.f32 %v2491_v13, %v2464_v60  ;;  %v2434_v48 = vadd.f32 %v2430_v50, %v2403_v54  ;;  %v3439_v17 = vsel %vm1795_vm9, %v6744_v40, %v6758_v1  ;;  %vm6765_vm9 = vmmov %vm6753_vm6  ;;  %v6766_v13 = vld [vmem:[#allocation28_spill] sm:$0xff]  ;;  %v6771_v54 = vld [vmem:[#allocation77_spill] sm:$0xff] }
 0x3c4   : > { %v3429_v5 = vadd.f32 %v3425_v52, %v3415_v33  ;;  %v3453_v40 = vsel %vm6764_vm12, %v6747_v8, %v6763_v7  ;;  %v2523_v39 = vsel %vm6765_vm9, %v5995_v0, %v5677_v49  ;;  %v2615_v41 = vsel %vm2614_vm2, %v6767_v3, %v6766_v13  ;;  %vm6775_vm5 = vmmov %vm6757_vm7  ;;  %v6777_v33 = vld [vmem:[#allocation68_spill] sm:$0xff]  ;;  %v6784_v16 = vld [vmem:[#allocation34_spill] sm:$0xff] }
 0x3c5   : > { %v6215_v21 = vpop.permute.xlu0 %2949  ;;  %v3492_v36 = vpop.permute.xlu1 %3491  ;;  %v2526_v42 = vadd.f32 %v2522_v53, %v2495_v56  ;;  %v2465_v20 = vadd.f32 %v2461_v35, %v2434_v48  ;;  %v3467_v8 = vsel %vm6769_vm14, %v6751_v43, %v6061_v26  ;;  %v3641_v60 = vmul.f32 %v6686_v15, %v5241_v6  ;;  %v6773_v53 = vld [vmem:[#allocation85_spill] sm:$0xff]  ;;  %v6778_v48 = vld [vmem:[#allocation87_spill] sm:$0xff]  ;;  %vm6781_vm7 = vmmov %vm6774_vm1 }
 0x3c6   : > { %3040 = vrot.lane.b32.xlu1 %v3032_v44, %s4448_s17  ;;  %v3443_v45 = vadd.f32 %v3439_v17, %v3429_v5  ;;  %v2646_v44 = vsel %vm2645_vm0, %v6771_v54, %v6770_v23  ;;  %v2585_v11 = vsel %vm6774_vm1, %v6773_v53, %v6772_v61  ;;  %v3481_v4 = vsel %vm6775_vm5, %v6755_v58, %v6142_v34  ;;  %v6776_v56 = vld [vmem:[#allocation13_spill] sm:$0xff]  ;;  %v6782_v5 = vld [vmem:[#allocation11_spill] sm:$0xff]  ;;  %v6785_v7 = vld [vmem:[#allocation78_spill] sm:$0xff] }
 0x3c7   : > { %v2557_v2 = vadd.f32 %v2553_v32, %v2526_v42  ;;  %v2496_v22 = vadd.f32 %v2492_v31, %v2465_v20  ;;  %v2616_v10 = vsel %vm2614_vm2, %v6778_v48, %v6777_v33  ;;  %v6779_v32 = vld [vmem:[#allocation74_spill] sm:$0xff]  ;;  %vm6780_vm6 = vcmask 637952   ;;  %vm6792_vm12 = vmmov %vm6786_vm8  ;;  %v6794_v61 = vld [vmem:[#allocation83_spill] sm:$0xff] }
 0x3c8   : > { %v3457_v0 = vadd.f32 %v3453_v40, %v3443_v45  ;;  %v2677_v1 = vsel %vm6780_vm6, %v6091_v59, %v6779_v32  ;;  %v3495_v17 = vsel %vm6781_vm7, %v6760_v46, %v3492_v36  ;;  %v3063_v20 = vmul.f32 %v6782_v5, %v5141_v24  ;;  %vm6788_vm11 = vmmov %vm6780_vm6  ;;  %v6789_v45 = vld [vmem:[#allocation82_spill] sm:$0xff] }
 0x3c9   : > { %v6238_v63 = vpop.permute.xlu0 %2953  ;;  %v2731_v28 = vpop.permute.xlu1 %2730  ;;  %v2588_v49 = vadd.f32 %v2584_v37, %v2557_v2  ;;  %v2527_v50 = vadd.f32 %v2523_v39, %v2496_v22  ;;  %v2708_v59 = vsel %vm6786_vm8, %v6167_v19, %v6785_v7  ;;  %v6787_v39 = vld [vmem:[#allocation76_spill] sm:$0xff]  ;;  %v6790_v19 = vld [vmem:[#allocation14_spill] sm:$0xff]  ;;  %vm2862_vm9 = vcmask 506880  }
 0x3ca   : > { %3044 = vrot.lane.b32.xlu1 %v3034_v30, %s4448_s17  ;;  %v3471_v52 = vadd.f32 %v3467_v8, %v3457_v0  ;;  %v6783_v30 = vld [vmem:[#allocation71_spill] sm:$0xff]  ;;  %v2678_v2 = vsel %vm6788_vm11, %v6115_v25, %v6787_v39  ;;  %v2739_v22 = vsel %vm2738_vm10, %v2731_v28, %v6789_v45  ;;  %v6791_v0 = vld [vmem:[#allocation6_spill] sm:$0xff]  ;;  %vm2893_vm13 = vcmask 498688  }
 0x3cb   : > { %v2619_v43 = vadd.f32 %v2615_v41, %v2588_v49  ;;  %v2558_v29 = vadd.f32 %v2554_v14, %v2527_v50  ;;  %v2647_v37 = vsel %vm2645_vm0, %v6784_v16, %v6783_v30  ;;  %v3065_v49 = vmul.f32 %v6790_v19, %v5098_v12  ;;  %v6802_v39 = vld [vmem:[#allocation30_spill] sm:$0xff] }
 0x3cc   : > { %v3485_v42 = vadd.f32 %v3481_v4, %v3471_v52  ;;  %v2709_v50 = vsel %vm6792_vm12, %v6190_v51, %v6791_v0  ;;  %v6795_v4 = vld [vmem:[#allocation3_spill] sm:$0xff]  ;;  %vm3017_vm14 = vcmask 384000   ;;  %vm3079_vm1 = vcmask 367616  }
 0x3cd   : > { %v3606_v26 = vpop.permute.xlu0 %3605  ;;  %v2735_v35 = vpop.permute.xlu1 %2734  ;;  %v2650_v58 = vadd.f32 %v2646_v44, %v2619_v43  ;;  %v2589_v31 = vadd.f32 %v2585_v11, %v2558_v29  ;;  %v6793_v44 = vld [vmem:[#allocation4_spill] sm:$0xff]  ;;  %vm3110_vm5 = vcmask 359424   ;;  %vm3164_vm7 = vcmask 130048  }
 0x3ce   : > { %v3608_v15 = vsel %vm2831_vm15, %v6776_v56, %v3606_v26  ;;  %3645 = vrot.lane.b32.xlu1 %v3641_v60, %s4444_s23  ;;  %v2740_v28 = vsel %vm2738_vm10, %v2735_v35, %v6793_v44  ;;  %v3655_v26 = vmul.f32 %v6795_v4, %v5241_v6  ;;  %v6796_v35 = vld [vmem:[#allocation12_spill] sm:$0xff]  ;;  %v6806_v44 = vld [vmem:[#allocation86_spill] sm:$0xff]  ;;  %s4010_s23 = sshll.u32 %s6811_s14, 4 }
 0x3cf   : > { %v6271_v34 = vadd.f32 %v3608_v15, %v3598_v62  ;;  %v2620_v40 = vadd.f32 %v2616_v10, %v2589_v31  ;;  %v2681_v36 = vadd.f32 %v2677_v1, %v2650_v58  ;;  %v3499_v62 = vadd.f32 %v3495_v17, %v3485_v42  ;;  %v6797_v1 = vld [vmem:[#allocation29_spill] sm:$0xff]  ;;  %v6798_v31 = vld [vmem:[#allocation84_spill] sm:$0xff] }
 0x3d0   : > { %v3094_v15 = vmul.f32 %v6796_v35, %v5141_v24  ;;  %v3096_v17 = vmul.f32 %v6797_v1, %v5098_v12 }
 0x3d1   : > { %v3506_v46 = vpop.permute.xlu1 %3505  ;;  %v2651_v41 = vadd.f32 %v2647_v37, %v2620_v40  ;;  %v2712_v14 = vadd.f32 %v2708_v59, %v2681_v36  ;;  %v6800_v59 = vld [vmem:[#allocation5_spill] sm:$0xff] }
 0x3d2   : > { %v3509_v3 = vsel %vm2614_vm2, %v6766_v13, %v3506_v46  ;;  %3071 = vrot.lane.b32.xlu1 %v3063_v20, %s4449_s28  ;;  %v6799_v20 = vld [vmem:[#allocation9_spill] sm:$0xff]  ;;  %v3125_v40 = vmul.f32 %v6800_v59, %v5141_v24  ;;  %v3683_v24 = vmul.f32 %v6730_v27, %v5241_v6  ;;  %vm6804_vm2 = vmmov %vm6786_vm8  ;;  %v3711_v27 = vmul.f32 %v6782_v5, %v5241_v6 }
 0x3d3   : > { %v3513_v8 = vadd.f32 %v3509_v3, %v3499_v62  ;;  %v2682_v60 = vadd.f32 %v2678_v2, %v2651_v41  ;;  %v2743_v25 = vadd.f32 %v2739_v22, %v2712_v14  ;;  %v3669_v30 = vmul.f32 %v6799_v20, %v5241_v6  ;;  %v6803_v3 = vld [vmem:[#allocation8_spill] sm:$0xff] }
 0x3d4   : > { %v3127_v2 = vmul.f32 %v6802_v39, %v5098_v12  ;;  %v3697_v12 = vmul.f32 %v6678_v9, %v5241_v6  ;;  %vm6809_vm8 = vmmov 0  }
 0x3d5   : > { %v2762_v54 = vpop.permute.xlu1 %2761  ;;  %v2713_v53 = vadd.f32 %v2709_v50, %v2682_v60  ;;  %v6805_v60 = vld [vmem:[#allocation7_spill] sm:$0xff] }
 0x3d6   : > { %v2770_v13 = vsel %vm2769_vm3, %v2762_v54, %v6794_v61  ;;  %3075 = vrot.lane.b32.xlu1 %v3065_v49, %s4449_s28  ;;  %v3725_v54 = vmul.f32 %v6796_v35, %v5241_v6 }
 0x3d7   : > { %v2774_v11 = vadd.f32 %v2770_v13, %v2743_v25  ;;  %v2744_v43 = vadd.f32 %v2740_v28, %v2713_v53  ;;  %v6345_v25 = vpop.permute.xlu0 %2980  ;;  %v3739_v13 = vmul.f32 %v6800_v59, %v5241_v6  ;;  %v2048_v6 = vld [vmem:[%s6516_s7 + $0x8] sm:$0xff] }
 0x3d8   : > { %3156 = vperm.xlu0 %4346, %v2048_v6  }
 0x3d9   : > { %v2766_v29 = vpop.permute.xlu1 %2765 }
 0x3da   : > { %v2771_v51 = vsel %vm2769_vm3, %v2766_v29, %v5909_v47  ;;  %3659 = vrot.lane.b32.xlu1 %v3655_v26, %s4445_s24  ;;  %v6807_v29 = vld [vmem:[#allocation32_spill] sm:$0xff] }
 0x3db   : > { %v2775_v52 = vadd.f32 %v2771_v51, %v2744_v43  ;;  %v6354_v53 = vpop.permute.xlu0 %2984 }
 0x3dd   : > { %v3520_v33 = vpop.permute.xlu1 %3519 }
 0x3de   : > { %v3523_v48 = vsel %vm2645_vm0, %v6770_v23, %v3520_v33  ;;  %3102 = vrot.lane.b32.xlu1 %v3094_v15, %s4450_s29  ;;  %vm6801_vm0 = vmmov %vm6780_vm6  ;;  %vm3141_vm6 = vcmask 351232  }
 0x3df   : > { %v3527_v10 = vadd.f32 %v3523_v48, %v3513_v8  ;;  %v6367_v35 = vpop.permute.xlu0 %3619 }
 0x3e1   : > { %v2793_v58 = vpop.permute.xlu1 %2792 }
 0x3e2   : > { %v2801_v47 = vsel %vm2800_vm4, %v2793_v58, %v6798_v31  ;;  %3106 = vrot.lane.b32.xlu1 %v3096_v17, %s4450_s29 }
 0x3e3   : > { %v2805_v42 = vadd.f32 %v2801_v47, %v2774_v11  ;;  %v6374_v1 = vpop.permute.xlu0 %3011 }
 0x3e5   : > { %v2797_v16 = vpop.permute.xlu1 %2796 }
 0x3e6   : > { %v2802_v23 = vsel %vm2800_vm4, %v2797_v16, %v5955_v18  ;;  %3673 = vrot.lane.b32.xlu1 %v3669_v30, %s4446_s27 }
 0x3e7   : > { %v2806_v37 = vadd.f32 %v2802_v23, %v2775_v52  ;;  %v2047_v52 = vld [vmem:[%s6516_s7] sm:$0xff]  ;;  %v6380_v30 = vpop.permute.xlu0 %3015 }
 0x3e9   : > { %v3534_v36 = vpop.permute.xlu1 %3533 }
 0x3ea   : > { %v3537_v62 = vsel %vm6801_vm0, %v6779_v32, %v3534_v36  ;;  %3133 = vrot.lane.b32.xlu1 %v3125_v40, %s4451_s18 }
 0x3eb   : > { %v3541_v46 = vadd.f32 %v3537_v62, %v3527_v10  ;;  %v6384_v40 = vpop.permute.xlu0 %3633 }
 0x3ed   : > { %v2824_v22 = vpop.permute.xlu1 %2823 }
 0x3ee   : > { %v2832_v18 = vsel %vm2831_vm15, %v2824_v22, %v6803_v3  ;;  %3137 = vrot.lane.b32.xlu1 %v3127_v2, %s4451_s18 }
 0x3ef   : > { %v2836_v41 = vadd.f32 %v2832_v18, %v2805_v42  ;;  %v6390_v2 = vpop.permute.xlu0 %3042 }
 0x3f1   : > { %v2828_v14 = vpop.permute.xlu1 %2827 }
 0x3f2   : > { %v2833_v32 = vsel %vm2831_vm15, %v2828_v14, %v6776_v56  ;;  %3687 = vrot.lane.b32.xlu1 %v3683_v24, %s4447_s16  ;;  %s376_s16 = scalar_lea.vmem %s6519_s10, %s4010_s23 }
 0x3f3   : > { %v2837_v8 = vadd.f32 %v2833_v32, %v2806_v37 }
 0x3f5   : > { %v3548_v19 = vpop.permute.xlu1 %3547 }
 0x3f6   : > { %v3551_v49 = vsel %vm6804_vm2, %v6785_v7, %v3548_v19  ;;  %3701 = vrot.lane.b32.xlu1 %v3697_v12, %s4448_s17 }
 0x3f7   : > { %v3555_v0 = vadd.f32 %v3551_v49, %v3541_v46 }
 0x3f9   : > { %v2855_v50 = vpop.permute.xlu1 %2854 }
 0x3fa   : > { %v2863_v56 = vsel %vm2862_vm9, %v2855_v50, %v6805_v60  ;;  %3715 = vrot.lane.b32.xlu1 %v3711_v27, %s4449_s28 }
 0x3fb   : > { %v2867_v9 = vadd.f32 %v2863_v56, %v2836_v41  ;;  %v6392_v41 = vpop.permute.xlu0 %3046 }
 0x3fd   : > { %v2859_v7 = vpop.permute.xlu1 %2858 }
 0x3fe   : > { %v2864_v28 = vsel %vm2862_vm9, %v2859_v7, %v6806_v44  ;;  %3729 = vrot.lane.b32.xlu1 %v3725_v54, %s4450_s29 }
 0x3ff   : > { %v2868_v5 = vadd.f32 %v2864_v28, %v2837_v8  ;;  %v6396_v12 = vpop.permute.xlu0 %3647 }
 0x401   : > { %v3562_v11 = vpop.permute.xlu1 %3561 }
 0x402   : > { %v3565_v4 = vsel %vm2738_vm10, %v6789_v45, %v3562_v11  ;;  %3743 = vrot.lane.b32.xlu1 %v3739_v13, %s4451_s18  ;;  %v2050_v45 = vld [vmem:[%s6518_s9] sm:$0xff]  ;;  %vm2924_vm10 = vcmask 490496  }
 0x403   : > { %v3569_v26 = vadd.f32 %v3565_v4, %v3555_v0  ;;  %v6398_v19 = vpop.permute.xlu0 %3073 }
 0x405   : > { %v2886_v43 = vpop.permute.xlu1 %2885 }
 0x406   : > { %v2894_v51 = vsel %vm2893_vm13, %v2886_v43, %v6807_v29  ;;  %3151 = vperm.xlu1 %4345, %v2047_v52  }
 0x407   : > { %v2898_v15 = vadd.f32 %v2894_v51, %v2867_v9  ;;  %v6400_v27 = vpop.permute.xlu0 %3077 }
 0x409   : > { %v2890_v33 = vpop.permute.xlu1 %2889 }
 0x40a   : > { %v2895_v48 = vsel %vm2893_vm13, %v2890_v33, %v6089_v55  ;;  %3214 = vperm.xlu1 %4345, %v2050_v45  }
 0x40b   : > { %v2899_v10 = vadd.f32 %v2895_v48, %v2868_v5  ;;  %v6402_v56 = vpop.permute.xlu0 %3661 }
 0x40d   : > { %v3576_v17 = vpop.permute.xlu1 %3575 }
 0x40e   : > { %v3579_v58 = vsel %vm2769_vm3, %v6794_v61, %v3576_v17  ;;  %vm2955_vm3 = vcmask 482304  }
 0x40f   : > { %v3583_v47 = vadd.f32 %v3579_v58, %v3569_v26  ;;  %v6404_v7 = vpop.permute.xlu0 %3104 }
 0x411   : > { %v2917_v42 = vpop.permute.xlu1 %2916 }
 0x412   : > { %v2925_v20 = vsel %vm2924_vm10, %v2917_v42, %v6140_v57 }
 0x413   : > { %v2929_v16 = vadd.f32 %v2925_v20, %v2898_v15 }
 0x415   : > { %v2921_v23 = vpop.permute.xlu1 %2920 }
 0x416   : > { %v2926_v37 = vsel %vm2924_vm10, %v2921_v23, %v6165_v38 }
 0x417   : > { %v2930_v59 = vadd.f32 %v2926_v37, %v2899_v10 }
 0x419   : > { %v3590_v36 = vpop.permute.xlu1 %3589 }
 0x41a   : > { %v3593_v61 = vsel %vm2800_vm4, %v6798_v31, %v3590_v36  ;;  %vm2986_vm4 = vcmask 392192  }
 0x41b   : > { %v3597_v62 = vadd.f32 %v3593_v61, %v3583_v47 }
 0x41d   : > { %v2948_v46 = vpop.permute.xlu1 %2947 }
 0x41e   : > { %v2956_v39 = vsel %vm2955_vm3, %v2948_v46, %v6215_v21 }
 0x41f   : > { %v2960_v22 = vadd.f32 %v2956_v39, %v2929_v16 }
 0x421   : > { %v2952_v18 = vpop.permute.xlu1 %2951 }
 0x422   : > { %v2957_v6 = vsel %vm2955_vm3, %v2952_v18, %v6238_v63 }
 0x423   : > { %v2961_v48 = vadd.f32 %v2957_v6, %v2930_v59 }
 0x425   : > { %v3604_v24 = vpop.permute.xlu1 %3603 }
 0x426   : > { %v3607_v14 = vsel %vm2831_vm15, %v6803_v3, %v3604_v24  ;;  %v6406_v3 = vpop.permute.xlu0 %3108  ;;  %vm3048_vm15 = vcmask 375808  }
 0x427   : > { %v3611_v32 = vadd.f32 %v3607_v14, %v3597_v62 }
 0x429   : > { %v2979_v8 = vpop.permute.xlu1 %2978 }
 0x42a   : > { %v6408_v11 = vpop.permute.xlu0 %3675  ;;  %v2987_v45 = vsel %vm2986_vm4, %v2979_v8, %v6345_v25 }
 0x42b   : > { %v2991_v47 = vadd.f32 %v2987_v45, %v2960_v22 }
 0x42d   : > { %v2983_v31 = vpop.permute.xlu1 %2982 }
 0x42e   : > { %v6410_v26 = vpop.permute.xlu0 %3135  ;;  %v2988_v33 = vsel %vm2986_vm4, %v2983_v31, %v6354_v53 }
 0x42f   : > { %v2992_v42 = vadd.f32 %v2988_v33, %v2961_v48 }
 0x431   : > { %v3618_v49 = vpop.permute.xlu1 %3617 }
 0x432   : > { %v6412_v52 = vpop.permute.xlu0 %3139  ;;  %v3621_v16 = vsel %vm2862_vm9, %v6805_v60, %v3618_v49 }
 0x433   : > { %v3625_v60 = vadd.f32 %v3621_v16, %v3611_v32 }
 0x435   : > { %v3010_v0 = vpop.permute.xlu1 %3009 }
 0x436   : > { %v3018_v10 = vsel %vm3017_vm14, %v3010_v0, %v6374_v1  ;;  %v3690_v58 = vpop.permute.xlu0 %3689 }
 0x437   : > { %v3022_v59 = vadd.f32 %v3018_v10, %v2991_v47 }
 0x439   : > { %v3014_v50 = vpop.permute.xlu1 %3013 }
 0x43a   : > { %v3019_v17 = vsel %vm3017_vm14, %v3014_v50, %v6380_v30  ;;  %v3704_v8 = vpop.permute.xlu0 %3703 }
 0x43b   : > { %v3023_v36 = vadd.f32 %v3019_v17, %v2992_v42 }
 0x43d   : > { %v3632_v9 = vpop.permute.xlu1 %3631 }
 0x43e   : > { %v3635_v61 = vsel %vm2893_vm13, %v6807_v29, %v3632_v9  ;;  %v3718_v45 = vpop.permute.xlu0 %3717 }
 0x43f   : > { %v3639_v31 = vadd.f32 %v3635_v61, %v3625_v60 }
 0x441   : > { %v3041_v54 = vpop.permute.xlu1 %3040 }
 0x442   : > { %v3049_v23 = vsel %vm3048_vm15, %v3041_v54, %v6390_v2 }
 0x443   : > { %v3053_v39 = vadd.f32 %v3049_v23, %v3022_v59 }
 0x445   : > { %v3045_v28 = vpop.permute.xlu1 %3044 }
 0x446   : > { %v3050_v37 = vsel %vm3048_vm15, %v3045_v28, %v6392_v41 }
 0x447   : > { %v3054_v22 = vadd.f32 %v3050_v37, %v3023_v36 }
 0x449   : > { %v3646_v5 = vpop.permute.xlu1 %3645 }
 0x44a   : > { %v3649_v24 = vsel %vm2924_vm10, %v6140_v57, %v3646_v5  ;;  %v3622_v5 = vsel %vm2862_vm9, %v6806_v44, %v6367_v35  ;;  %v4366_v35 = vld [vmem:[%s6515_s6] sm:$0xff]  }
 0x44b   : > { %v3653_v9 = vadd.f32 %v3649_v24, %v3639_v31 }
 0x44d   : > { %v3072_v13 = vpop.permute.xlu1 %3071 }
 0x44e   : > { %v3080_v62 = vsel %vm3079_vm1, %v3072_v13, %v6398_v19 }
 0x44f   : > { %v3084_v49 = vadd.f32 %v3080_v62, %v3053_v39 }
 0x451   : > { %v3076_v4 = vpop.permute.xlu1 %3075 }
 0x452   : > { %v3081_v46 = vsel %vm3079_vm1, %v3076_v4, %v6400_v27 }
 0x453   : > { %v3085_v0 = vadd.f32 %v3081_v46, %v3054_v22 }
 0x455   : > { %v3660_v43 = vpop.permute.xlu1 %3659 }
 0x456   : > { %v3663_v32 = vsel %vm2955_vm3, %v6215_v21, %v3660_v43  ;;  %v3636_v43 = vsel %vm2893_vm13, %v6089_v55, %v6384_v40  ;;  %v3664_v55 = vsel %vm2955_vm3, %v6238_v63, %v6402_v56  ;;  %v3706_v56 = vsel %vm3048_vm15, %v6392_v41, %v3704_v8 }
 0x459   : > { %v3103_v51 = vpop.permute.xlu1 %3102 }
 0x45a   : > { %v3111_v14 = vsel %vm3110_vm5, %v3103_v51, %v6404_v7  ;;  %v3667_v51 = vadd.f32 %v3663_v32, %v3653_v9 }
 0x45b   : > { %v3115_v54 = vadd.f32 %v3111_v14, %v3084_v49 }
 0x45d   : > { %v3107_v15 = vpop.permute.xlu1 %3106 }
 0x45e   : > { %v3112_v29 = vsel %vm3110_vm5, %v3107_v15, %v6406_v3  ;;  %v3626_v15 = vadd.f32 %v3622_v5, %v6271_v34  ;;  %v6808_v34 = vmov 0.0  }
 0x45f   : > { %v3116_v57 = vadd.f32 %v3112_v29, %v3085_v0 }
 0x460   : > { %v3640_v17 = vadd.f32 %v3636_v43, %v3626_v15 }
 0x461   : > { %v3674_v20 = vpop.permute.xlu1 %3673 }
 0x462   : > { %v3677_v13 = vsel %vm2986_vm4, %v6345_v25, %v3674_v20  ;;  %v3650_v25 = vsel %vm2924_vm10, %v6165_v38, %v6396_v12  ;;  %v3678_v38 = vsel %vm2986_vm4, %v6354_v53, %v6408_v11  ;;  %v3732_v12 = vpop.permute.xlu0 %3731  ;;  %v3692_v20 = vsel %vm3017_vm14, %v6380_v30, %v3690_v58 }
 0x463   : > { %v3681_v33 = vadd.f32 %v3677_v13, %v3667_v51  ;;  %v3654_v40 = vadd.f32 %v3650_v25, %v3640_v17  ;;  %v3720_v53 = vsel %vm3079_vm1, %v6400_v27, %v3718_v45  ;;  %v3734_v30 = vsel %vm3110_vm5, %v6406_v3, %v3732_v12 }
 0x465   : > { %v3134_v18 = vpop.permute.xlu1 %3133 }
 0x466   : > { %v3142_v50 = vsel %vm3141_vm6, %v3134_v18, %v6410_v26  ;;  %v3746_v36 = vpop.permute.xlu0 %3745 }
 0x467   : > { %v3146_v6 = vadd.f32 %v3142_v50, %v3115_v54 }
 0x469   : > { %v3138_v28 = vpop.permute.xlu1 %3137 }
 0x46a   : > { %v3143_v4 = vsel %vm3141_vm6, %v3138_v28, %v6412_v52  ;;  %v3157_v8 = vpop.permute.xlu0 %3156 }
 0x46b   : > { %v3147_v21 = vadd.f32 %v3143_v4, %v3116_v57 }
 0x46d   : > { %v3148_v48 = vpack.c.bf16 %v3147_v21, %v3146_v6  ;;  %v3688_v10 = vpop.permute.xlu1 %3687 }
 0x46e   : > { %v3691_v44 = vsel %vm3017_vm14, %v6374_v1, %v3688_v10  ;;  %v3668_v1 = vadd.f32 %v3664_v55, %v3654_v40 }
 0x46f   : > { %v3695_v47 = vadd.f32 %v3691_v44, %v3681_v33  ;;  %4164 = vmatpush3.bf16.msra.mxu1 %v3148_v48 }
 0x470   : > { %4175 = vmatprep.subr.bf16.mxu1 %v6808_v34  ;;  %v3682_v16 = vadd.f32 %v3678_v38, %v3668_v1 }
 0x471   : > { %v3702_v42 = vpop.permute.xlu1 %3701 }
 0x472   : > { %4166 = vmatmul.mubr.msk.bf16.vlgmr.msra.gmra.mxu1 %vm3164_vm7, %v4366_v35  ;;  %v3705_v23 = vsel %vm3048_vm15, %v6390_v2, %v3702_v42  ;;  %v3696_v37 = vadd.f32 %v3692_v20, %v3682_v16  ;;  %v3748_v2 = vsel %vm3141_vm6, %v6412_v52, %v3746_v36 }
 0x473   : > { %4177 = vmatprep.mubr.msk.bf16.mxu1 %vm6809_vm8, %v6808_v34  ;;  %v3709_v61 = vadd.f32 %v3705_v23, %v3695_v47 }
 0x474   : > { %v3710_v59 = vadd.f32 %v3706_v56, %v3696_v37 }
 0x475   : > { %v3716_v63 = vpop.permute.xlu1 %3715 }
 0x476   : > { %v3719_v11 = vsel %vm3079_vm1, %v6398_v19, %v3716_v63  ;;  %v3724_v58 = vadd.f32 %v3720_v53, %v3710_v59 }
 0x477   : > { %v3723_v46 = vadd.f32 %v3719_v11, %v3709_v61 }
 0x478   : > { %v3738_v60 = vadd.f32 %v3734_v30, %v3724_v58 }
 0x479   : > { %v3730_v62 = vpop.permute.xlu1 %3729 }
 0x47a   : > { %v3733_v41 = vsel %vm3110_vm5, %v6404_v7, %v3730_v62  ;;  %v3752_v22 = vadd.f32 %v3748_v2, %v3738_v60 }
 0x47b   : > { %v3737_v27 = vadd.f32 %v3733_v41, %v3723_v46 }
 0x47d   : > { %v3744_v39 = vpop.permute.xlu1 %3743 }
 0x47e   : > { %v3747_v19 = vsel %vm3141_vm6, %v6410_v26, %v3744_v39  ;;  %v2049_v26 = vld [vmem:[%s6517_s8] sm:$0xf] }
 0x47f   : > { %v3751_v18 = vadd.f32 %v3747_v19, %v3737_v27 }
 0x481   : > { %v3753_v24 = vpack.c.bf16 %v3752_v22, %v3751_v18  ;;  %v3152_v3 = vpop.permute.xlu1 %3151 }
 0x483   : > { %4176 = vmatpush3.bf16.msra.mxu1 %v3753_v24 }
 0x485   : > { %v3215_v21 = vpop.permute.xlu1 %3214 }
 0x486   : > { %4178 = vmatmul.mubr.msk.bf16.vlgmr.msra.gmra.mxu1 %vm3164_vm7, %v4366_v35 }
 0x532   : > { %v3202_v14 = vpop.f32.mrf.mxu1 }
 0x533   : > { %v3203_v7 = vadd.f32 %v3202_v14, %v3152_v3 }
 0x534   : > { %v4167_v29 = vpop.f32.mrf.mxu1 }
 0x535   : > { %v3209_v49 = vmax.f32 %v3203_v7, 0.0 }
 0x536   : > { %v3205_v31 = vpop.f32.mrf.mxu1 }
 0x537   : > { %v3206_v52 = vadd.f32 %v3205_v31, %v3157_v8 }
 0x538   : > { %v4168_v0 = vpop.f32.mrf.mxu1 }
 0x539   : > { %v3210_v32 = vmax.f32 %v3206_v52, 0.0 }
 0x53b   : > { %v3211_v50 = vpack.c.bf16 %v3210_v32, %v3209_v49 }
 0x53d   : > { %4170 = vmatpush3.bf16.msra.mxu0 %v3211_v50 }
 0x53e   : > { %4181 = vmatprep.subr.bf16.mxu0 %v6808_v34 }
 0x540   : > { %4172 = vmatmul.mubr.msk.bf16.vlgmr.msra.gmra.mxu0 %vm3164_vm7, %v2049_v26 }
 0x541   : > { %4183 = vmatprep.mubr.msk.bf16.mxu0 %vm6809_vm8, %v6808_v34 }
 0x546   : > { %v3788_v9 = vpop.f32.mrf.mxu1 }
 0x547   : > { %v3789_v57 = vadd.f32 %v3788_v9, %v3152_v3 }
 0x548   : > { %v4179_v54 = vpop.f32.mrf.mxu1 }
 0x549   : > { %v3795_v4 = vmax.f32 %v3789_v57, 0.0 }
 0x54a   : > { %v3791_v28 = vpop.f32.mrf.mxu1 }
 0x54b   : > { %v3792_v5 = vadd.f32 %v3791_v28, %v3157_v8 }
 0x54c   : > { %v4180_v13 = vpop.f32.mrf.mxu1 }
 0x54d   : > { %v3796_v51 = vmax.f32 %v3792_v5, 0.0 }
 0x54f   : > { %v3797_v6 = vpack.c.bf16 %v3796_v51, %v3795_v4 }
 0x551   : > { %4182 = vmatpush3.bf16.msra.mxu0 %v3797_v6 }
 0x554   : > { %4184 = vmatmul.mubr.msk.bf16.vlgmr.msra.gmra.mxu0 %vm3164_vm7, %v2049_v26 }
 0x600   : > { %v3254_v43 = vpop.f32.mrf.mxu0 }
 0x601   : > { %v3255_v15 = vadd.f32 %v3254_v43, %v3215_v21 }
 0x602   : > { %v4173_v45 = vpop.f32.mrf.mxu0 }
 0x603   : > { %3260 = vst [vmem:[%s376_s16] sm:$0xff] %v3255_v15 }
 0x604   : > { %v3257_v33 = vpop.f32.mrf.mxu0 }
 0x606   : > { %v4174_v48 = vpop.f32.mrf.mxu0 }
 0x614   : > { %v3832_v10 = vpop.f32.mrf.mxu0 }
 0x615   : > { %v3833_v25 = vadd.f32 %v3832_v10, %v3215_v21 }
 0x616   : > { %v4185_v44 = vpop.f32.mrf.mxu0 }
 0x617   : > { %3838 = vst [vmem:[%s376_s16 + $0x8] sm:$0xff] %v3833_v25 }
 0x618   : > { %v3835_v35 = vpop.f32.mrf.mxu0 }
 0x61a   : > { %v4186_v17 = vpop.f32.mrf.mxu0 }
 0x61b PF: > { %s20_s13 = sadd.s32 1, %s4373_s13  }
 0x61c   : > { %p17_p4 = scmp.ge.s32.totalorder %s20_s13, 4  }
 0x61e   :  { %19 = sbr.rel (!%p17_p4) target bundleno = 1 (0x1), region = 109 }

</bundles_post_ra>
